<compile_context>
chip_gen: v6e
topology: v6e:2x2x1
jax: 0.10.0
libtpu: 0.0.40
codegen_flags: <defaults>
</compile_context>

<pallas_src>
import numpy as np
import jax
import jax.numpy as jnp
from jax.experimental import pallas as pl
from jax.experimental.pallas import tpu as pltpu

_BN_EPS = 1e-5

# Architecture constants (PyTorch module defaults).
K1, C1 = 2, 40
K2, C2 = 2, 100
K3, C3 = 3, 3
D1, D2 = 96, 10
C_PAD = 128          # channel dims that go through BN / final magnitude -> one full vreg
H_IN = W_IN = 6      # spatial size implied by the hard-coded 2*2*c3 flatten


# ----------------------------------------------------------------------------
# Fused forward kernel
# ----------------------------------------------------------------------------
def _swap_halves(x):
    """[a | b] -> [b | a] along lanes (half width is a multiple of 128 here)."""
    n = x.shape[-1] // 2
    return jnp.concatenate([x[:, n:], x[:, :n]], axis=-1)


def _disc_kernel(x0_ref,
                 g1_ref, w1_ref, b1_ref, bn1_wd_ref, bn1_wo_ref, bn1_b_ref,
                 g2_ref, w2_ref, b2_ref, bn2_wd_ref, bn2_wo_ref, bn2_b_ref,
                 g3_ref, w3_ref, b3_ref,
                 g4_ref, w4_ref, b4_ref,
                 w5_ref, b5_ref,
                 out_ref):

    def complex_layer(x_bf16, g_ref, w_ref, b_ref):
        # y = sum_taps (G_tap @ x) @ W_tap + packed_bias
        #   x     : (M_in, 2*Cin)   packed [real | imag], bf16
        #   G_tap : (M_out, M_in)   constant 0/1 row gather (= im2col), bf16
        #   W_tap : (2*Cin, 2*Cout) packed [[Wr, Wi], [-Wi, Wr]], bf16
        y = None
        for i in range(g_ref.shape[0]):          # static unroll over k*k taps
            p = jnp.dot(g_ref[i], x_bf16, preferred_element_type=jnp.float32)
            t = jnp.dot(p.astype(jnp.bfloat16), w_ref[i],
                        preferred_element_type=jnp.float32)
            y = t if y is None else y + t
        return y + b_ref[...]

    def complex_relu(y):
        return jnp.maximum(y, 0.0)

    def complex_bn(y, wd_ref, wo_ref, bb_ref):
        # Whitening ComplexBatchNorm2d (training-mode batch stats) on the packed
        # [real | imag] layout.  Stats are exact: the whole batch x spatial extent is
        # inside this one block and rows are never padded.
        c = y - jnp.mean(y, axis=0, keepdims=True)
        c_sw = _swap_halves(c)                                     # [ci | cr]
        cdiag = jnp.mean(c * c, axis=0, keepdims=True) + _BN_EPS   # [crr | cii]
        cri = jnp.mean(c * c_sw, axis=0, keepdims=True)            # [cri | cri]
        cdiag_sw = _swap_halves(cdiag)                             # [cii | crr]
        det = cdiag * cdiag_sw - cri * cri
        s = jnp.sqrt(det)
        t = jnp.sqrt(cdiag + cdiag_sw + 2.0 * s)
        inv_st = pl.reciprocal(s * t, approx=True)
        rd = (cdiag_sw + s) * inv_st                               # [Rrr | Rii]
        ro = -cri * inv_st                                         # [Rri | Rri]
        z = rd * c + ro * c_sw
        return wd_ref[...] * z + wo_ref[...] * _swap_halves(z) + bb_ref[...]

    # conv1 -> complex_relu -> bn1
    y = complex_layer(x0_ref[...], g1_ref, w1_ref, b1_ref)
    y = complex_bn(complex_relu(y), bn1_wd_ref, bn1_wo_ref, bn1_b_ref)
    # conv2 -> complex_relu -> bn2
    y = complex_layer(y.astype(jnp.bfloat16), g2_ref, w2_ref, b2_ref)
    y = complex_bn(complex_relu(y), bn2_wd_ref, bn2_wo_ref, bn2_b_ref)
    # conv3 -> complex_relu
    y = complex_relu(complex_layer(y.astype(jnp.bfloat16), g3_ref, w3_ref, b3_ref))
    # fc1 (expressed as a 2x2 "conv" over the 2x2 feature map) -> complex_relu
    y = complex_relu(complex_layer(y.astype(jnp.bfloat16), g4_ref, w4_ref, b4_ref))
    # fc2 -> |z| = sqrt(yr^2 + yi^2)
    y = jnp.dot(y.astype(jnp.bfloat16), w5_ref[...],
                preferred_element_type=jnp.float32) + b5_ref[...]
    n = y.shape[-1] // 2
    yr, yi = y[:, :n], y[:, n:]
    mag = jnp.sqrt(yr * yr + yi * yi)
    out_ref[...] = mag[:, :out_ref.shape[-1]]     # drop lane padding (all zeros)


# ----------------------------------------------------------------------------
# Wrapper-side packing (weights -> packed, padded, bf16; biases/BN -> f32 rows)
# ----------------------------------------------------------------------------
def _pack_block(wr, wi, cin_pad, cout_pad):
    """(cin, cout) real/imag blocks -> (2*cin_pad, 2*cout_pad) [[Wr,Wi],[-Wi,Wr]]."""
    cin, cout = wr.shape
    zr = jnp.zeros((cin_pad, cout_pad), jnp.float32).at[:cin, :cout].set(wr)
    zi = jnp.zeros((cin_pad, cout_pad), jnp.float32).at[:cin, :cout].set(wi)
    return jnp.concatenate([jnp.concatenate([zr, zi], axis=1),
                            jnp.concatenate([-zi, zr], axis=1)], axis=0)


def _pad1(v, n):
    return jnp.zeros((n,), jnp.float32).at[:v.shape[0]].set(v)


def _pack_bias(br, bi, cout_pad):
    # hoisted bias combinations: [br - bi | br + bi]
    return jnp.concatenate([_pad1(br - bi, cout_pad),
                            _pad1(br + bi, cout_pad)]).reshape(1, -1)


def _pack_conv(p, k, cin_pad, cout_pad):
    taps = []
    for di in range(k):
        for dj in range(k):
            taps.append(_pack_block(p['wr'][:, :, di, dj].T,
                                    p['wi'][:, :, di, dj].T, cin_pad, cout_pad))
    return (jnp.stack(taps).astype(jnp.bfloat16),
            _pack_bias(p['br'], p['bi'], cout_pad))


def _pack_fc1(p):
    # fc1 acts on the PyTorch flatten f = c*4 + oh*2 + ow of the 2x2 conv3 map, so it is
    # exactly a 2x2 conv with taps s = oh*2 + ow using weight columns f = c*4 + s.
    taps = []
    for s in range(4):
        taps.append(_pack_block(p['wr'][:, s::4].T, p['wi'][:, s::4].T, C3, D1))
    return (jnp.stack(taps).astype(jnp.bfloat16),
            _pack_bias(p['br'], p['bi'], D1))


def _pack_fc2(p):
    w = _pack_block(p['wr'].T, p['wi'].T, D1, C_PAD).astype(jnp.bfloat16)
    return w, _pack_bias(p['br'], p['bi'], C_PAD)


def _pack_bn(w, b, c_pad):
    wd = jnp.concatenate([_pad1(w[0], c_pad), _pad1(w[1], c_pad)]).reshape(1, -1)
    wo = jnp.concatenate([_pad1(w[2], c_pad), _pad1(w[2], c_pad)]).reshape(1, -1)
    bb = jnp.concatenate([_pad1(b[0], c_pad), _pad1(b[1], c_pad)]).reshape(1, -1)
    return wd, wo, bb


def pack_params(raw):
    w1, b1 = _pack_conv(raw['conv1'], K1, 1, C_PAD)
    w2, b2 = _pack_conv(raw['conv2'], K2, C_PAD, C_PAD)
    w3, b3 = _pack_conv(raw['conv3'], K3, C_PAD, C3)
    w4, b4 = _pack_fc1(raw['fc1'])
    w5, b5 = _pack_fc2(raw['fc2'])
    bn1 = _pack_bn(raw['bn1_w'], raw['bn1_b'], C_PAD)
    bn2 = _pack_bn(raw['bn2_w'], raw['bn2_b'], C_PAD)
    return dict(w1=w1, b1=b1, bn1_wd=bn1[0], bn1_wo=bn1[1], bn1_b=bn1[2],
                w2=w2, b2=b2, bn2_wd=bn2[0], bn2_wo=bn2[1], bn2_b=bn2[2],
                w3=w3, b3=b3, w4=w4, b4=b4, w5=w5, b5=b5)


def _gather_mats(B, H, W, k):
    """Constant 0/1 row-selection matrices implementing im2col as matmuls."""
    OH, OW = H - k + 1, W - k + 1
    g = np.zeros((k * k, B * OH * OW, B * H * W), np.float32)
    t = 0
    for di in range(k):
        for dj in range(k):
            for b in range(B):
                for oh in range(OH):
                    for ow in range(OW):
                        g[t, (b * OH + oh) * OW + ow,
                          (b * H + oh + di) * W + (ow + dj)] = 1.0
            t += 1
    return jnp.asarray(g, jnp.bfloat16)


# ----------------------------------------------------------------------------
# Forward pass: one fused pallas_call
# ----------------------------------------------------------------------------
def discriminator_forward(packed, xr, xi):
    B, C, H, W = xr.shape
    assert C == 1 and H == H_IN and W == W_IN

    g1 = _gather_mats(B, 6, 6, K1)   # 6x6 -> 5x5
    g2 = _gather_mats(B, 5, 5, K2)   # 5x5 -> 4x4
    g3 = _gather_mats(B, 4, 4, K3)   # 4x4 -> 2x2
    g4 = _gather_mats(B, 2, 2, 2)    # 2x2 -> 1x1  (fc1 flatten)

    x0 = jnp.stack([xr.reshape(B * H * W), xi.reshape(B * H * W)],
                   axis=1).astype(jnp.bfloat16)          # (B*H*W, 2) = [xr | xi]

    vmem = pl.BlockSpec(memory_space=pltpu.MemorySpace.VMEM)
    args = (x0,
            g1, packed['w1'], packed['b1'],
            packed['bn1_wd'], packed['bn1_wo'], packed['bn1_b'],
            g2, packed['w2'], packed['b2'],
            packed['bn2_wd'], packed['bn2_wo'], packed['bn2_b'],
            g3, packed['w3'], packed['b3'],
            g4, packed['w4'], packed['b4'],
            packed['w5'], packed['b5'])

    return pl.pallas_call(
        _disc_kernel,
        out_shape=jax.ShapeDtypeStruct((B, D2), jnp.float32),
        in_specs=[vmem] * len(args),
        out_specs=vmem,
    )(*args)


# ----------------------------------------------------------------------------
# Deterministic parameter init (PyTorch-like uniform(-1/sqrt(fan_in), ...))
# ----------------------------------------------------------------------------
def init_params(key):
    keys = iter(jax.random.split(key, 24))

    def u(shape, fan):
        b = 1.0 / float(fan) ** 0.5
        return jax.random.uniform(next(keys), shape, jnp.float32, -b, b)

    def conv(cin, cout, k):
        fan = cin * k * k
        return dict(wr=u((cout, cin, k, k), fan), wi=u((cout, cin, k, k), fan),
                    br=u((cout,), fan), bi=u((cout,), fan))

    def lin(fin, fout):
        return dict(wr=u((fout, fin), fin), wi=u((fout, fin), fin),
                    br=u((fout,), fin), bi=u((fout,), fin))

    def bn(c):
        w = jnp.zeros((3, c), jnp.float32).at[0].set(2.0 ** 0.5).at[1].set(2.0 ** 0.5)
        return w, jnp.zeros((2, c), jnp.float32)

    bn1_w, bn1_b = bn(C1)
    bn2_w, bn2_b = bn(C2)
    return dict(conv1=conv(1, C1, K1), conv2=conv(C1, C2, K2), conv3=conv(C2, C3, K3),
                fc1=lin(2 * 2 * C3, D1), fc2=lin(D1, D2),
                bn1_w=bn1_w, bn1_b=bn1_b, bn2_w=bn2_w, bn2_b=bn2_b)


# ----------------------------------------------------------------------------
# Pure-JAX f32 reference (same semantics) used only for a sanity check in main
# ----------------------------------------------------------------------------
def _reference_forward(raw, xr, xi):
    def im2col(x, k):
        B, C, H, W = x.shape
        OH, OW = H - k + 1, W - k + 1
        cols = [x[:, :, di:di + OH, dj:dj + OW] for di in range(k) for dj in range(k)]
        p = jnp.stack(cols, axis=2).transpose(0, 3, 4, 1, 2)
        return p.reshape(B * OH * OW, C * k * k), (B, OH, OW)

    def to_nchw(y, dims):
        B, OH, OW = dims
        return y.reshape(B, OH, OW, -1).transpose(0, 3, 1, 2)

    def clinear(ar, ai, p):
        wr = p['wr'].reshape(p['wr'].shape[0], -1).T
        wi = p['wi'].reshape(p['wi'].shape[0], -1).T
        yr = ar @ wr - ai @ wi + (p['br'] - p['bi'])
        yi = ai @ wr + ar @ wi + (p['br'] + p['bi'])
        return yr, yi

    def crelu(yr, yi):
        return jnp.maximum(yr, 0.0), jnp.maximum(yi, 0.0)

    def cbn(yr, yi, w, b):
        mr = jnp.mean(yr, axis=0, keepdims=True)
        mi = jnp.mean(yi, axis=0, keepdims=True)
        cr, ci = yr - mr, yi - mi
        crr = jnp.mean(cr * cr, axis=0, keepdims=True) + _BN_EPS
        cii = jnp.mean(ci * ci, axis=0, keepdims=True) + _BN_EPS
        cri = jnp.mean(cr * ci, axis=0, keepdims=True)
        det = crr * cii - cri * cri
        s = jnp.sqrt(det)
        t = jnp.sqrt(crr + cii + 2.0 * s)
        inv_st = 1.0 / (s * t)
        rrr, rii, rri = (cii + s) * inv_st, (crr + s) * inv_st, -cri * inv_st
        zr = rrr * cr + rri * ci
        zi = rii * ci + rri * cr
        return (w[0:1] * zr + w[2:3] * zi + b[0:1],
                w[2:3] * zr + w[1:2] * zi + b[1:2])

    pr, dims = im2col(xr, K1)
    pi, _ = im2col(xi, K1)
    yr, yi = crelu(*clinear(pr, pi, raw['conv1']))
    yr, yi = cbn(yr, yi, raw['bn1_w'], raw['bn1_b'])
    xr, xi = to_nchw(yr, dims), to_nchw(yi, dims)

    pr, dims = im2col(xr, K2)
    pi, _ = im2col(xi, K2)
    yr, yi = crelu(*clinear(pr, pi, raw['conv2']))
    yr, yi = cbn(yr, yi, raw['bn2_w'], raw['bn2_b'])
    xr, xi = to_nchw(yr, dims), to_nchw(yi, dims)

    pr, dims = im2col(xr, K3)
    pi, _ = im2col(xi, K3)
    yr, yi = crelu(*clinear(pr, pi, raw['conv3']))
    xr, xi = to_nchw(yr, dims), to_nchw(yi, dims)

    B = xr.shape[0]
    fr, fi = xr.reshape(B, -1), xi.reshape(B, -1)
    fr, fi = crelu(*clinear(fr, fi, raw['fc1']))
    fr, fi = clinear(fr, fi, raw['fc2'])
    return jnp.sqrt(fr * fr + fi * fi)


if __name__ == "__main__":
    key = jax.random.PRNGKey(0)
    kp, kr, ki = jax.random.split(key, 3)

    raw = init_params(kp)
    packed = pack_params(raw)

    # Input spatial size 6x6 so the conv chain (k=2,2,3; stride 1, no pad) ends at 2x2,
    # matching the hard-coded 2*2*c3 flatten of the module.
    B = 2
    xr = jax.random.normal(kr, (B, 1, 6, 6), jnp.float32)
    xi = jax.random.normal(ki, (B, 1, 6, 6), jnp.float32)

    fwd = jax.jit(discriminator_forward)
    out = jax.block_until_ready(fwd(packed, xr, xi))

    assert out.shape == (B, D2)
    assert bool(jnp.all(jnp.isfinite(out)))
    assert bool(jnp.all(out >= 0.0))   # magnitude output is non-negative

    # Cross-check against a pure-JAX f32 reference (bf16 MXU + approx reciprocal in the
    # kernel => loose tolerance).
    ref = np.asarray(_reference_forward(raw, xr, xi))
    np.testing.assert_allclose(np.asarray(out), ref, rtol=0.15, atol=0.04)

    print("KERNEL_OK")
</pallas_src>

<mosaic_0001>
module attributes {stable_mosaic.version = 11 : i64} {
  func.func @_disc_kernel(%arg0: memref<72x2xbf16, #tpu.memory_space<vmem>>, %arg1: memref<4x50x72xbf16, #tpu.memory_space<vmem>>, %arg2: memref<4x2x256xbf16, #tpu.memory_space<vmem>>, %arg3: memref<1x256xf32, #tpu.memory_space<vmem>>, %arg4: memref<1x256xf32, #tpu.memory_space<vmem>>, %arg5: memref<1x256xf32, #tpu.memory_space<vmem>>, %arg6: memref<1x256xf32, #tpu.memory_space<vmem>>, %arg7: memref<4x32x50xbf16, #tpu.memory_space<vmem>>, %arg8: memref<4x256x256xbf16, #tpu.memory_space<vmem>>, %arg9: memref<1x256xf32, #tpu.memory_space<vmem>>, %arg10: memref<1x256xf32, #tpu.memory_space<vmem>>, %arg11: memref<1x256xf32, #tpu.memory_space<vmem>>, %arg12: memref<1x256xf32, #tpu.memory_space<vmem>>, %arg13: memref<9x8x32xbf16, #tpu.memory_space<vmem>>, %arg14: memref<9x256x6xbf16, #tpu.memory_space<vmem>>, %arg15: memref<1x6xf32, #tpu.memory_space<vmem>>, %arg16: memref<4x2x8xbf16, #tpu.memory_space<vmem>>, %arg17: memref<4x6x192xbf16, #tpu.memory_space<vmem>>, %arg18: memref<1x192xf32, #tpu.memory_space<vmem>>, %arg19: memref<192x256xbf16, #tpu.memory_space<vmem>>, %arg20: memref<1x256xf32, #tpu.memory_space<vmem>>, %arg21: memref<2x10xf32, #tpu.memory_space<vmem>>) attributes {dimension_semantics = [], scalar_prefetch = 0 : i64, scratch_operands = 0 : i64, tpu.core_type = #tpu.core_type<tc>} {
    %c0 = arith.constant 0 : index
    %c0_0 = arith.constant 0 : index
    %0 = vector.load %arg0[%c0, %c0_0] : memref<72x2xbf16, #tpu.memory_space<vmem>>, vector<72x2xbf16>
    %c0_1 = arith.constant 0 : index
    %c0_2 = arith.constant 0 : index
    %c0_3 = arith.constant 0 : index
    %1 = vector.load %arg1[%c0_1, %c0_2, %c0_3] : memref<4x50x72xbf16, #tpu.memory_space<vmem>>, vector<1x50x72xbf16>
    %2 = vector.shape_cast %1 : vector<1x50x72xbf16> to vector<50x72xbf16>
    %cst = arith.constant dense<0.000000e+00> : vector<50x2xf32>
    %3 = tpu.matmul %2, %0, %cst {dimension_numbers = #tpu.dot_dimension_numbers<[1], [0], [0], [1], [0, 0, 1, 1], [], []>} : vector<50x72xbf16>, vector<72x2xbf16>, vector<50x2xf32> -> vector<50x2xf32>
    %4 = arith.truncf %3 : vector<50x2xf32> to vector<50x2xbf16>
    %c0_4 = arith.constant 0 : index
    %c0_5 = arith.constant 0 : index
    %c0_6 = arith.constant 0 : index
    %5 = vector.load %arg2[%c0_4, %c0_5, %c0_6] : memref<4x2x256xbf16, #tpu.memory_space<vmem>>, vector<1x2x256xbf16>
    %6 = vector.shape_cast %5 : vector<1x2x256xbf16> to vector<2x256xbf16>
    %cst_7 = arith.constant dense<0.000000e+00> : vector<50x256xf32>
    %7 = tpu.matmul %4, %6, %cst_7 {dimension_numbers = #tpu.dot_dimension_numbers<[1], [0], [0], [1], [0, 0, 1, 1], [], []>} : vector<50x2xbf16>, vector<2x256xbf16>, vector<50x256xf32> -> vector<50x256xf32>
    %c1 = arith.constant 1 : index
    %c0_8 = arith.constant 0 : index
    %c0_9 = arith.constant 0 : index
    %8 = vector.load %arg1[%c1, %c0_8, %c0_9] : memref<4x50x72xbf16, #tpu.memory_space<vmem>>, vector<1x50x72xbf16>
    %9 = vector.shape_cast %8 : vector<1x50x72xbf16> to vector<50x72xbf16>
    %cst_10 = arith.constant dense<0.000000e+00> : vector<50x2xf32>
    %10 = tpu.matmul %9, %0, %cst_10 {dimension_numbers = #tpu.dot_dimension_numbers<[1], [0], [0], [1], [0, 0, 1, 1], [], []>} : vector<50x72xbf16>, vector<72x2xbf16>, vector<50x2xf32> -> vector<50x2xf32>
    %11 = arith.truncf %10 : vector<50x2xf32> to vector<50x2xbf16>
    %c1_11 = arith.constant 1 : index
    %c0_12 = arith.constant 0 : index
    %c0_13 = arith.constant 0 : index
    %12 = vector.load %arg2[%c1_11, %c0_12, %c0_13] : memref<4x2x256xbf16, #tpu.memory_space<vmem>>, vector<1x2x256xbf16>
    %13 = vector.shape_cast %12 : vector<1x2x256xbf16> to vector<2x256xbf16>
    %cst_14 = arith.constant dense<0.000000e+00> : vector<50x256xf32>
    %14 = tpu.matmul %11, %13, %cst_14 {dimension_numbers = #tpu.dot_dimension_numbers<[1], [0], [0], [1], [0, 0, 1, 1], [], []>} : vector<50x2xbf16>, vector<2x256xbf16>, vector<50x256xf32> -> vector<50x256xf32>
    %15 = arith.addf %7, %14 : vector<50x256xf32>
    %c2 = arith.constant 2 : index
    %c0_15 = arith.constant 0 : index
    %c0_16 = arith.constant 0 : index
    %16 = vector.load %arg1[%c2, %c0_15, %c0_16] : memref<4x50x72xbf16, #tpu.memory_space<vmem>>, vector<1x50x72xbf16>
    %17 = vector.shape_cast %16 : vector<1x50x72xbf16> to vector<50x72xbf16>
    %cst_17 = arith.constant dense<0.000000e+00> : vector<50x2xf32>
    %18 = tpu.matmul %17, %0, %cst_17 {dimension_numbers = #tpu.dot_dimension_numbers<[1], [0], [0], [1], [0, 0, 1, 1], [], []>} : vector<50x72xbf16>, vector<72x2xbf16>, vector<50x2xf32> -> vector<50x2xf32>
    %19 = arith.truncf %18 : vector<50x2xf32> to vector<50x2xbf16>
    %c2_18 = arith.constant 2 : index
    %c0_19 = arith.constant 0 : index
    %c0_20 = arith.constant 0 : index
    %20 = vector.load %arg2[%c2_18, %c0_19, %c0_20] : memref<4x2x256xbf16, #tpu.memory_space<vmem>>, vector<1x2x256xbf16>
    %21 = vector.shape_cast %20 : vector<1x2x256xbf16> to vector<2x256xbf16>
    %cst_21 = arith.constant dense<0.000000e+00> : vector<50x256xf32>
    %22 = tpu.matmul %19, %21, %cst_21 {dimension_numbers = #tpu.dot_dimension_numbers<[1], [0], [0], [1], [0, 0, 1, 1], [], []>} : vector<50x2xbf16>, vector<2x256xbf16>, vector<50x256xf32> -> vector<50x256xf32>
    %23 = arith.addf %15, %22 : vector<50x256xf32>
    %c3 = arith.constant 3 : index
    %c0_22 = arith.constant 0 : index
    %c0_23 = arith.constant 0 : index
    %24 = vector.load %arg1[%c3, %c0_22, %c0_23] : memref<4x50x72xbf16, #tpu.memory_space<vmem>>, vector<1x50x72xbf16>
    %25 = vector.shape_cast %24 : vector<1x50x72xbf16> to vector<50x72xbf16>
    %cst_24 = arith.constant dense<0.000000e+00> : vector<50x2xf32>
    %26 = tpu.matmul %25, %0, %cst_24 {dimension_numbers = #tpu.dot_dimension_numbers<[1], [0], [0], [1], [0, 0, 1, 1], [], []>} : vector<50x72xbf16>, vector<72x2xbf16>, vector<50x2xf32> -> vector<50x2xf32>
    %27 = arith.truncf %26 : vector<50x2xf32> to vector<50x2xbf16>
    %c3_25 = arith.constant 3 : index
    %c0_26 = arith.constant 0 : index
    %c0_27 = arith.constant 0 : index
    %28 = vector.load %arg2[%c3_25, %c0_26, %c0_27] : memref<4x2x256xbf16, #tpu.memory_space<vmem>>, vector<1x2x256xbf16>
    %29 = vector.shape_cast %28 : vector<1x2x256xbf16> to vector<2x256xbf16>
    %cst_28 = arith.constant dense<0.000000e+00> : vector<50x256xf32>
    %30 = tpu.matmul %27, %29, %cst_28 {dimension_numbers = #tpu.dot_dimension_numbers<[1], [0], [0], [1], [0, 0, 1, 1], [], []>} : vector<50x2xbf16>, vector<2x256xbf16>, vector<50x256xf32> -> vector<50x256xf32>
    %31 = arith.addf %23, %30 : vector<50x256xf32>
    %c0_29 = arith.constant 0 : index
    %c0_30 = arith.constant 0 : index
    %32 = vector.load %arg3[%c0_29, %c0_30] : memref<1x256xf32, #tpu.memory_space<vmem>>, vector<1x256xf32>
    %33 = vector.broadcast %32 : vector<1x256xf32> to vector<50x256xf32>
    %34 = arith.addf %31, %33 : vector<50x256xf32>
    %cst_31 = arith.constant 0.000000e+00 : f32
    %35 = vector.broadcast %cst_31 : f32 to vector<50x256xf32>
    %36 = arith.maximumf %34, %35 : vector<50x256xf32>
    %cst_32 = arith.constant dense<0.000000e+00> : vector<256xf32>
    %37 = vector.multi_reduction <add>, %36, %cst_32 [0] : vector<50x256xf32> to vector<256xf32>
    %38 = vector.shape_cast %37 : vector<256xf32> to vector<1x256xf32>
    %cst_33 = arith.constant 5.000000e+01 : f32
    %39 = vector.broadcast %cst_33 : f32 to vector<1x256xf32>
    %40 = arith.divf %38, %39 : vector<1x256xf32>
    %41 = vector.broadcast %40 : vector<1x256xf32> to vector<50x256xf32>
    %42 = arith.subf %36, %41 : vector<50x256xf32>
    %43 = vector.extract_strided_slice %42 {offsets = [0, 128], sizes = [50, 128], strides = [1, 1]} : vector<50x256xf32> to vector<50x128xf32>
    %44 = vector.extract_strided_slice %42 {offsets = [0, 0], sizes = [50, 128], strides = [1, 1]} : vector<50x256xf32> to vector<50x128xf32>
    %45 = tpu.concatenate %43, %44 in 1 : vector<50x128xf32>, vector<50x128xf32> -> vector<50x256xf32>
    %46 = arith.mulf %42, %42 : vector<50x256xf32>
    %cst_34 = arith.constant dense<0.000000e+00> : vector<256xf32>
    %47 = vector.multi_reduction <add>, %46, %cst_34 [0] : vector<50x256xf32> to vector<256xf32>
    %48 = vector.shape_cast %47 : vector<256xf32> to vector<1x256xf32>
    %cst_35 = arith.constant 5.000000e+01 : f32
    %49 = vector.broadcast %cst_35 : f32 to vector<1x256xf32>
    %50 = arith.divf %48, %49 : vector<1x256xf32>
    %cst_36 = arith.constant 9.99999974E-6 : f32
    %51 = vector.broadcast %cst_36 : f32 to vector<1x256xf32>
    %52 = arith.addf %50, %51 : vector<1x256xf32>
    %53 = arith.mulf %42, %45 : vector<50x256xf32>
    %cst_37 = arith.constant dense<0.000000e+00> : vector<256xf32>
    %54 = vector.multi_reduction <add>, %53, %cst_37 [0] : vector<50x256xf32> to vector<256xf32>
    %55 = vector.shape_cast %54 : vector<256xf32> to vector<1x256xf32>
    %cst_38 = arith.constant 5.000000e+01 : f32
    %56 = vector.broadcast %cst_38 : f32 to vector<1x256xf32>
    %57 = arith.divf %55, %56 : vector<1x256xf32>
    %58 = vector.extract_strided_slice %52 {offsets = [0, 128], sizes = [1, 128], strides = [1, 1]} : vector<1x256xf32> to vector<1x128xf32>
    %59 = vector.extract_strided_slice %52 {offsets = [0, 0], sizes = [1, 128], strides = [1, 1]} : vector<1x256xf32> to vector<1x128xf32>
    %60 = tpu.concatenate %58, %59 in 1 : vector<1x128xf32>, vector<1x128xf32> -> vector<1x256xf32>
    %61 = arith.mulf %52, %60 : vector<1x256xf32>
    %62 = arith.mulf %57, %57 : vector<1x256xf32>
    %63 = arith.subf %61, %62 : vector<1x256xf32>
    %64 = math.sqrt %63 : vector<1x256xf32>
    %65 = arith.addf %52, %60 : vector<1x256xf32>
    %cst_39 = arith.constant 2.000000e+00 : f32
    %66 = vector.broadcast %cst_39 : f32 to vector<1x256xf32>
    %67 = arith.mulf %66, %64 : vector<1x256xf32>
    %68 = arith.addf %65, %67 : vector<1x256xf32>
    %69 = math.sqrt %68 : vector<1x256xf32>
    %70 = arith.mulf %64, %69 : vector<1x256xf32>
    %71 = tpu.reciprocal %70 {approx = true} : vector<1x256xf32> -> vector<1x256xf32>
    %72 = arith.addf %60, %64 : vector<1x256xf32>
    %73 = arith.mulf %72, %71 : vector<1x256xf32>
    %cst_40 = arith.constant 0.000000e+00 : f32
    %74 = vector.broadcast %cst_40 : f32 to vector<1x256xf32>
    %75 = arith.subf %74, %57 : vector<1x256xf32>
    %76 = arith.mulf %75, %71 : vector<1x256xf32>
    %77 = vector.broadcast %73 : vector<1x256xf32> to vector<50x256xf32>
    %78 = arith.mulf %77, %42 : vector<50x256xf32>
    %79 = vector.broadcast %76 : vector<1x256xf32> to vector<50x256xf32>
    %80 = arith.mulf %79, %45 : vector<50x256xf32>
    %81 = arith.addf %78, %80 : vector<50x256xf32>
    %c0_41 = arith.constant 0 : index
    %c0_42 = arith.constant 0 : index
    %82 = vector.load %arg4[%c0_41, %c0_42] : memref<1x256xf32, #tpu.memory_space<vmem>>, vector<1x256xf32>
    %83 = vector.broadcast %82 : vector<1x256xf32> to vector<50x256xf32>
    %84 = arith.mulf %83, %81 : vector<50x256xf32>
    %c0_43 = arith.constant 0 : index
    %c0_44 = arith.constant 0 : index
    %85 = vector.load %arg5[%c0_43, %c0_44] : memref<1x256xf32, #tpu.memory_space<vmem>>, vector<1x256xf32>
    %86 = vector.extract_strided_slice %81 {offsets = [0, 128], sizes = [50, 128], strides = [1, 1]} : vector<50x256xf32> to vector<50x128xf32>
    %87 = vector.extract_strided_slice %81 {offsets = [0, 0], sizes = [50, 128], strides = [1, 1]} : vector<50x256xf32> to vector<50x128xf32>
    %88 = tpu.concatenate %86, %87 in 1 : vector<50x128xf32>, vector<50x128xf32> -> vector<50x256xf32>
    %89 = vector.broadcast %85 : vector<1x256xf32> to vector<50x256xf32>
    %90 = arith.mulf %89, %88 : vector<50x256xf32>
    %91 = arith.addf %84, %90 : vector<50x256xf32>
    %c0_45 = arith.constant 0 : index
    %c0_46 = arith.constant 0 : index
    %92 = vector.load %arg6[%c0_45, %c0_46] : memref<1x256xf32, #tpu.memory_space<vmem>>, vector<1x256xf32>
    %93 = vector.broadcast %92 : vector<1x256xf32> to vector<50x256xf32>
    %94 = arith.addf %91, %93 : vector<50x256xf32>
    %95 = arith.truncf %94 : vector<50x256xf32> to vector<50x256xbf16>
    %c0_47 = arith.constant 0 : index
    %c0_48 = arith.constant 0 : index
    %c0_49 = arith.constant 0 : index
    %96 = vector.load %arg7[%c0_47, %c0_48, %c0_49] : memref<4x32x50xbf16, #tpu.memory_space<vmem>>, vector<1x32x50xbf16>
    %97 = vector.shape_cast %96 : vector<1x32x50xbf16> to vector<32x50xbf16>
    %cst_50 = arith.constant dense<0.000000e+00> : vector<32x256xf32>
    %98 = tpu.matmul %97, %95, %cst_50 {dimension_numbers = #tpu.dot_dimension_numbers<[1], [0], [0], [1], [0, 0, 1, 1], [], []>} : vector<32x50xbf16>, vector<50x256xbf16>, vector<32x256xf32> -> vector<32x256xf32>
    %99 = arith.truncf %98 : vector<32x256xf32> to vector<32x256xbf16>
    %c0_51 = arith.constant 0 : index
    %c0_52 = arith.constant 0 : index
    %c0_53 = arith.constant 0 : index
    %100 = vector.load %arg8[%c0_51, %c0_52, %c0_53] : memref<4x256x256xbf16, #tpu.memory_space<vmem>>, vector<1x256x256xbf16>
    %101 = vector.shape_cast %100 : vector<1x256x256xbf16> to vector<256x256xbf16>
    %cst_54 = arith.constant dense<0.000000e+00> : vector<32x256xf32>
    %102 = tpu.matmul %99, %101, %cst_54 {dimension_numbers = #tpu.dot_dimension_numbers<[1], [0], [0], [1], [0, 0, 1, 1], [], []>} : vector<32x256xbf16>, vector<256x256xbf16>, vector<32x256xf32> -> vector<32x256xf32>
    %c1_55 = arith.constant 1 : index
    %c0_56 = arith.constant 0 : index
    %c0_57 = arith.constant 0 : index
    %103 = vector.load %arg7[%c1_55, %c0_56, %c0_57] : memref<4x32x50xbf16, #tpu.memory_space<vmem>>, vector<1x32x50xbf16>
    %104 = vector.shape_cast %103 : vector<1x32x50xbf16> to vector<32x50xbf16>
    %cst_58 = arith.constant dense<0.000000e+00> : vector<32x256xf32>
    %105 = tpu.matmul %104, %95, %cst_58 {dimension_numbers = #tpu.dot_dimension_numbers<[1], [0], [0], [1], [0, 0, 1, 1], [], []>} : vector<32x50xbf16>, vector<50x256xbf16>, vector<32x256xf32> -> vector<32x256xf32>
    %106 = arith.truncf %105 : vector<32x256xf32> to vector<32x256xbf16>
    %c1_59 = arith.constant 1 : index
    %c0_60 = arith.constant 0 : index
    %c0_61 = arith.constant 0 : index
    %107 = vector.load %arg8[%c1_59, %c0_60, %c0_61] : memref<4x256x256xbf16, #tpu.memory_space<vmem>>, vector<1x256x256xbf16>
    %108 = vector.shape_cast %107 : vector<1x256x256xbf16> to vector<256x256xbf16>
    %cst_62 = arith.constant dense<0.000000e+00> : vector<32x256xf32>
    %109 = tpu.matmul %106, %108, %cst_62 {dimension_numbers = #tpu.dot_dimension_numbers<[1], [0], [0], [1], [0, 0, 1, 1], [], []>} : vector<32x256xbf16>, vector<256x256xbf16>, vector<32x256xf32> -> vector<32x256xf32>
    %110 = arith.addf %102, %109 : vector<32x256xf32>
    %c2_63 = arith.constant 2 : index
    %c0_64 = arith.constant 0 : index
    %c0_65 = arith.constant 0 : index
    %111 = vector.load %arg7[%c2_63, %c0_64, %c0_65] : memref<4x32x50xbf16, #tpu.memory_space<vmem>>, vector<1x32x50xbf16>
    %112 = vector.shape_cast %111 : vector<1x32x50xbf16> to vector<32x50xbf16>
    %cst_66 = arith.constant dense<0.000000e+00> : vector<32x256xf32>
    %113 = tpu.matmul %112, %95, %cst_66 {dimension_numbers = #tpu.dot_dimension_numbers<[1], [0], [0], [1], [0, 0, 1, 1], [], []>} : vector<32x50xbf16>, vector<50x256xbf16>, vector<32x256xf32> -> vector<32x256xf32>
    %114 = arith.truncf %113 : vector<32x256xf32> to vector<32x256xbf16>
    %c2_67 = arith.constant 2 : index
    %c0_68 = arith.constant 0 : index
    %c0_69 = arith.constant 0 : index
    %115 = vector.load %arg8[%c2_67, %c0_68, %c0_69] : memref<4x256x256xbf16, #tpu.memory_space<vmem>>, vector<1x256x256xbf16>
    %116 = vector.shape_cast %115 : vector<1x256x256xbf16> to vector<256x256xbf16>
    %cst_70 = arith.constant dense<0.000000e+00> : vector<32x256xf32>
    %117 = tpu.matmul %114, %116, %cst_70 {dimension_numbers = #tpu.dot_dimension_numbers<[1], [0], [0], [1], [0, 0, 1, 1], [], []>} : vector<32x256xbf16>, vector<256x256xbf16>, vector<32x256xf32> -> vector<32x256xf32>
    %118 = arith.addf %110, %117 : vector<32x256xf32>
    %c3_71 = arith.constant 3 : index
    %c0_72 = arith.constant 0 : index
    %c0_73 = arith.constant 0 : index
    %119 = vector.load %arg7[%c3_71, %c0_72, %c0_73] : memref<4x32x50xbf16, #tpu.memory_space<vmem>>, vector<1x32x50xbf16>
    %120 = vector.shape_cast %119 : vector<1x32x50xbf16> to vector<32x50xbf16>
    %cst_74 = arith.constant dense<0.000000e+00> : vector<32x256xf32>
    %121 = tpu.matmul %120, %95, %cst_74 {dimension_numbers = #tpu.dot_dimension_numbers<[1], [0], [0], [1], [0, 0, 1, 1], [], []>} : vector<32x50xbf16>, vector<50x256xbf16>, vector<32x256xf32> -> vector<32x256xf32>
    %122 = arith.truncf %121 : vector<32x256xf32> to vector<32x256xbf16>
    %c3_75 = arith.constant 3 : index
    %c0_76 = arith.constant 0 : index
    %c0_77 = arith.constant 0 : index
    %123 = vector.load %arg8[%c3_75, %c0_76, %c0_77] : memref<4x256x256xbf16, #tpu.memory_space<vmem>>, vector<1x256x256xbf16>
    %124 = vector.shape_cast %123 : vector<1x256x256xbf16> to vector<256x256xbf16>
    %cst_78 = arith.constant dense<0.000000e+00> : vector<32x256xf32>
    %125 = tpu.matmul %122, %124, %cst_78 {dimension_numbers = #tpu.dot_dimension_numbers<[1], [0], [0], [1], [0, 0, 1, 1], [], []>} : vector<32x256xbf16>, vector<256x256xbf16>, vector<32x256xf32> -> vector<32x256xf32>
    %126 = arith.addf %118, %125 : vector<32x256xf32>
    %c0_79 = arith.constant 0 : index
    %c0_80 = arith.constant 0 : index
    %127 = vector.load %arg9[%c0_79, %c0_80] : memref<1x256xf32, #tpu.memory_space<vmem>>, vector<1x256xf32>
    %128 = vector.broadcast %127 : vector<1x256xf32> to vector<32x256xf32>
    %129 = arith.addf %126, %128 : vector<32x256xf32>
    %cst_81 = arith.constant 0.000000e+00 : f32
    %130 = vector.broadcast %cst_81 : f32 to vector<32x256xf32>
    %131 = arith.maximumf %129, %130 : vector<32x256xf32>
    %cst_82 = arith.constant dense<0.000000e+00> : vector<256xf32>
    %132 = vector.multi_reduction <add>, %131, %cst_82 [0] : vector<32x256xf32> to vector<256xf32>
    %133 = vector.shape_cast %132 : vector<256xf32> to vector<1x256xf32>
    %cst_83 = arith.constant 3.200000e+01 : f32
    %134 = vector.broadcast %cst_83 : f32 to vector<1x256xf32>
    %135 = arith.divf %133, %134 : vector<1x256xf32>
    %136 = vector.broadcast %135 : vector<1x256xf32> to vector<32x256xf32>
    %137 = arith.subf %131, %136 : vector<32x256xf32>
    %138 = vector.extract_strided_slice %137 {offsets = [0, 128], sizes = [32, 128], strides = [1, 1]} : vector<32x256xf32> to vector<32x128xf32>
    %139 = vector.extract_strided_slice %137 {offsets = [0, 0], sizes = [32, 128], strides = [1, 1]} : vector<32x256xf32> to vector<32x128xf32>
    %140 = tpu.concatenate %138, %139 in 1 : vector<32x128xf32>, vector<32x128xf32> -> vector<32x256xf32>
    %141 = arith.mulf %137, %137 : vector<32x256xf32>
    %cst_84 = arith.constant dense<0.000000e+00> : vector<256xf32>
    %142 = vector.multi_reduction <add>, %141, %cst_84 [0] : vector<32x256xf32> to vector<256xf32>
    %143 = vector.shape_cast %142 : vector<256xf32> to vector<1x256xf32>
    %cst_85 = arith.constant 3.200000e+01 : f32
    %144 = vector.broadcast %cst_85 : f32 to vector<1x256xf32>
    %145 = arith.divf %143, %144 : vector<1x256xf32>
    %cst_86 = arith.constant 9.99999974E-6 : f32
    %146 = vector.broadcast %cst_86 : f32 to vector<1x256xf32>
    %147 = arith.addf %145, %146 : vector<1x256xf32>
    %148 = arith.mulf %137, %140 : vector<32x256xf32>
    %cst_87 = arith.constant dense<0.000000e+00> : vector<256xf32>
    %149 = vector.multi_reduction <add>, %148, %cst_87 [0] : vector<32x256xf32> to vector<256xf32>
    %150 = vector.shape_cast %149 : vector<256xf32> to vector<1x256xf32>
    %cst_88 = arith.constant 3.200000e+01 : f32
    %151 = vector.broadcast %cst_88 : f32 to vector<1x256xf32>
    %152 = arith.divf %150, %151 : vector<1x256xf32>
    %153 = vector.extract_strided_slice %147 {offsets = [0, 128], sizes = [1, 128], strides = [1, 1]} : vector<1x256xf32> to vector<1x128xf32>
    %154 = vector.extract_strided_slice %147 {offsets = [0, 0], sizes = [1, 128], strides = [1, 1]} : vector<1x256xf32> to vector<1x128xf32>
    %155 = tpu.concatenate %153, %154 in 1 : vector<1x128xf32>, vector<1x128xf32> -> vector<1x256xf32>
    %156 = arith.mulf %147, %155 : vector<1x256xf32>
    %157 = arith.mulf %152, %152 : vector<1x256xf32>
    %158 = arith.subf %156, %157 : vector<1x256xf32>
    %159 = math.sqrt %158 : vector<1x256xf32>
    %160 = arith.addf %147, %155 : vector<1x256xf32>
    %cst_89 = arith.constant 2.000000e+00 : f32
    %161 = vector.broadcast %cst_89 : f32 to vector<1x256xf32>
    %162 = arith.mulf %161, %159 : vector<1x256xf32>
    %163 = arith.addf %160, %162 : vector<1x256xf32>
    %164 = math.sqrt %163 : vector<1x256xf32>
    %165 = arith.mulf %159, %164 : vector<1x256xf32>
    %166 = tpu.reciprocal %165 {approx = true} : vector<1x256xf32> -> vector<1x256xf32>
    %167 = arith.addf %155, %159 : vector<1x256xf32>
    %168 = arith.mulf %167, %166 : vector<1x256xf32>
    %cst_90 = arith.constant 0.000000e+00 : f32
    %169 = vector.broadcast %cst_90 : f32 to vector<1x256xf32>
    %170 = arith.subf %169, %152 : vector<1x256xf32>
    %171 = arith.mulf %170, %166 : vector<1x256xf32>
    %172 = vector.broadcast %168 : vector<1x256xf32> to vector<32x256xf32>
    %173 = arith.mulf %172, %137 : vector<32x256xf32>
    %174 = vector.broadcast %171 : vector<1x256xf32> to vector<32x256xf32>
    %175 = arith.mulf %174, %140 : vector<32x256xf32>
    %176 = arith.addf %173, %175 : vector<32x256xf32>
    %c0_91 = arith.constant 0 : index
    %c0_92 = arith.constant 0 : index
    %177 = vector.load %arg10[%c0_91, %c0_92] : memref<1x256xf32, #tpu.memory_space<vmem>>, vector<1x256xf32>
    %178 = vector.broadcast %177 : vector<1x256xf32> to vector<32x256xf32>
    %179 = arith.mulf %178, %176 : vector<32x256xf32>
    %c0_93 = arith.constant 0 : index
    %c0_94 = arith.constant 0 : index
    %180 = vector.load %arg11[%c0_93, %c0_94] : memref<1x256xf32, #tpu.memory_space<vmem>>, vector<1x256xf32>
    %181 = vector.extract_strided_slice %176 {offsets = [0, 128], sizes = [32, 128], strides = [1, 1]} : vector<32x256xf32> to vector<32x128xf32>
    %182 = vector.extract_strided_slice %176 {offsets = [0, 0], sizes = [32, 128], strides = [1, 1]} : vector<32x256xf32> to vector<32x128xf32>
    %183 = tpu.concatenate %181, %182 in 1 : vector<32x128xf32>, vector<32x128xf32> -> vector<32x256xf32>
    %184 = vector.broadcast %180 : vector<1x256xf32> to vector<32x256xf32>
    %185 = arith.mulf %184, %183 : vector<32x256xf32>
    %186 = arith.addf %179, %185 : vector<32x256xf32>
    %c0_95 = arith.constant 0 : index
    %c0_96 = arith.constant 0 : index
    %187 = vector.load %arg12[%c0_95, %c0_96] : memref<1x256xf32, #tpu.memory_space<vmem>>, vector<1x256xf32>
    %188 = vector.broadcast %187 : vector<1x256xf32> to vector<32x256xf32>
    %189 = arith.addf %186, %188 : vector<32x256xf32>
    %190 = arith.truncf %189 : vector<32x256xf32> to vector<32x256xbf16>
    %c0_97 = arith.constant 0 : index
    %c0_98 = arith.constant 0 : index
    %c0_99 = arith.constant 0 : index
    %191 = vector.load %arg13[%c0_97, %c0_98, %c0_99] : memref<9x8x32xbf16, #tpu.memory_space<vmem>>, vector<1x8x32xbf16>
    %192 = vector.shape_cast %191 : vector<1x8x32xbf16> to vector<8x32xbf16>
    %cst_100 = arith.constant dense<0.000000e+00> : vector<8x256xf32>
    %193 = tpu.matmul %192, %190, %cst_100 {dimension_numbers = #tpu.dot_dimension_numbers<[1], [0], [0], [1], [0, 0, 1, 1], [], []>} : vector<8x32xbf16>, vector<32x256xbf16>, vector<8x256xf32> -> vector<8x256xf32>
    %194 = arith.truncf %193 : vector<8x256xf32> to vector<8x256xbf16>
    %c0_101 = arith.constant 0 : index
    %c0_102 = arith.constant 0 : index
    %c0_103 = arith.constant 0 : index
    %195 = vector.load %arg14[%c0_101, %c0_102, %c0_103] : memref<9x256x6xbf16, #tpu.memory_space<vmem>>, vector<1x256x6xbf16>
    %196 = vector.shape_cast %195 : vector<1x256x6xbf16> to vector<256x6xbf16>
    %cst_104 = arith.constant dense<0.000000e+00> : vector<8x6xf32>
    %197 = tpu.matmul %194, %196, %cst_104 {dimension_numbers = #tpu.dot_dimension_numbers<[1], [0], [0], [1], [0, 0, 1, 1], [], []>} : vector<8x256xbf16>, vector<256x6xbf16>, vector<8x6xf32> -> vector<8x6xf32>
    %c1_105 = arith.constant 1 : index
    %c0_106 = arith.constant 0 : index
    %c0_107 = arith.constant 0 : index
    %198 = vector.load %arg13[%c1_105, %c0_106, %c0_107] : memref<9x8x32xbf16, #tpu.memory_space<vmem>>, vector<1x8x32xbf16>
    %199 = vector.shape_cast %198 : vector<1x8x32xbf16> to vector<8x32xbf16>
    %cst_108 = arith.constant dense<0.000000e+00> : vector<8x256xf32>
    %200 = tpu.matmul %199, %190, %cst_108 {dimension_numbers = #tpu.dot_dimension_numbers<[1], [0], [0], [1], [0, 0, 1, 1], [], []>} : vector<8x32xbf16>, vector<32x256xbf16>, vector<8x256xf32> -> vector<8x256xf32>
    %201 = arith.truncf %200 : vector<8x256xf32> to vector<8x256xbf16>
    %c1_109 = arith.constant 1 : index
    %c0_110 = arith.constant 0 : index
    %c0_111 = arith.constant 0 : index
    %202 = vector.load %arg14[%c1_109, %c0_110, %c0_111] : memref<9x256x6xbf16, #tpu.memory_space<vmem>>, vector<1x256x6xbf16>
    %203 = vector.shape_cast %202 : vector<1x256x6xbf16> to vector<256x6xbf16>
    %cst_112 = arith.constant dense<0.000000e+00> : vector<8x6xf32>
    %204 = tpu.matmul %201, %203, %cst_112 {dimension_numbers = #tpu.dot_dimension_numbers<[1], [0], [0], [1], [0, 0, 1, 1], [], []>} : vector<8x256xbf16>, vector<256x6xbf16>, vector<8x6xf32> -> vector<8x6xf32>
    %205 = arith.addf %197, %204 : vector<8x6xf32>
    %c2_113 = arith.constant 2 : index
    %c0_114 = arith.constant 0 : index
    %c0_115 = arith.constant 0 : index
    %206 = vector.load %arg13[%c2_113, %c0_114, %c0_115] : memref<9x8x32xbf16, #tpu.memory_space<vmem>>, vector<1x8x32xbf16>
    %207 = vector.shape_cast %206 : vector<1x8x32xbf16> to vector<8x32xbf16>
    %cst_116 = arith.constant dense<0.000000e+00> : vector<8x256xf32>
    %208 = tpu.matmul %207, %190, %cst_116 {dimension_numbers = #tpu.dot_dimension_numbers<[1], [0], [0], [1], [0, 0, 1, 1], [], []>} : vector<8x32xbf16>, vector<32x256xbf16>, vector<8x256xf32> -> vector<8x256xf32>
    %209 = arith.truncf %208 : vector<8x256xf32> to vector<8x256xbf16>
    %c2_117 = arith.constant 2 : index
    %c0_118 = arith.constant 0 : index
    %c0_119 = arith.constant 0 : index
    %210 = vector.load %arg14[%c2_117, %c0_118, %c0_119] : memref<9x256x6xbf16, #tpu.memory_space<vmem>>, vector<1x256x6xbf16>
    %211 = vector.shape_cast %210 : vector<1x256x6xbf16> to vector<256x6xbf16>
    %cst_120 = arith.constant dense<0.000000e+00> : vector<8x6xf32>
    %212 = tpu.matmul %209, %211, %cst_120 {dimension_numbers = #tpu.dot_dimension_numbers<[1], [0], [0], [1], [0, 0, 1, 1], [], []>} : vector<8x256xbf16>, vector<256x6xbf16>, vector<8x6xf32> -> vector<8x6xf32>
    %213 = arith.addf %205, %212 : vector<8x6xf32>
    %c3_121 = arith.constant 3 : index
    %c0_122 = arith.constant 0 : index
    %c0_123 = arith.constant 0 : index
    %214 = vector.load %arg13[%c3_121, %c0_122, %c0_123] : memref<9x8x32xbf16, #tpu.memory_space<vmem>>, vector<1x8x32xbf16>
    %215 = vector.shape_cast %214 : vector<1x8x32xbf16> to vector<8x32xbf16>
    %cst_124 = arith.constant dense<0.000000e+00> : vector<8x256xf32>
    %216 = tpu.matmul %215, %190, %cst_124 {dimension_numbers = #tpu.dot_dimension_numbers<[1], [0], [0], [1], [0, 0, 1, 1], [], []>} : vector<8x32xbf16>, vector<32x256xbf16>, vector<8x256xf32> -> vector<8x256xf32>
    %217 = arith.truncf %216 : vector<8x256xf32> to vector<8x256xbf16>
    %c3_125 = arith.constant 3 : index
    %c0_126 = arith.constant 0 : index
    %c0_127 = arith.constant 0 : index
    %218 = vector.load %arg14[%c3_125, %c0_126, %c0_127] : memref<9x256x6xbf16, #tpu.memory_space<vmem>>, vector<1x256x6xbf16>
    %219 = vector.shape_cast %218 : vector<1x256x6xbf16> to vector<256x6xbf16>
    %cst_128 = arith.constant dense<0.000000e+00> : vector<8x6xf32>
    %220 = tpu.matmul %217, %219, %cst_128 {dimension_numbers = #tpu.dot_dimension_numbers<[1], [0], [0], [1], [0, 0, 1, 1], [], []>} : vector<8x256xbf16>, vector<256x6xbf16>, vector<8x6xf32> -> vector<8x6xf32>
    %221 = arith.addf %213, %220 : vector<8x6xf32>
    %c4 = arith.constant 4 : index
    %c0_129 = arith.constant 0 : index
    %c0_130 = arith.constant 0 : index
    %222 = vector.load %arg13[%c4, %c0_129, %c0_130] : memref<9x8x32xbf16, #tpu.memory_space<vmem>>, vector<1x8x32xbf16>
    %223 = vector.shape_cast %222 : vector<1x8x32xbf16> to vector<8x32xbf16>
    %cst_131 = arith.constant dense<0.000000e+00> : vector<8x256xf32>
    %224 = tpu.matmul %223, %190, %cst_131 {dimension_numbers = #tpu.dot_dimension_numbers<[1], [0], [0], [1], [0, 0, 1, 1], [], []>} : vector<8x32xbf16>, vector<32x256xbf16>, vector<8x256xf32> -> vector<8x256xf32>
    %225 = arith.truncf %224 : vector<8x256xf32> to vector<8x256xbf16>
    %c4_132 = arith.constant 4 : index
    %c0_133 = arith.constant 0 : index
    %c0_134 = arith.constant 0 : index
    %226 = vector.load %arg14[%c4_132, %c0_133, %c0_134] : memref<9x256x6xbf16, #tpu.memory_space<vmem>>, vector<1x256x6xbf16>
    %227 = vector.shape_cast %226 : vector<1x256x6xbf16> to vector<256x6xbf16>
    %cst_135 = arith.constant dense<0.000000e+00> : vector<8x6xf32>
    %228 = tpu.matmul %225, %227, %cst_135 {dimension_numbers = #tpu.dot_dimension_numbers<[1], [0], [0], [1], [0, 0, 1, 1], [], []>} : vector<8x256xbf16>, vector<256x6xbf16>, vector<8x6xf32> -> vector<8x6xf32>
    %229 = arith.addf %221, %228 : vector<8x6xf32>
    %c5 = arith.constant 5 : index
    %c0_136 = arith.constant 0 : index
    %c0_137 = arith.constant 0 : index
    %230 = vector.load %arg13[%c5, %c0_136, %c0_137] : memref<9x8x32xbf16, #tpu.memory_space<vmem>>, vector<1x8x32xbf16>
    %231 = vector.shape_cast %230 : vector<1x8x32xbf16> to vector<8x32xbf16>
    %cst_138 = arith.constant dense<0.000000e+00> : vector<8x256xf32>
    %232 = tpu.matmul %231, %190, %cst_138 {dimension_numbers = #tpu.dot_dimension_numbers<[1], [0], [0], [1], [0, 0, 1, 1], [], []>} : vector<8x32xbf16>, vector<32x256xbf16>, vector<8x256xf32> -> vector<8x256xf32>
    %233 = arith.truncf %232 : vector<8x256xf32> to vector<8x256xbf16>
    %c5_139 = arith.constant 5 : index
    %c0_140 = arith.constant 0 : index
    %c0_141 = arith.constant 0 : index
    %234 = vector.load %arg14[%c5_139, %c0_140, %c0_141] : memref<9x256x6xbf16, #tpu.memory_space<vmem>>, vector<1x256x6xbf16>
    %235 = vector.shape_cast %234 : vector<1x256x6xbf16> to vector<256x6xbf16>
    %cst_142 = arith.constant dense<0.000000e+00> : vector<8x6xf32>
    %236 = tpu.matmul %233, %235, %cst_142 {dimension_numbers = #tpu.dot_dimension_numbers<[1], [0], [0], [1], [0, 0, 1, 1], [], []>} : vector<8x256xbf16>, vector<256x6xbf16>, vector<8x6xf32> -> vector<8x6xf32>
    %237 = arith.addf %229, %236 : vector<8x6xf32>
    %c6 = arith.constant 6 : index
    %c0_143 = arith.constant 0 : index
    %c0_144 = arith.constant 0 : index
    %238 = vector.load %arg13[%c6, %c0_143, %c0_144] : memref<9x8x32xbf16, #tpu.memory_space<vmem>>, vector<1x8x32xbf16>
    %239 = vector.shape_cast %238 : vector<1x8x32xbf16> to vector<8x32xbf16>
    %cst_145 = arith.constant dense<0.000000e+00> : vector<8x256xf32>
    %240 = tpu.matmul %239, %190, %cst_145 {dimension_numbers = #tpu.dot_dimension_numbers<[1], [0], [0], [1], [0, 0, 1, 1], [], []>} : vector<8x32xbf16>, vector<32x256xbf16>, vector<8x256xf32> -> vector<8x256xf32>
    %241 = arith.truncf %240 : vector<8x256xf32> to vector<8x256xbf16>
    %c6_146 = arith.constant 6 : index
    %c0_147 = arith.constant 0 : index
    %c0_148 = arith.constant 0 : index
    %242 = vector.load %arg14[%c6_146, %c0_147, %c0_148] : memref<9x256x6xbf16, #tpu.memory_space<vmem>>, vector<1x256x6xbf16>
    %243 = vector.shape_cast %242 : vector<1x256x6xbf16> to vector<256x6xbf16>
    %cst_149 = arith.constant dense<0.000000e+00> : vector<8x6xf32>
    %244 = tpu.matmul %241, %243, %cst_149 {dimension_numbers = #tpu.dot_dimension_numbers<[1], [0], [0], [1], [0, 0, 1, 1], [], []>} : vector<8x256xbf16>, vector<256x6xbf16>, vector<8x6xf32> -> vector<8x6xf32>
    %245 = arith.addf %237, %244 : vector<8x6xf32>
    %c7 = arith.constant 7 : index
    %c0_150 = arith.constant 0 : index
    %c0_151 = arith.constant 0 : index
    %246 = vector.load %arg13[%c7, %c0_150, %c0_151] : memref<9x8x32xbf16, #tpu.memory_space<vmem>>, vector<1x8x32xbf16>
    %247 = vector.shape_cast %246 : vector<1x8x32xbf16> to vector<8x32xbf16>
    %cst_152 = arith.constant dense<0.000000e+00> : vector<8x256xf32>
    %248 = tpu.matmul %247, %190, %cst_152 {dimension_numbers = #tpu.dot_dimension_numbers<[1], [0], [0], [1], [0, 0, 1, 1], [], []>} : vector<8x32xbf16>, vector<32x256xbf16>, vector<8x256xf32> -> vector<8x256xf32>
    %249 = arith.truncf %248 : vector<8x256xf32> to vector<8x256xbf16>
    %c7_153 = arith.constant 7 : index
    %c0_154 = arith.constant 0 : index
    %c0_155 = arith.constant 0 : index
    %250 = vector.load %arg14[%c7_153, %c0_154, %c0_155] : memref<9x256x6xbf16, #tpu.memory_space<vmem>>, vector<1x256x6xbf16>
    %251 = vector.shape_cast %250 : vector<1x256x6xbf16> to vector<256x6xbf16>
    %cst_156 = arith.constant dense<0.000000e+00> : vector<8x6xf32>
    %252 = tpu.matmul %249, %251, %cst_156 {dimension_numbers = #tpu.dot_dimension_numbers<[1], [0], [0], [1], [0, 0, 1, 1], [], []>} : vector<8x256xbf16>, vector<256x6xbf16>, vector<8x6xf32> -> vector<8x6xf32>
    %253 = arith.addf %245, %252 : vector<8x6xf32>
    %c8 = arith.constant 8 : index
    %c0_157 = arith.constant 0 : index
    %c0_158 = arith.constant 0 : index
    %254 = vector.load %arg13[%c8, %c0_157, %c0_158] : memref<9x8x32xbf16, #tpu.memory_space<vmem>>, vector<1x8x32xbf16>
    %255 = vector.shape_cast %254 : vector<1x8x32xbf16> to vector<8x32xbf16>
    %cst_159 = arith.constant dense<0.000000e+00> : vector<8x256xf32>
    %256 = tpu.matmul %255, %190, %cst_159 {dimension_numbers = #tpu.dot_dimension_numbers<[1], [0], [0], [1], [0, 0, 1, 1], [], []>} : vector<8x32xbf16>, vector<32x256xbf16>, vector<8x256xf32> -> vector<8x256xf32>
    %257 = arith.truncf %256 : vector<8x256xf32> to vector<8x256xbf16>
    %c8_160 = arith.constant 8 : index
    %c0_161 = arith.constant 0 : index
    %c0_162 = arith.constant 0 : index
    %258 = vector.load %arg14[%c8_160, %c0_161, %c0_162] : memref<9x256x6xbf16, #tpu.memory_space<vmem>>, vector<1x256x6xbf16>
    %259 = vector.shape_cast %258 : vector<1x256x6xbf16> to vector<256x6xbf16>
    %cst_163 = arith.constant dense<0.000000e+00> : vector<8x6xf32>
    %260 = tpu.matmul %257, %259, %cst_163 {dimension_numbers = #tpu.dot_dimension_numbers<[1], [0], [0], [1], [0, 0, 1, 1], [], []>} : vector<8x256xbf16>, vector<256x6xbf16>, vector<8x6xf32> -> vector<8x6xf32>
    %261 = arith.addf %253, %260 : vector<8x6xf32>
    %c0_164 = arith.constant 0 : index
    %c0_165 = arith.constant 0 : index
    %262 = vector.load %arg15[%c0_164, %c0_165] : memref<1x6xf32, #tpu.memory_space<vmem>>, vector<1x6xf32>
    %263 = vector.broadcast %262 : vector<1x6xf32> to vector<8x6xf32>
    %264 = arith.addf %261, %263 : vector<8x6xf32>
    %cst_166 = arith.constant 0.000000e+00 : f32
    %265 = vector.broadcast %cst_166 : f32 to vector<8x6xf32>
    %266 = arith.maximumf %264, %265 : vector<8x6xf32>
    %267 = arith.truncf %266 : vector<8x6xf32> to vector<8x6xbf16>
    %c0_167 = arith.constant 0 : index
    %c0_168 = arith.constant 0 : index
    %c0_169 = arith.constant 0 : index
    %268 = vector.load %arg16[%c0_167, %c0_168, %c0_169] : memref<4x2x8xbf16, #tpu.memory_space<vmem>>, vector<1x2x8xbf16>
    %269 = vector.shape_cast %268 : vector<1x2x8xbf16> to vector<2x8xbf16>
    %cst_170 = arith.constant dense<0.000000e+00> : vector<2x6xf32>
    %270 = tpu.matmul %269, %267, %cst_170 {dimension_numbers = #tpu.dot_dimension_numbers<[1], [0], [0], [1], [0, 0, 1, 1], [], []>} : vector<2x8xbf16>, vector<8x6xbf16>, vector<2x6xf32> -> vector<2x6xf32>
    %271 = arith.truncf %270 : vector<2x6xf32> to vector<2x6xbf16>
    %c0_171 = arith.constant 0 : index
    %c0_172 = arith.constant 0 : index
    %c0_173 = arith.constant 0 : index
    %272 = vector.load %arg17[%c0_171, %c0_172, %c0_173] : memref<4x6x192xbf16, #tpu.memory_space<vmem>>, vector<1x6x192xbf16>
    %273 = vector.shape_cast %272 : vector<1x6x192xbf16> to vector<6x192xbf16>
    %cst_174 = arith.constant dense<0.000000e+00> : vector<2x192xf32>
    %274 = tpu.matmul %271, %273, %cst_174 {dimension_numbers = #tpu.dot_dimension_numbers<[1], [0], [0], [1], [0, 0, 1, 1], [], []>} : vector<2x6xbf16>, vector<6x192xbf16>, vector<2x192xf32> -> vector<2x192xf32>
    %c1_175 = arith.constant 1 : index
    %c0_176 = arith.constant 0 : index
    %c0_177 = arith.constant 0 : index
    %275 = vector.load %arg16[%c1_175, %c0_176, %c0_177] : memref<4x2x8xbf16, #tpu.memory_space<vmem>>, vector<1x2x8xbf16>
    %276 = vector.shape_cast %275 : vector<1x2x8xbf16> to vector<2x8xbf16>
    %cst_178 = arith.constant dense<0.000000e+00> : vector<2x6xf32>
    %277 = tpu.matmul %276, %267, %cst_178 {dimension_numbers = #tpu.dot_dimension_numbers<[1], [0], [0], [1], [0, 0, 1, 1], [], []>} : vector<2x8xbf16>, vector<8x6xbf16>, vector<2x6xf32> -> vector<2x6xf32>
    %278 = arith.truncf %277 : vector<2x6xf32> to vector<2x6xbf16>
    %c1_179 = arith.constant 1 : index
    %c0_180 = arith.constant 0 : index
    %c0_181 = arith.constant 0 : index
    %279 = vector.load %arg17[%c1_179, %c0_180, %c0_181] : memref<4x6x192xbf16, #tpu.memory_space<vmem>>, vector<1x6x192xbf16>
    %280 = vector.shape_cast %279 : vector<1x6x192xbf16> to vector<6x192xbf16>
    %cst_182 = arith.constant dense<0.000000e+00> : vector<2x192xf32>
    %281 = tpu.matmul %278, %280, %cst_182 {dimension_numbers = #tpu.dot_dimension_numbers<[1], [0], [0], [1], [0, 0, 1, 1], [], []>} : vector<2x6xbf16>, vector<6x192xbf16>, vector<2x192xf32> -> vector<2x192xf32>
    %282 = arith.addf %274, %281 : vector<2x192xf32>
    %c2_183 = arith.constant 2 : index
    %c0_184 = arith.constant 0 : index
    %c0_185 = arith.constant 0 : index
    %283 = vector.load %arg16[%c2_183, %c0_184, %c0_185] : memref<4x2x8xbf16, #tpu.memory_space<vmem>>, vector<1x2x8xbf16>
    %284 = vector.shape_cast %283 : vector<1x2x8xbf16> to vector<2x8xbf16>
    %cst_186 = arith.constant dense<0.000000e+00> : vector<2x6xf32>
    %285 = tpu.matmul %284, %267, %cst_186 {dimension_numbers = #tpu.dot_dimension_numbers<[1], [0], [0], [1], [0, 0, 1, 1], [], []>} : vector<2x8xbf16>, vector<8x6xbf16>, vector<2x6xf32> -> vector<2x6xf32>
    %286 = arith.truncf %285 : vector<2x6xf32> to vector<2x6xbf16>
    %c2_187 = arith.constant 2 : index
    %c0_188 = arith.constant 0 : index
    %c0_189 = arith.constant 0 : index
    %287 = vector.load %arg17[%c2_187, %c0_188, %c0_189] : memref<4x6x192xbf16, #tpu.memory_space<vmem>>, vector<1x6x192xbf16>
    %288 = vector.shape_cast %287 : vector<1x6x192xbf16> to vector<6x192xbf16>
    %cst_190 = arith.constant dense<0.000000e+00> : vector<2x192xf32>
    %289 = tpu.matmul %286, %288, %cst_190 {dimension_numbers = #tpu.dot_dimension_numbers<[1], [0], [0], [1], [0, 0, 1, 1], [], []>} : vector<2x6xbf16>, vector<6x192xbf16>, vector<2x192xf32> -> vector<2x192xf32>
    %290 = arith.addf %282, %289 : vector<2x192xf32>
    %c3_191 = arith.constant 3 : index
    %c0_192 = arith.constant 0 : index
    %c0_193 = arith.constant 0 : index
    %291 = vector.load %arg16[%c3_191, %c0_192, %c0_193] : memref<4x2x8xbf16, #tpu.memory_space<vmem>>, vector<1x2x8xbf16>
    %292 = vector.shape_cast %291 : vector<1x2x8xbf16> to vector<2x8xbf16>
    %cst_194 = arith.constant dense<0.000000e+00> : vector<2x6xf32>
    %293 = tpu.matmul %292, %267, %cst_194 {dimension_numbers = #tpu.dot_dimension_numbers<[1], [0], [0], [1], [0, 0, 1, 1], [], []>} : vector<2x8xbf16>, vector<8x6xbf16>, vector<2x6xf32> -> vector<2x6xf32>
    %294 = arith.truncf %293 : vector<2x6xf32> to vector<2x6xbf16>
    %c3_195 = arith.constant 3 : index
    %c0_196 = arith.constant 0 : index
    %c0_197 = arith.constant 0 : index
    %295 = vector.load %arg17[%c3_195, %c0_196, %c0_197] : memref<4x6x192xbf16, #tpu.memory_space<vmem>>, vector<1x6x192xbf16>
    %296 = vector.shape_cast %295 : vector<1x6x192xbf16> to vector<6x192xbf16>
    %cst_198 = arith.constant dense<0.000000e+00> : vector<2x192xf32>
    %297 = tpu.matmul %294, %296, %cst_198 {dimension_numbers = #tpu.dot_dimension_numbers<[1], [0], [0], [1], [0, 0, 1, 1], [], []>} : vector<2x6xbf16>, vector<6x192xbf16>, vector<2x192xf32> -> vector<2x192xf32>
    %298 = arith.addf %290, %297 : vector<2x192xf32>
    %c0_199 = arith.constant 0 : index
    %c0_200 = arith.constant 0 : index
    %299 = vector.load %arg18[%c0_199, %c0_200] : memref<1x192xf32, #tpu.memory_space<vmem>>, vector<1x192xf32>
    %300 = vector.broadcast %299 : vector<1x192xf32> to vector<2x192xf32>
    %301 = arith.addf %298, %300 : vector<2x192xf32>
    %cst_201 = arith.constant 0.000000e+00 : f32
    %302 = vector.broadcast %cst_201 : f32 to vector<2x192xf32>
    %303 = arith.maximumf %301, %302 : vector<2x192xf32>
    %304 = arith.truncf %303 : vector<2x192xf32> to vector<2x192xbf16>
    %c0_202 = arith.constant 0 : index
    %c0_203 = arith.constant 0 : index
    %305 = vector.load %arg19[%c0_202, %c0_203] : memref<192x256xbf16, #tpu.memory_space<vmem>>, vector<192x256xbf16>
    %cst_204 = arith.constant dense<0.000000e+00> : vector<2x256xf32>
    %306 = tpu.matmul %304, %305, %cst_204 {dimension_numbers = #tpu.dot_dimension_numbers<[1], [0], [0], [1], [0, 0, 1, 1], [], []>} : vector<2x192xbf16>, vector<192x256xbf16>, vector<2x256xf32> -> vector<2x256xf32>
    %c0_205 = arith.constant 0 : index
    %c0_206 = arith.constant 0 : index
    %307 = vector.load %arg20[%c0_205, %c0_206] : memref<1x256xf32, #tpu.memory_space<vmem>>, vector<1x256xf32>
    %308 = vector.broadcast %307 : vector<1x256xf32> to vector<2x256xf32>
    %309 = arith.addf %306, %308 : vector<2x256xf32>
    %310 = vector.extract_strided_slice %309 {offsets = [0, 0], sizes = [2, 128], strides = [1, 1]} : vector<2x256xf32> to vector<2x128xf32>
    %311 = vector.extract_strided_slice %309 {offsets = [0, 128], sizes = [2, 128], strides = [1, 1]} : vector<2x256xf32> to vector<2x128xf32>
    %312 = arith.mulf %310, %310 : vector<2x128xf32>
    %313 = arith.mulf %311, %311 : vector<2x128xf32>
    %314 = arith.addf %312, %313 : vector<2x128xf32>
    %315 = math.sqrt %314 : vector<2x128xf32>
    %316 = vector.extract_strided_slice %315 {offsets = [0, 0], sizes = [2, 10], strides = [1, 1]} : vector<2x128xf32> to vector<2x10xf32>
    %c0_207 = arith.constant 0 : index
    %c0_208 = arith.constant 0 : index
    %317 = vector.load %arg21[%c0_207, %c0_208] : memref<2x10xf32, #tpu.memory_space<vmem>>, vector<2x10xf32>
    tpu.vector_store %arg21[%c0_207, %c0_208], %316 {strides = array<i32>} : memref<2x10xf32, #tpu.memory_space<vmem>>, vector<2x10xf32>,
    return
  }
}

</mosaic_0001>

<bundles_post_ra>
// kernel: discriminator_forward.1
= control target key start
LH: loop header
LB: loop body
LE: loop exit
PB: predicated region body
PF: predicated region fallthrough
CT: control target
= control target key end

     0   :  { %s9468_s0 = inlined_call_operand.vmem [shape: bf16[72,2], index: 0, kind: input, shape index: {}]   ;;  %s9469_s1 = inlined_call_operand.vmem [shape: bf16[4,50,72], index: 1, kind: input, shape index: {}]   ;;  %s9470_s2 = inlined_call_operand.hbm [shape: bf16[4,2,256], index: 2, kind: input, shape index: {}]   ;;  %s9471_s3 = inlined_call_operand.hbm [shape: f32[1,256], index: 3, kind: input, shape index: {}]   ;;  %s9472_s4 = inlined_call_operand.hbm [shape: f32[1,256], index: 4, kind: input, shape index: {}]   ;;  %s9473_s5 = inlined_call_operand.hbm [shape: f32[1,256], index: 5, kind: input, shape index: {}]   ;;  %s9474_s6 = inlined_call_operand.hbm [shape: f32[1,256], index: 6, kind: input, shape index: {}]   ;;  %s9475_s7 = inlined_call_operand.hbm [shape: bf16[4,32,50], index: 7, kind: input, shape index: {}]   ;;  %s9476_s8 = inlined_call_operand.vmem [shape: bf16[4,256,256], index: 8, kind: input, shape index: {}]   ;;  %s9477_s9 = inlined_call_operand.hbm [shape: f32[1,256], index: 9, kind: input, shape index: {}]   ;;  %s9478_s10 = inlined_call_operand.hbm [shape: f32[1,256], index: 10, kind: input, shape index: {}]   ;;  %s9479_s11 = inlined_call_operand.hbm [shape: f32[1,256], index: 11, kind: input, shape index: {}]   ;;  %s9480_s12 = inlined_call_operand.hbm [shape: f32[1,256], index: 12, kind: input, shape index: {}]   ;;  %s9481_s13 = inlined_call_operand.hbm [shape: bf16[9,8,32], index: 13, kind: input, shape index: {}]   ;;  %s9482_s14 = inlined_call_operand.vmem [shape: bf16[9,256,6], index: 14, kind: input, shape index: {}]   ;;  %s9483_s15 = inlined_call_operand.vmem [shape: f32[1,6], index: 15, kind: input, shape index: {}]   ;;  %s9484_s16 = inlined_call_operand.vmem [shape: bf16[4,2,8], index: 16, kind: input, shape index: {}]   ;;  %s9485_s17 = inlined_call_operand.vmem [shape: bf16[4,6,192], index: 17, kind: input, shape index: {}]   ;;  %s9486_s18 = inlined_call_operand.hbm [shape: f32[1,192], index: 18, kind: input, shape index: {}]   ;;  %s9487_s19 = inlined_call_operand.vmem [shape: bf16[192,256], index: 19, kind: input, shape index: {}]   ;;  %s9488_s20 = inlined_call_operand.hbm [shape: f32[1,256], index: 20, kind: input, shape index: {}]   ;;  %s9489_s21 = inlined_call_operand.hbm [shape: f32[2,10], index: 21, kind: output, shape index: {}]  }
   0x1   :  { %9492 = sst [smem:[#allocation32_spill]] %s9468_s0 }
   0x2   :  { %9493 = sst [smem:[#allocation33_spill]] %s9469_s1 }
   0x3   :  { %9494 = sst [smem:[#allocation34_spill]] %s9470_s2 }
   0x4   :  { %9495 = sst [smem:[#allocation35_spill]] %s9471_s3 }
   0x5   :  { %9496 = sst [smem:[#allocation36_spill]] %s9472_s4 }
   0x6   :  { %9497 = sst [smem:[#allocation37_spill]] %s9473_s5 }
   0x7   :  { %26 = vsyncpa [#allocation3], 0 }
   0x8   :  { %27 = vsyncpa [#allocation6], 0 }
   0x9   :  { %28 = vsyncpa [#allocation9], 0 }
   0xa   :  { %29 = vsyncpa [#allocation12], 0 }
   0xb   :  { %30 = vsyncpa [#allocation15], 0 }
   0xc   :  { %31 = vsyncpa [#allocation18], 0 }
   0xd   :  { %32 = vsyncpa [#allocation21], 0 }
   0xe   :  { %33 = vsyncpa [#allocation4], 0  ;;  %s7576_s2 = smov [#allocation5]   ;;  %s7577_s26 = smov [#allocation8]  }
   0xf   :  { %s56_s25 = sshll.u32 %s7576_s2, 4  ;;  %s76_s27 = sshll.u32 %s7577_s26, 4  ;;  %s57_s25 = int_to_ptr.vmem [resolvable:$true] %s56_s25  ;;  %s77_s27 = int_to_ptr.vmem [resolvable:$true] %s76_s27 }
  0x10   :  { %s7288_s3 = scalar_lea.vmem %s57_s25, 32  ;;  %p7293_p1 = scmp.lt.s32.totalorder %s57_s25, %s57_s25 }
  0x11   :  { %p7289_p0 = scmp.ne.s32.totalorder %s57_s25, %s7288_s3  ;;  %p7294_p2 = scmp.lt.s32.totalorder %s7288_s3, %s7288_s3 }
  0x13   :  { %p7295_p3 = por %p7294_p2, %p7293_p1 }
  0x15   :  { %p7296_p4 = pnand %p7295_p3, %p7289_p0 }
  0x17   :  { %7299 = shalt.err (!%p7296_p4)
}
  0x18   :  { %s9498_s0 = sld [smem:[#allocation35_spill]]  ;;  %s7308_s4 = scalar_lea.vmem %s77_s27, 32 }
  0x19   :  { %p7309_p5 = scmp.ne.s32.totalorder %s77_s27, %s7308_s4  ;;  %p7313_p6 = scmp.lt.s32.totalorder %s77_s27, %s77_s27 }
  0x1a   :  { %p7314_p7 = scmp.lt.s32.totalorder %s7308_s4, %s7308_s4 }
  0x1c   :  { %p7315_p8 = por %p7314_p7, %p7313_p6 }
  0x1e   :  { %59 = dma.hbm_to_vmem [thread:$0]  %s9498_s0, 32, %s57_s25, [#allocation6]  }
  0x1f   :  { %p7316_p9 = pnand %p7315_p8, %p7309_p5 }
  0x21   :  { %7319 = shalt.err (!%p7316_p9)
}
  0x22   :  { %s9499_s22 = sld [smem:[#allocation37_spill]]  ;;  %s7578_s23 = smov [#allocation11]  }
  0x23   :  { %s95_s1 = sshll.u32 %s7578_s23, 4  ;;  %s96_s1 = int_to_ptr.vmem [resolvable:$true] %s95_s1 }
  0x24   :  { %s7328_s24 = scalar_lea.vmem %s96_s1, 1024  ;;  %p7333_p11 = scmp.lt.s32.totalorder %s96_s1, %s96_s1 }
  0x25   :  { %p7329_p10 = scmp.ne.s32.totalorder %s96_s1, %s7328_s24  ;;  %p7334_p12 = scmp.lt.s32.totalorder %s7328_s24, %s7328_s24 }
  0x27   :  { %p7335_p13 = por %p7334_p12, %p7333_p11 }
  0x28   :  { %79 = dma.hbm_to_vmem [thread:$0]  %s9499_s22, 32, %s77_s27, [#allocation9]  }
  0x29   :  { %p7336_p0 = pnand %p7335_p13, %p7329_p10 }
  0x2b   :  { %7339 = shalt.err (!%p7336_p0)
}
  0x2c   :  { %s7579_s2 = smov 64   ;;  %s7580_s25 = smov 4  }
  0x2d   :  { %101 = dma.hbm_to_vmem [thread:$0]  %s9475_s7, 1024, %s96_s1, [#allocation12], %s7579_s2, %s7579_s2, %s7580_s25  }
  0x2e   :  { %s7581_s27 = smov [#allocation14]   ;;  %s7582_s29 = smov [#allocation17]  }
  0x2f   :  { %s120_s28 = sshll.u32 %s7581_s27, 4  ;;  %s140_s0 = sshll.u32 %s7582_s29, 4  ;;  %s121_s28 = int_to_ptr.vmem [resolvable:$true] %s120_s28  ;;  %s141_s0 = int_to_ptr.vmem [resolvable:$true] %s140_s0 }
  0x30   :  { %s7348_s4 = scalar_lea.vmem %s121_s28, 32  ;;  %p7353_p2 = scmp.lt.s32.totalorder %s121_s28, %s121_s28 }
  0x31   :  { %p7349_p1 = scmp.ne.s32.totalorder %s121_s28, %s7348_s4  ;;  %p7354_p3 = scmp.lt.s32.totalorder %s7348_s4, %s7348_s4 }
  0x33   :  { %p7355_p4 = por %p7354_p3, %p7353_p2 }
  0x35   :  { %p7356_p5 = pnand %p7355_p4, %p7349_p1 }
  0x37   :  { %7359 = shalt.err (!%p7356_p5)
}
  0x38   :  { %123 = dma.hbm_to_vmem [thread:$0]  %s9478_s10, 32, %s121_s28, [#allocation15]  }
  0x39   :  { %s7368_s22 = scalar_lea.vmem %s141_s0, 32  ;;  %p7373_p7 = scmp.lt.s32.totalorder %s141_s0, %s141_s0 }
  0x3a   :  { %p7369_p6 = scmp.ne.s32.totalorder %s141_s0, %s7368_s22  ;;  %p7374_p8 = scmp.lt.s32.totalorder %s7368_s22, %s7368_s22 }
  0x3c   :  { %p7375_p9 = por %p7374_p8, %p7373_p7 }
  0x3e   :  { %p7376_p10 = pnand %p7375_p9, %p7369_p6 }
  0x40   :  { %7379 = shalt.err (!%p7376_p10)
}
  0x41   :  { %143 = dma.hbm_to_vmem [thread:$0]  %s9480_s12, 32, %s141_s0, [#allocation18]  }
  0x42   :  { %s7583_s1 = smov [#allocation20]   ;;  %s7584_s26 = smov [#allocation2]  }
  0x43   :  { %s170_s24 = sshll.u32 %s7583_s1, 4  ;;  %s43_s3 = sshll.u32 %s7584_s26, 4  ;;  %s171_s24 = int_to_ptr.vmem [resolvable:$true] %s170_s24  ;;  %s44_s3 = int_to_ptr.vmem [resolvable:$true] %s43_s3 }
  0x44   :  { %s7388_s27 = scalar_lea.vmem %s171_s24, 32  ;;  %p7393_p12 = scmp.lt.s32.totalorder %s171_s24, %s171_s24 }
  0x45   :  { %p7389_p11 = scmp.ne.s32.totalorder %s171_s24, %s7388_s27  ;;  %p7394_p13 = scmp.lt.s32.totalorder %s7388_s27, %s7388_s27 }
  0x47   :  { %p7395_p0 = por %p7394_p13, %p7393_p12 }
  0x49   :  { %p7396_p1 = pnand %p7395_p0, %p7389_p11 }
  0x4b   :  { %7399 = shalt.err (!%p7396_p1)
}
  0x4c   :  { %173 = dma.hbm_to_vmem [thread:$0]  %s9486_s18, 32, %s171_s24, [#allocation21]  }
  0x4d   :  { %s7408_s29 = scalar_lea.vmem %s44_s3, 128  ;;  %p7413_p3 = scmp.lt.s32.totalorder %s44_s3, %s44_s3 }
  0x4e   :  { %p7409_p2 = scmp.ne.s32.totalorder %s44_s3, %s7408_s29  ;;  %p7414_p4 = scmp.lt.s32.totalorder %s7408_s29, %s7408_s29 }
  0x50   :  { %p7415_p5 = por %p7414_p4, %p7413_p3 }
  0x52   :  { %p7416_p6 = pnand %p7415_p5, %p7409_p2 }
  0x54   :  { %7419 = shalt.err (!%p7416_p6)
}
  0x55   :  { %s7585_s12 = smov 32   ;;  %s7586_s0 = smov 2  }
  0x56   :  { %s9500_s5 = sld [smem:[#allocation34_spill]]  ;;  %s7587_s22 = smov [#allocation7]  }
  0x57   :  { %s66_s7 = sshll.u32 %s7587_s22, 4  ;;  %s7588_s23 = smov [#allocation10]   ;;  %s67_s7 = int_to_ptr.vmem [resolvable:$true] %s66_s7 }
  0x58   :  { %s86_s1 = sshll.u32 %s7588_s23, 4  ;;  %s7428_s18 = scalar_lea.vmem %s67_s7, 32  ;;  %s87_s1 = int_to_ptr.vmem [resolvable:$true] %s86_s1 }
  0x59   :  { %p7429_p7 = scmp.ne.s32.totalorder %s67_s7, %s7428_s18  ;;  %p7433_p8 = scmp.lt.s32.totalorder %s67_s7, %s67_s7 }
  0x5a   :  { %p7434_p9 = scmp.lt.s32.totalorder %s7428_s18, %s7428_s18 }
  0x5c   :  { %49 = dma.hbm_to_vmem [thread:$0]  %s9500_s5, 128, %s44_s3, [#allocation3], %s7585_s12, %s7585_s12, %s7586_s0  }
  0x5d   :  { %p7435_p10 = por %p7434_p9, %p7433_p8 }
  0x5f   :  { %p7436_p11 = pnand %p7435_p10, %p7429_p7 }
  0x61   :  { %7439 = shalt.err (!%p7436_p11)
}
  0x62   :  { %s9501_s27 = sld [smem:[#allocation36_spill]]  ;;  %s7448_s10 = scalar_lea.vmem %s87_s1, 32 }
  0x63   :  { %p7449_p12 = scmp.ne.s32.totalorder %s87_s1, %s7448_s10  ;;  %p7453_p13 = scmp.lt.s32.totalorder %s87_s1, %s87_s1 }
  0x64   :  { %p7454_p0 = scmp.lt.s32.totalorder %s7448_s10, %s7448_s10 }
  0x66   :  { %p7455_p1 = por %p7454_p0, %p7453_p13 }
  0x68   :  { %69 = dma.hbm_to_vmem [thread:$0]  %s9501_s27, 32, %s67_s7, [#allocation6]  }
  0x69   :  { %p7456_p2 = pnand %p7455_p1, %p7449_p12 }
  0x6b   :  { %7459 = shalt.err (!%p7456_p2)
}
  0x6c   :  { %89 = dma.hbm_to_vmem [thread:$0]  %s9474_s6, 32, %s87_s1, [#allocation9]  }
  0x6d   :  { %s7589_s29 = smov [#allocation13]   ;;  %s7590_s0 = smov [#allocation16]  }
  0x6e   :  { %s110_s12 = sshll.u32 %s7589_s29, 4  ;;  %s130_s4 = sshll.u32 %s7590_s0, 4  ;;  %s111_s12 = int_to_ptr.vmem [resolvable:$true] %s110_s12  ;;  %s131_s4 = int_to_ptr.vmem [resolvable:$true] %s130_s4 }
  0x6f   :  { %s7468_s30 = scalar_lea.vmem %s111_s12, 32  ;;  %p7473_p4 = scmp.lt.s32.totalorder %s111_s12, %s111_s12 }
  0x70   :  { %p7469_p3 = scmp.ne.s32.totalorder %s111_s12, %s7468_s30  ;;  %p7474_p5 = scmp.lt.s32.totalorder %s7468_s30, %s7468_s30 }
  0x72   :  { %p7475_p6 = por %p7474_p5, %p7473_p4 }
  0x74   :  { %p7476_p7 = pnand %p7475_p6, %p7469_p3 }
  0x76   :  { %7479 = shalt.err (!%p7476_p7)
}
  0x77   :  { %113 = dma.hbm_to_vmem [thread:$0]  %s9477_s9, 32, %s111_s12, [#allocation12]  }
  0x78   :  { %s7488_s7 = scalar_lea.vmem %s131_s4, 32  ;;  %p7493_p9 = scmp.lt.s32.totalorder %s131_s4, %s131_s4 }
  0x79   :  { %p7489_p8 = scmp.ne.s32.totalorder %s131_s4, %s7488_s7  ;;  %p7494_p10 = scmp.lt.s32.totalorder %s7488_s7, %s7488_s7 }
  0x7b   :  { %p7495_p11 = por %p7494_p10, %p7493_p9 }
  0x7d   :  { %p7496_p12 = pnand %p7495_p11, %p7489_p8 }
  0x7f   :  { %7499 = shalt.err (!%p7496_p12)
}
  0x80   :  { %133 = dma.hbm_to_vmem [thread:$0]  %s9479_s11, 32, %s131_s4, [#allocation15]  }
  0x81   :  { %s7591_s1 = smov [#allocation19]   ;;  %s7592_s24 = smov [#allocation22]  }
  0x82   :  { %s149_s18 = sshll.u32 %s7591_s1, 4  ;;  %s182_s26 = sshll.u32 %s7592_s24, 4  ;;  %s150_s18 = int_to_ptr.vmem [resolvable:$true] %s149_s18  ;;  %s183_s26 = int_to_ptr.vmem [resolvable:$true] %s182_s26 }
  0x83   :  { %s7508_s27 = scalar_lea.vmem %s150_s18, 576  ;;  %p7513_p0 = scmp.lt.s32.totalorder %s150_s18, %s150_s18 }
  0x84   :  { %p7509_p13 = scmp.ne.s32.totalorder %s150_s18, %s7508_s27  ;;  %p7514_p1 = scmp.lt.s32.totalorder %s7508_s27, %s7508_s27 }
  0x86   :  { %p7515_p2 = por %p7514_p1, %p7513_p0 }
  0x88   :  { %p7516_p3 = pnand %p7515_p2, %p7509_p13 }
  0x8a   :  { %7519 = shalt.err (!%p7516_p3)
}
  0x8b   :  { %155 = dma.hbm_to_vmem [thread:$0]  %s9481_s13, 576, %s150_s18, [#allocation18], %s7579_s2, %s7579_s2, %s7580_s25  }
  0x8c   :  { %s7528_s11 = scalar_lea.vmem %s183_s26, 32  ;;  %p7533_p5 = scmp.lt.s32.totalorder %s183_s26, %s183_s26 }
  0x8d   :  { %p7529_p4 = scmp.ne.s32.totalorder %s183_s26, %s7528_s11  ;;  %p7534_p6 = scmp.lt.s32.totalorder %s7528_s11, %s7528_s11 }
  0x8f   :  { %p7535_p7 = por %p7534_p6, %p7533_p5 }
  0x91   :  { %p7536_p8 = pnand %p7535_p7, %p7529_p4 }
  0x93   :  { %7539 = shalt.err (!%p7536_p8)
}
  0x94   :  { %185 = dma.hbm_to_vmem [thread:$0]  %s9488_s20, 32, %s183_s26, [#allocation21]  }
  0x95   :  { %7560 = dma.done.wait [#allocation3], 128  }
  0x96   :  { %7561 = vsyncadd [#allocation3], 4294967168 }
  0x97   :  { %7562 = dma.done.wait [#allocation6], 64  }
  0x98   :  { %7563 = vsyncadd [#allocation6], 4294967232 }
  0x99   :  { %7564 = dma.done.wait [#allocation9], 64  }
  0x9a   :  { %7565 = vsyncadd [#allocation9], 4294967232 }
  0x9b   :  { %7566 = dma.done.wait [#allocation12], 1056  }
  0x9c   :  { %7567 = vsyncadd [#allocation12], 4294966240 }
  0x9d   :  { %7568 = dma.done.wait [#allocation15], 64  }
  0x9e   :  { %7569 = vsyncadd [#allocation15], 4294967232 }
  0x9f   :  { %7570 = dma.done.wait [#allocation18], 608  }
  0xa0   :  { %7571 = vsyncadd [#allocation18], 4294966688 }
  0xa1   :  { %7572 = dma.done.wait [#allocation21], 64  }
  0xa2   :  { %7573 = vsyncadd [#allocation21], 4294967232  ;;  %vm300_vm0 = vcmask 1043456   ;;  %s9502_s25 = sld [smem:[#allocation32_spill]]  ;;  %vm287_vm1 = vcmask 588800   ;;  %v493_v16 = vlaneseq  ;;  %vm517_vm2 = vcmask 1040384  }
  0xa3   :  { %s9503_s5 = sld [smem:[#allocation33_spill]]  ;;  %v7593_v14 = vmov 1966171168   ;;  %v7594_v25 = vmov 0   ;;  %vm504_vm3 = vcmask 15360   ;;  %vm1220_vm4 = vcmask 1041408  }
  0xa4   :  { %v491_v15 = vunpack.c.l.s4 %v7593_v14  ;;  %v7812_v18 = vshrl.u32 %v493_v16, 7  ;;  %v5735_v19 = vld.sshfl [vmem:[#allocation2] sm:$0x11 pattern:$0x75316420]  ;;  %668 = vmatprep.mubr.bf16.mxu1 %v7594_v25  ;;  %vm1520_vm9 = vcmask 408576  }
  0xa5   :  { %v603_v21 = vcombine.high %v5735_v19, %v5735_v19  ;;  %v5729_v26 = vld.sshfl [vmem:[#allocation2 + $0x2] sm:$0x11 pattern:$0x75316420]  ;;  %vm3061_vm14 = vcmask 261120   ;;  %vm7596_vm15 = vmmov 0  }
  0xa6   :  { %v492_v17 = vunpack.c.0.s8 %v491_v15  ;;  %v489_v27 = vcombine.high %v5729_v26, %v5729_v26 }
  0xa8   :  { %v7756_v0 = vld [vmem:[%s9502_s25 + $0x20] ss:$0 sps:$4 sm:$0xff]   ;;  %v6853_v1 = vld [vmem:[%s9502_s25 + $0x18] sm:$0xff]   ;;  %v6854_v3 = vld [vmem:[%s9502_s25 + $0x10] sm:$0xff]   ;;  %v7815_v20 = vsub.s32 %v492_v17, %v7812_v18 }
  0xa9   :  { %6826 = vmatprep.subr.msk.bf16.mxu0 %vm300_vm0, %v7756_v0  ;;  %v7765_v2 = vsel %vm300_vm0, %v7756_v0, 0  ;;  %v6857_v4 = vld [vmem:[%s9503_s5] sm:$0xff]   ;;  %v6855_v5 = vld [vmem:[%s9502_s25 + $0x8] sm:$0xff]   ;;  %v6859_v8 = vld [vmem:[%s9503_s5 + $0x10] sm:$0xff]  }
  0xaa   :  { %6731 = vmatpush3.bf16.msra.mxu0 %v7765_v2  ;;  %6740 = vmatprep.mubr.msk.bf16.mxu0 %vm287_vm1, %v6857_v4  ;;  %v6856_v6 = vld [vmem:[%s9502_s25] sm:$0xff]   ;;  %v6858_v7 = vld [vmem:[%s9503_s5 + $0x8] sm:$0xff]   ;;  %v6860_v9 = vld [vmem:[%s9503_s5 + $0x18] ss:$0 sps:$4 sm:$0x11]   ;;  %v617_v22 = vrot.slane %v603_v21, %v7815_v20  ;;  %v610_v23 = vrot.slane %v5735_v19, %v7815_v20  ;;  %v496_v28 = vrot.slane %v5729_v26, %v7815_v20 }
  0xab   :  { %6732 = vmatprep.subr.bf16.mxu0 %v6853_v1  ;;  %v6861_v10 = vld [vmem:[%s9503_s5 + $0x1c] sm:$0xff]   ;;  %v6862_v11 = vld [vmem:[%s9503_s5 + $0x24] sm:$0xff]   ;;  %v6863_v12 = vld [vmem:[%s9503_s5 + $0x2c] sm:$0xff]   ;;  %v503_v29 = vrot.slane %v489_v27, %v7815_v20 }
  0xac   :  { %v6864_v13 = vld [vmem:[%s9503_s5 + $0x34] ss:$0 sps:$4 sm:$0x11]   ;;  %5736 = vmatprep.subr.msk.bf16.mxu1 %vm517_vm2, %v617_v22  ;;  %v631_v24 = vsel %vm517_vm2, %v610_v23, 0  ;;  %v519_v30 = vsel %vm517_vm2, %v496_v28, 0  ;;  %v7275_v50 = vld [vmem:[%s9502_s25 + $0x18] sm:$0xff]  }
  0xad   :  { %651 = vmatpush1.bf16.msra.mxu1 %v631_v24  ;;  %v7276_v53 = vld [vmem:[%s9502_s25 + $0x10] sm:$0xff]   ;;  %v7277_v54 = vld [vmem:[%s9502_s25 + $0x8] sm:$0xff]   ;;  %v7278_v57 = vld [vmem:[%s9502_s25] sm:$0xff]  }
  0xae   :  { %6733 = vmatpush3.bf16.msra.mxu0 %v6853_v1  ;;  %v7279_v58 = vld [vmem:[%s9502_s25 + $0x20] ss:$0 sps:$4 sm:$0xff]   ;;  %v6865_v59 = vld [vmem:[%s9503_s5 + $0x38] sm:$0xff]   ;;  %v6867_v62 = vld [vmem:[%s9503_s5 + $0x48] sm:$0xff]  }
  0xaf   :  { %6734 = vmatprep.subr.bf16.mxu0 %v6854_v3  ;;  %v6866_v61 = vld [vmem:[%s9503_s5 + $0x40] sm:$0xff]   ;;  %v6868_v63 = vld [vmem:[%s9503_s5 + $0x50] ss:$0 sps:$4 sm:$0x11]  }
  0xb0   :  { %v5756_v4 = vld.sshfl [vmem:[#allocation2 + $0x4] sm:$0x11 pattern:$0x75316420] }
  0xb2   :  { %6735 = vmatpush3.bf16.msra.mxu0 %v6854_v3 }
  0xb3   :  { %6736 = vmatprep.subr.bf16.mxu0 %v6855_v5 }
  0xb6   :  { %6737 = vmatpush3.bf16.msra.mxu0 %v6855_v5 }
  0xb7   :  { %6738 = vmatprep.subr.bf16.mxu0 %v6856_v6 }
  0xba   :  { %6739 = vmatpush3.bf16.msra.mxu0 %v6856_v6 }
  0xbb   :  { %6827 = vmatprep.subr.msk.bf16.mxu0 %vm300_vm0, %v7756_v0 }
  0xbd   :  { %6741 = vmatmul.mubr.msk.bf16.vlgmr.msra.gmra.mxu0 %vm287_vm1, %v6858_v7 }
  0xbe   :  { %6749 = vmatpush3.bf16.msra.mxu0 %v7765_v2  ;;  %6744 = vmatprep.mubr.msk.bf16.mxu0 %vm287_vm1, %v6859_v8 }
  0xbf   :  { %6750 = vmatprep.subr.bf16.mxu0 %v6853_v1 }
  0xc2   :  { %6751 = vmatpush3.bf16.msra.mxu0 %v6853_v1  ;;  %v6870_v1 = vld [vmem:[%s9503_s5 + $0x5c] sm:$0xff]  }
  0xc3   :  { %6752 = vmatprep.subr.bf16.mxu0 %v6854_v3 }
  0xc5   :  { %6745 = vmatmul.mubr.msk.bf16.gmra.mxu0 %vm287_vm1, %v6860_v9  ;;  %v5777_v9 = vld.sshfl [vmem:[#allocation2 + $0x6] sm:$0x11 pattern:$0x75316420] }
  0xc6   :  { %6753 = vmatpush3.bf16.msra.mxu0 %v6854_v3  ;;  %6758 = vmatprep.mubr.msk.bf16.mxu0 %vm287_vm1, %v6861_v10  ;;  %v6872_v3 = vld [vmem:[%s9503_s5 + $0x6c] ss:$0 sps:$4 sm:$0x11]   ;;  %v1057_v10 = vcombine.high %v5777_v9, %v5777_v9 }
  0xc7   :  { %6754 = vmatprep.subr.bf16.mxu0 %v6855_v5 }
  0xca   :  { %6755 = vmatpush3.bf16.msra.mxu0 %v6855_v5  ;;  %v823_v5 = vcombine.high %v5756_v4, %v5756_v4 }
  0xcb   :  { %6756 = vmatprep.subr.bf16.mxu0 %v6856_v6 }
  0xcc   :  { %v837_v7 = vrot.slane %v823_v5, %v7815_v20 }
  0xce   :  { %6757 = vmatpush3.bf16.msra.mxu0 %v6856_v6  ;;  %v830_v6 = vrot.slane %v5756_v4, %v7815_v20  ;;  %5757 = vmatprep.subr.msk.bf16.mxu1 %vm517_vm2, %v837_v7 }
  0xcf   :  { %5730 = vmatprep.subr.msk.bf16.mxu0 %vm517_vm2, %v503_v29 }
  0xd0   :  { %v851_v8 = vsel %vm517_vm2, %v830_v6, 0 }
  0xd1   :  { %6759 = vmatmul.mubr.msk.bf16.vlgmr.msra.gmra.mxu0 %vm287_vm1, %v6862_v11  ;;  %v1071_v11 = vrot.slane %v1057_v10, %v7815_v20 }
  0xd2   :  { %6762 = vmatprep.mubr.msk.bf16.mxu0 %vm287_vm1, %v6863_v12  ;;  %539 = vmatpush1.bf16.msra.mxu0 %v519_v30 }
  0xd3   :  { %6828 = vmatprep.subr.msk.bf16.mxu0 %vm300_vm0, %v7756_v0  ;;  %v6869_v0 = vld [vmem:[%s9503_s5 + $0x54] sm:$0xff]  }
  0xd9   :  { %6763 = vmatmul.mubr.msk.bf16.gmra.mxu0 %vm287_vm1, %v6864_v13 }
  0xda   :  { %556 = vmatprep.mubr.bf16.mxu0 %v7594_v25 }
 0x17d   :  { %v6742_v31 = vpop.f32.mrf.mxu0 }
 0x17f   :  { %v338_v32 = vpop.f32.mrf.mxu0 }
 0x181   :  { %v6743_v33 = vpop.f32.mrf.mxu0 }
 0x182   :  { %v369_v39 = vpack.c.bf16 %v6743_v33, %v6742_v31 }
 0x183   :  { %v341_v34 = vpop.f32.mrf.mxu0 }
 0x184   :  { %v368_v35 = vpack.c.bf16 %v341_v34, %v338_v32 }
 0x185   :  { %v6746_v36 = vpop.f32.mrf.mxu0 }
 0x186   :  { %5737 = vmatmul.mubr.msk.bf16.vlgmr.msra.gmra.mxu1 %vm504_vm3, %v368_v35  ;;  %v371_v49 = vpack.c.bf16 %v6746_v36, %v6746_v36 }
 0x187   :  { %v354_v37 = vpop.f32.mrf.mxu0  ;;  %678 = vmatprep.mubr.bf16.mxu1 %v7594_v25  ;;  %871 = vmatpush1.bf16.msra.mxu1 %v851_v8 }
 0x188   :  { %5778 = vmatprep.subr.msk.bf16.mxu1 %vm517_vm2, %v1071_v11 }
 0x189   :  { %v6747_v38 = vpop.f32.mrf.mxu0 }
 0x18b   :  { %v357_v40 = vpop.f32.mrf.mxu0 }
 0x18c   :  { %v370_v43 = vpack.c.bf16 %v357_v40, %v354_v37 }
 0x18e   :  { %5738 = vmatmul.mubr.msk.bf16.gmra.mxu1 %vm504_vm3, %v369_v39 }
 0x18f   :  { %688 = vmatprep.mubr.bf16.mxu1 %v7594_v25 }
 0x191   :  { %v6760_v41 = vpop.f32.mrf.mxu0 }
 0x193   :  { %v445_v42 = vpop.f32.mrf.mxu0 }
 0x195   :  { %v6761_v44 = vpop.f32.mrf.mxu0 }
 0x196   :  { %5739 = vmatmul.mubr.msk.bf16.gmra.mxu1 %vm504_vm3, %v370_v43  ;;  %v476_v52 = vpack.c.bf16 %v6761_v44, %v6760_v41 }
 0x197   :  { %v448_v45 = vpop.f32.mrf.mxu0  ;;  %698 = vmatprep.mubr.bf16.mxu1 %v7594_v25 }
 0x198   :  { %v475_v46 = vpack.c.bf16 %v448_v45, %v445_v42 }
 0x199   :  { %v6764_v47 = vpop.f32.mrf.mxu0 }
 0x19a   :  { %5731 = vmatmul.mubr.msk.bf16.vlgmr.msra.gmra.mxu0 %vm504_vm3, %v475_v46  ;;  %v478_v60 = vpack.c.bf16 %v6764_v47, %v6764_v47 }
 0x19b   :  { %v461_v48 = vpop.f32.mrf.mxu0  ;;  %566 = vmatprep.mubr.bf16.mxu0 %v7594_v25  ;;  %6767 = vmatpush3.bf16.msra.mxu0 %v7765_v2 }
 0x19c   :  { %6768 = vmatprep.subr.bf16.mxu0 %v7275_v50 }
 0x19d   :  { %v6765_v51 = vpop.f32.mrf.mxu0 }
 0x19e   :  { %5740 = vmatmul.mubr.msk.bf16.gmra.mxu1 %vm504_vm3, %v371_v49 }
 0x19f   :  { %6769 = vmatpush3.bf16.msra.mxu0 %v7275_v50  ;;  %888 = vmatprep.mubr.bf16.mxu1 %v7594_v25  ;;  %v464_v55 = vpop.f32.mrf.mxu0 }
 0x1a0   :  { %6770 = vmatprep.subr.bf16.mxu0 %v7276_v53  ;;  %v477_v56 = vpack.c.bf16 %v464_v55, %v461_v48 }
 0x1a2   :  { %5732 = vmatmul.mubr.msk.bf16.gmra.mxu0 %vm504_vm3, %v476_v52 }
 0x1a3   :  { %576 = vmatprep.mubr.bf16.mxu0 %v7594_v25  ;;  %6771 = vmatpush3.bf16.msra.mxu0 %v7276_v53 }
 0x1a4   :  { %6772 = vmatprep.subr.bf16.mxu0 %v7277_v54 }
 0x1a7   :  { %6773 = vmatpush3.bf16.msra.mxu0 %v7277_v54 }
 0x1a8   :  { %6774 = vmatprep.subr.bf16.mxu0 %v7278_v57 }
 0x1aa   :  { %5733 = vmatmul.mubr.msk.bf16.gmra.mxu0 %vm504_vm3, %v477_v56 }
 0x1ab   :  { %586 = vmatprep.mubr.bf16.mxu0 %v7594_v25  ;;  %6775 = vmatpush3.bf16.msra.mxu0 %v7278_v57 }
 0x1ac   :  { %6829 = vmatprep.subr.msk.bf16.mxu0 %vm300_vm0, %v7279_v58 }
 0x1b2   :  { %5734 = vmatmul.mubr.msk.bf16.gmra.mxu0 %vm504_vm3, %v478_v60  ;;  %v1064_v60 = vrot.slane %v5777_v9, %v7815_v20 }
 0x1b3   :  { %6776 = vmatprep.mubr.msk.bf16.mxu0 %vm287_vm1, %v6865_v59 }
 0x1ba   :  { %6777 = vmatmul.mubr.msk.bf16.vlgmr.msra.gmra.mxu0 %vm287_vm1, %v6866_v61 }
 0x1bb   :  { %6785 = vmatpush3.bf16.msra.mxu0 %v7765_v2  ;;  %6780 = vmatprep.mubr.msk.bf16.mxu0 %vm287_vm1, %v6867_v62  ;;  %v6871_v2 = vld [vmem:[%s9503_s5 + $0x64] sm:$0xff]  }
 0x1bc   :  { %6786 = vmatprep.subr.bf16.mxu0 %v7275_v50 }
 0x1bf   :  { %6787 = vmatpush3.bf16.msra.mxu0 %v7275_v50 }
 0x1c0   :  { %6788 = vmatprep.subr.bf16.mxu0 %v7276_v53 }
 0x1c2   :  { %6781 = vmatmul.mubr.msk.bf16.gmra.mxu0 %vm287_vm1, %v6868_v63 }
 0x1c3   :  { %6789 = vmatpush3.bf16.msra.mxu0 %v7276_v53  ;;  %6794 = vmatprep.mubr.msk.bf16.mxu0 %vm287_vm1, %v6869_v0  ;;  %v1085_v0 = vsel %vm517_vm2, %v1064_v60, 0 }
 0x1c4   :  { %6790 = vmatprep.subr.bf16.mxu0 %v7277_v54 }
 0x1c7   :  { %6791 = vmatpush3.bf16.msra.mxu0 %v7277_v54 }
 0x1c8   :  { %6792 = vmatprep.subr.bf16.mxu0 %v7278_v57 }
 0x1cb   :  { %6793 = vmatpush3.bf16.msra.mxu0 %v7278_v57 }
 0x1ce   :  { %6795 = vmatmul.mubr.msk.bf16.vlgmr.msra.gmra.mxu0 %vm287_vm1, %v6870_v1 }
 0x1cf   :  { %6798 = vmatprep.mubr.msk.bf16.mxu0 %vm287_vm1, %v6871_v2 }
 0x1d6   :  { %6799 = vmatmul.mubr.msk.bf16.gmra.mxu0 %vm287_vm1, %v6872_v3  ;;  %vm5030_vm1 = vcmask 64512  }
 0x1d7   :  { %1565 = vmatprep.mubr.bf16.mxu0 %v7594_v25 }
 0x246   :  { %v670_v12 = vpop.f32.mrf.mxu1 }
 0x248   :  { %v672_v13 = vpop.f32.mrf.mxu1 }
 0x24a   :  { %v674_v14 = vpop.f32.mrf.mxu1 }
 0x24c   :  { %v7901_v15 = vpop.f32.mrf.mxu1 }
 0x24e   :  { %v680_v16 = vpop.f32.mrf.mxu1 }
 0x250   :  { %v682_v17 = vpop.f32.mrf.mxu1 }
 0x252   :  { %v684_v19 = vpop.f32.mrf.mxu1 }
 0x254   :  { %v7903_v21 = vpop.f32.mrf.mxu1 }
 0x256   :  { %v690_v22 = vpop.f32.mrf.mxu1 }
 0x258   :  { %v692_v23 = vpop.f32.mrf.mxu1 }
 0x25a   :  { %v558_v24 = vpop.f32.mrf.mxu0  ;;  %v694_v26 = vpop.f32.mrf.mxu1 }
 0x25b   :  { %v7905_v27 = vadd.f32 %v670_v12, %v558_v24 }
 0x25c   :  { %v560_v28 = vpop.f32.mrf.mxu0  ;;  %v7907_v29 = vpop.f32.mrf.mxu1 }
 0x25d   :  { %v7909_v30 = vadd.f32 %v672_v13, %v560_v28  ;;  %v6875_v28 = vld [vmem:[%s9476_s8 + $0x174] ss:$8 sps:$4 sm:$0xff]  }
 0x25e   :  { %v562_v31 = vpop.f32.mrf.mxu0  ;;  %v700_v32 = vpop.f32.mrf.mxu1 }
 0x25f   :  { %v7911_v33 = vadd.f32 %v674_v14, %v562_v31  ;;  %v6873_v31 = vld [vmem:[%s9476_s8 + $0x170] ss:$8 sps:$4 sm:$0xff]  }
 0x260   :  { %v7913_v34 = vpop.f32.mrf.mxu0  ;;  %v702_v35 = vpop.f32.mrf.mxu1 }
 0x262   :  { %v568_v36 = vpop.f32.mrf.mxu0  ;;  %v704_v37 = vpop.f32.mrf.mxu1 }
 0x263   :  { %v7915_v38 = vadd.f32 %v680_v16, %v568_v36  ;;  %v6878_v36 = vld [vmem:[%s9476_s8 + $0x164] ss:$8 sps:$4 sm:$0xff]   ;;  %v6876_v37 = vld [vmem:[%s9476_s8 + $0x160] ss:$8 sps:$4 sm:$0xff]  }
 0x264   :  { %v570_v39 = vpop.f32.mrf.mxu0  ;;  %v705_v40 = vpop.f32.mrf.mxu1 }
 0x265   :  { %v7917_v41 = vadd.f32 %v682_v17, %v570_v39 }
 0x266   :  { %v572_v42 = vpop.f32.mrf.mxu0 }
 0x267   :  { %v7919_v43 = vadd.f32 %v684_v19, %v572_v42  ;;  %v6881_v42 = vld [vmem:[%s9476_s8 + $0x154] ss:$8 sps:$4 sm:$0xff]  }
 0x268   :  { %v7921_v44 = vpop.f32.mrf.mxu0 }
 0x26a   :  { %v578_v45 = vpop.f32.mrf.mxu0 }
 0x26b   :  { %v7923_v46 = vadd.f32 %v690_v22, %v578_v45  ;;  %v6879_v45 = vld [vmem:[%s9476_s8 + $0x150] ss:$8 sps:$4 sm:$0xff]  }
 0x26c   :  { %v580_v47 = vpop.f32.mrf.mxu0 }
 0x26d   :  { %v7925_v48 = vadd.f32 %v692_v23, %v580_v47 }
 0x26e   :  { %v582_v49 = vpop.f32.mrf.mxu0 }
 0x26f   :  { %v7927_v50 = vadd.f32 %v694_v26, %v582_v49 }
 0x270   :  { %v7929_v51 = vpop.f32.mrf.mxu0 }
 0x272   :  { %v588_v52 = vpop.f32.mrf.mxu0 }
 0x273   :  { %v7931_v53 = vadd.f32 %v700_v32, %v588_v52  ;;  %v6884_v52 = vld [vmem:[%s9476_s8 + $0x144] ss:$8 sps:$4 sm:$0xff]  }
 0x274   :  { %v590_v54 = vpop.f32.mrf.mxu0 }
 0x275   :  { %v7933_v55 = vadd.f32 %v702_v35, %v590_v54  ;;  %v6882_v54 = vld [vmem:[%s9476_s8 + $0x140] ss:$8 sps:$4 sm:$0xff]  }
 0x276   :  { %v592_v56 = vpop.f32.mrf.mxu0 }
 0x278   :  { %v593_v57 = vpop.f32.mrf.mxu0 }
 0x27a   :  { %v6778_v58 = vpop.f32.mrf.mxu0 }
 0x27c   :  { %v779_v59 = vpop.f32.mrf.mxu0 }
 0x27e   :  { %v6779_v61 = vpop.f32.mrf.mxu0 }
 0x27f   :  { %v810_v4 = vpack.c.bf16 %v6779_v61, %v6778_v58  ;;  %v6887_v58 = vld [vmem:[%s9476_s8 + $0x134] ss:$8 sps:$4 sm:$0xff]  }
 0x280   :  { %v782_v62 = vpop.f32.mrf.mxu0 }
 0x281   :  { %v809_v63 = vpack.c.bf16 %v782_v62, %v779_v59  ;;  %v6885_v59 = vld [vmem:[%s9476_s8 + $0x130] ss:$8 sps:$4 sm:$0xff]   ;;  %v6890_v62 = vld [vmem:[%s9476_s8 + $0x124] ss:$8 sps:$4 sm:$0xff]  }
 0x282   :  { %v6782_v1 = vpop.f32.mrf.mxu0 }
 0x283   :  { %5758 = vmatmul.mubr.msk.bf16.vlgmr.msra.gmra.mxu1 %vm504_vm3, %v809_v63  ;;  %v812_v12 = vpack.c.bf16 %v6782_v1, %v6782_v1  ;;  %v6888_v63 = vld [vmem:[%s9476_s8 + $0x120] ss:$8 sps:$4 sm:$0xff]  }
 0x284   :  { %v795_v2 = vpop.f32.mrf.mxu0  ;;  %898 = vmatprep.mubr.bf16.mxu1 %v7594_v25  ;;  %1105 = vmatpush1.bf16.msra.mxu1 %v1085_v0 }
 0x285   :  { %1893 = vmatprep.subr.bf16.mxu1 %v6875_v28 }
 0x286   :  { %v6783_v3 = vpop.f32.mrf.mxu0 }
 0x287   :  { %v8008_v3 = vsub.s32 0, %v7812_v18 }
 0x288   :  { %v798_v5 = vpop.f32.mrf.mxu0 }
 0x289   :  { %v811_v7 = vpack.c.bf16 %v798_v5, %v795_v2  ;;  %v6893_v2 = vld [vmem:[%s9476_s8 + $0x114] ss:$8 sps:$4 sm:$0xff]  }
 0x28b   :  { %5759 = vmatmul.mubr.msk.bf16.gmra.mxu1 %vm504_vm3, %v810_v4  ;;  %v6891_v4 = vld [vmem:[%s9476_s8 + $0x110] ss:$8 sps:$4 sm:$0xff]  }
 0x28c   :  { %908 = vmatprep.mubr.bf16.mxu1 %v7594_v25 }
 0x28e   :  { %v6796_v20 = vpop.f32.mrf.mxu0 }
 0x290   :  { %v1013_v6 = vpop.f32.mrf.mxu0 }
 0x292   :  { %v6797_v8 = vpop.f32.mrf.mxu0 }
 0x293   :  { %5760 = vmatmul.mubr.msk.bf16.gmra.mxu1 %vm504_vm3, %v811_v7  ;;  %v1044_v16 = vpack.c.bf16 %v6797_v8, %v6796_v20  ;;  %v1175_v20 = vld [vmem:[#allocation5] sm:$0x3]  ;;  %v8015_v7 = vsub.s32 1, %v7812_v18  ;;  %v677_v18 = vadd.f32 %v7901_v15, %v7913_v34  ;;  %v6897_v15 = vld [vmem:[%s9476_s8 + $0x1f0] ss:$8 sps:$4 sm:$0xff]  }
 0x294   :  { %918 = vmatprep.mubr.bf16.mxu1 %v7594_v25  ;;  %v1016_v9 = vpop.f32.mrf.mxu0 }
 0x295   :  { %v1043_v14 = vpack.c.bf16 %v1016_v9, %v1013_v6  ;;  %v6896_v9 = vld [vmem:[%s9476_s8 + $0x104] ss:$8 sps:$4 sm:$0xff]  }
 0x296   :  { %v6800_v10 = vpop.f32.mrf.mxu0 }
 0x297   :  { %v1046_v22 = vpack.c.bf16 %v6800_v10, %v6800_v10 }
 0x298   :  { %v1029_v11 = vpop.f32.mrf.mxu0 }
 0x29a   :  { %v6801_v13 = vpop.f32.mrf.mxu0 }
 0x29b   :  { %5761 = vmatmul.mubr.msk.bf16.gmra.mxu1 %vm504_vm3, %v812_v12  ;;  %v6894_v12 = vld [vmem:[%s9476_s8 + $0x100] ss:$8 sps:$4 sm:$0xff]  }
 0x29c   :  { %1122 = vmatprep.mubr.bf16.mxu1 %v7594_v25  ;;  %v1032_v17 = vpop.f32.mrf.mxu0 }
 0x29d   :  { %v1045_v19 = vpack.c.bf16 %v1032_v17, %v1029_v11  ;;  %v8021_v11 = vrot.slane %v1175_v20, %v8008_v3  ;;  %v8031_v17 = vrot.slane %v1175_v20, %v8015_v7 }
 0x2a3   :  { %5779 = vmatmul.mubr.msk.bf16.vlgmr.msra.gmra.mxu1 %vm504_vm3, %v1043_v14 }
 0x2a4   :  { %1132 = vmatprep.mubr.bf16.mxu1 %v7594_v25  ;;  %1894 = vmatpush1.bf16.msra.mxu1 %v6873_v31 }
 0x2a5   :  { %1895 = vmatprep.subr.bf16.mxu1 %v6878_v36 }
 0x2a8   :  { %1896 = vmatpush1.bf16.msra.mxu1 %v6876_v37  ;;  %v6902_v37 = vld [vmem:[%s9476_s8 + $0x1e4] ss:$8 sps:$4 sm:$0xff]  }
 0x2a9   :  { %1897 = vmatprep.subr.bf16.mxu1 %v6881_v42 }
 0x2ab   :  { %5780 = vmatmul.mubr.msk.bf16.gmra.mxu1 %vm504_vm3, %v1044_v16 }
 0x2ac   :  { %1142 = vmatprep.mubr.bf16.mxu1 %v7594_v25  ;;  %1898 = vmatpush1.bf16.msra.mxu1 %v6879_v45 }
 0x2ad   :  { %1899 = vmatprep.subr.bf16.mxu1 %v6884_v52 }
 0x2b0   :  { %1900 = vmatpush1.bf16.msra.mxu1 %v6882_v54 }
 0x2b1   :  { %1901 = vmatprep.subr.bf16.mxu1 %v6887_v58 }
 0x2b3   :  { %5781 = vmatmul.mubr.msk.bf16.gmra.mxu1 %vm504_vm3, %v1045_v19 }
 0x2b4   :  { %1152 = vmatprep.mubr.bf16.mxu1 %v7594_v25  ;;  %1902 = vmatpush1.bf16.msra.mxu1 %v6885_v59 }
 0x2b5   :  { %1903 = vmatprep.subr.bf16.mxu1 %v6890_v62 }
 0x2b8   :  { %1904 = vmatpush1.bf16.msra.mxu1 %v6888_v63 }
 0x2b9   :  { %1905 = vmatprep.subr.bf16.mxu1 %v6893_v2 }
 0x2bb   :  { %5782 = vmatmul.mubr.msk.bf16.gmra.mxu1 %vm504_vm3, %v1046_v22  ;;  %v6899_v22 = vld [vmem:[%s9476_s8 + $0x1f4] ss:$8 sps:$4 sm:$0xff]   ;;  %vm5623_vm3 = vcmask 523264  }
 0x2bc   :  { %1906 = vmatpush1.bf16.msra.mxu1 %v6891_v4 }
 0x2bd   :  { %1907 = vmatprep.subr.bf16.mxu1 %v6896_v9 }
 0x2c0   :  { %1908 = vmatpush1.bf16.msra.mxu1 %v6894_v12 }
 0x2c1   :  { %1909 = vmatprep.subr.bf16.mxu1 %v6899_v22 }
 0x2c4   :  { %1910 = vmatpush2.bf16.msra.mxu1 %v6897_v15 }
 0x2c5   :  { %1911 = vmatprep.subr.bf16.mxu1 %v6902_v37 }
 0x343   :  { %v890_v23 = vpop.f32.mrf.mxu1 }
 0x344   :  { %v927_v6 = vadd.f32 %v890_v23, %v7905_v27 }
 0x345   :  { %v892_v24 = vpop.f32.mrf.mxu1 }
 0x346   :  { %v928_v13 = vadd.f32 %v892_v24, %v7909_v30 }
 0x347   :  { %v894_v26 = vpop.f32.mrf.mxu1 }
 0x348   :  { %v929_v14 = vadd.f32 %v894_v26, %v7911_v33 }
 0x349   :  { %v896_v32 = vpop.f32.mrf.mxu1 }
 0x34a   :  { %v930_v23 = vadd.f32 %v896_v32, %v677_v18 }
 0x34b   :  { %v900_v35 = vpop.f32.mrf.mxu1 }
 0x34c   :  { %v931_v34 = vadd.f32 %v900_v35, %v7915_v38 }
 0x34d   :  { %v902_v39 = vpop.f32.mrf.mxu1 }
 0x34e   :  { %v932_v31 = vadd.f32 %v902_v39, %v7917_v41  ;;  %v6900_v41 = vld [vmem:[%s9476_s8 + $0x1e0] ss:$8 sps:$4 sm:$0xff]   ;;  %v687_v39 = vadd.f32 %v7903_v21, %v7921_v44 }
 0x34f   :  { %v7964_v40 = vpop.f32.mrf.mxu1  ;;  %1912 = vmatpush2.bf16.msra.mxu1 %v6900_v41 }
 0x350   :  { %v933_v52 = vadd.f32 %v7964_v40, %v7919_v43  ;;  %v6905_v43 = vld [vmem:[%s9476_s8 + $0x1d4] ss:$8 sps:$4 sm:$0xff]  }
 0x351   :  { %v7972_v47 = vpop.f32.mrf.mxu1  ;;  %1913 = vmatprep.subr.bf16.mxu1 %v6905_v43 }
 0x352   :  { %v934_v44 = vadd.f32 %v7972_v47, %v687_v39 }
 0x353   :  { %v7974_v49 = vpop.f32.mrf.mxu1 }
 0x354   :  { %v935_v20 = vadd.f32 %v7974_v49, %v7923_v46 }
 0x355   :  { %v7982_v56 = vpop.f32.mrf.mxu1 }
 0x356   :  { %v936_v46 = vadd.f32 %v7982_v56, %v7925_v48  ;;  %v697_v48 = vadd.f32 %v7907_v29, %v7929_v51  ;;  %v6911_v29 = vld [vmem:[%s9476_s8 + $0x1b4] ss:$8 sps:$4 sm:$0xff]  }
 0x357   :  { %v7984_v57 = vpop.f32.mrf.mxu1 }
 0x358   :  { %v937_v56 = vadd.f32 %v7984_v57, %v7927_v50 }
 0x359   :  { %v7992_v60 = vpop.f32.mrf.mxu1 }
 0x35a   :  { %v938_v51 = vadd.f32 %v7992_v60, %v697_v48  ;;  %v6914_v60 = vld [vmem:[%s9476_s8 + $0x1a4] ss:$8 sps:$4 sm:$0xff]  }
 0x35b   :  { %v7994_v61 = vpop.f32.mrf.mxu1 }
 0x35d   :  { %v8002_v0 = vpop.f32.mrf.mxu1 }
 0x35f   :  { %v924_v1 = vpop.f32.mrf.mxu1 }
 0x361   :  { %v925_v5 = vpop.f32.mrf.mxu1 }
 0x362   :  { %v6903_v5 = vld [vmem:[%s9476_s8 + $0x1d0] ss:$8 sps:$4 sm:$0xff]  }
 0x363   :  { %v1124_v8 = vpop.f32.mrf.mxu1  ;;  %1914 = vmatpush2.bf16.msra.mxu1 %v6903_v5 }
 0x364   :  { %v1161_v10 = vadd.f32 %v1124_v8, %v927_v6 }
 0x365   :  { %v1126_v27 = vpop.f32.mrf.mxu1 }
 0x366   :  { %v1162_v16 = vadd.f32 %v1126_v27, %v928_v13  ;;  %v8037_v30 = vadd.f32 %v8021_v11, %v1161_v10  ;;  %v6908_v13 = vld [vmem:[%s9476_s8 + $0x1c4] ss:$8 sps:$4 sm:$0xff]  }
 0x367   :  { %v1128_v19 = vpop.f32.mrf.mxu1  ;;  %1915 = vmatprep.subr.bf16.mxu1 %v6908_v13 }
 0x368   :  { %v1163_v24 = vadd.f32 %v1128_v19, %v929_v14  ;;  %v8048_v32 = vadd.f32 %v8031_v17, %v1162_v16  ;;  %v1201_v42 = vmax.f32 %v8037_v30, 0.0  ;;  %v6906_v19 = vld [vmem:[%s9476_s8 + $0x1c0] ss:$8 sps:$4 sm:$0xff]  }
 0x369   :  { %v1130_v33 = vpop.f32.mrf.mxu1  ;;  %1916 = vmatpush2.bf16.msra.mxu1 %v6906_v19 }
 0x36a   :  { %v8044_v26 = vadd.f32 %v8021_v11, %v1163_v24  ;;  %v1164_v28 = vadd.f32 %v1130_v33, %v930_v23  ;;  %v1202_v1 = vmax.f32 %v8048_v32, 0.0  ;;  %1917 = vmatprep.subr.bf16.mxu1 %v6911_v29 }
 0x36b   :  { %v1134_v36 = vpop.f32.mrf.mxu1 }
 0x36c   :  { %v1203_v45 = vmax.f32 %v8044_v26, 0.0  ;;  %v8056_v38 = vadd.f32 %v8031_v17, %v1164_v28  ;;  %v1165_v35 = vadd.f32 %v1134_v36, %v931_v34  ;;  %v939_v36 = vadd.f32 %v7994_v61, %v7931_v53  ;;  %v6912_v53 = vld [vmem:[%s9476_s8 + $0x1a0] ss:$8 sps:$4 sm:$0xff]  }
 0x36d   :  { %v1136_v54 = vpop.f32.mrf.mxu1  ;;  %v940_v61 = vadd.f32 %v8002_v0, %v7933_v55  ;;  %v6915_v55 = vld [vmem:[%s9476_s8 + $0x190] ss:$8 sps:$4 sm:$0xff]  }
 0x36e   :  { %v1215_v58 = vadd.f32 %v1203_v45, %v1201_v42  ;;  %v1204_v59 = vmax.f32 %v8056_v38, 0.0  ;;  %v8071_v62 = vadd.f32 %v8021_v11, %v1165_v35  ;;  %v1166_v63 = vadd.f32 %v1136_v54, %v932_v31  ;;  %v6909_v31 = vld [vmem:[%s9476_s8 + $0x1b0] ss:$8 sps:$4 sm:$0xff]  }
 0x36f   :  { %v1138_v21 = vpop.f32.mrf.mxu1  ;;  %1918 = vmatpush2.bf16.msra.mxu1 %v6909_v31 }
 0x370   :  { %v1205_v40 = vmax.f32 %v8071_v62, 0.0  ;;  %v8080_v2 = vadd.f32 %v8031_v17, %v1166_v63  ;;  %v1167_v4 = vadd.f32 %v1138_v21, %v933_v52  ;;  %v1229_v6 = vadd.f32 %v1204_v59, %v1202_v1  ;;  %1919 = vmatprep.subr.bf16.mxu1 %v6914_v60  ;;  %v6917_v63 = vld [vmem:[%s9476_s8 + $0x194] ss:$8 sps:$4 sm:$0xff]  }
 0x371   :  { %v1140_v8 = vpop.f32.mrf.mxu1 }
 0x372   :  { %v1216_v47 = vadd.f32 %v1215_v58, %v1205_v40  ;;  %v1206_v9 = vmax.f32 %v8080_v2, 0.0  ;;  %v8095_v10 = vadd.f32 %v8021_v11, %v1167_v4  ;;  %v1168_v12 = vadd.f32 %v1140_v8, %v934_v44 }
 0x373   :  { %v1144_v49 = vpop.f32.mrf.mxu1  ;;  %1920 = vmatpush2.bf16.msra.mxu1 %v6912_v53 }
 0x374   :  { %v1230_v27 = vadd.f32 %v1229_v6, %v1206_v9  ;;  %v1207_v18 = vmax.f32 %v8095_v10, 0.0  ;;  %v8106_v14 = vadd.f32 %v8031_v17, %v1168_v12  ;;  %v1169_v16 = vadd.f32 %v1144_v49, %v935_v20  ;;  %1921 = vmatprep.subr.bf16.mxu1 %v6917_v63  ;;  %v6920_v12 = vld [vmem:[%s9476_s8 + $0x184] ss:$8 sps:$4 sm:$0xff]  }
 0x375   :  { %v1146_v22 = vpop.f32.mrf.mxu1 }
 0x376   :  { %v1217_v23 = vadd.f32 %v1216_v47, %v1207_v18  ;;  %v1208_v24 = vmax.f32 %v8106_v14, 0.0  ;;  %v8119_v15 = vadd.f32 %v8021_v11, %v1169_v16  ;;  %v1170_v33 = vadd.f32 %v1146_v22, %v936_v46  ;;  %v6918_v16 = vld [vmem:[%s9476_s8 + $0x180] ss:$8 sps:$4 sm:$0xff]  }
 0x377   :  { %v1148_v34 = vpop.f32.mrf.mxu1  ;;  %1922 = vmatpush2.bf16.msra.mxu1 %v6915_v55 }
 0x378   :  { %v1209_v50 = vmax.f32 %v8119_v15, 0.0  ;;  %v8127_v57 = vadd.f32 %v8031_v17, %v1170_v33  ;;  %v1171_v28 = vadd.f32 %v1148_v34, %v937_v56  ;;  %v1231_v37 = vadd.f32 %v1230_v27, %v1208_v24  ;;  %1923 = vmatprep.subr.bf16.mxu1 %v6920_v12 }
 0x379   :  { %v1150_v35 = vpop.f32.mrf.mxu1 }
 0x37a   :  { %v1218_v41 = vadd.f32 %v1217_v23, %v1209_v50  ;;  %v1210_v39 = vmax.f32 %v8127_v57, 0.0  ;;  %v1197_v52 = vadd.f32 %v8021_v11, %v1171_v28  ;;  %v1172_v54 = vadd.f32 %v1150_v35, %v938_v51 }
 0x37b   :  { %v1154_v58 = vpop.f32.mrf.mxu1  ;;  %1924 = vmatpush2.bf16.msra.mxu1 %v6918_v16 }
 0x37c   :  { %v1232_v21 = vadd.f32 %v1231_v37, %v1210_v39  ;;  %v1211_v43 = vmax.f32 %v1197_v52, 0.0  ;;  %v8154_v44 = vadd.f32 %v8031_v17, %v1172_v54  ;;  %v1173_v4 = vadd.f32 %v1154_v58, %v939_v36 }
 0x37d   :  { %v1156_v5 = vpop.f32.mrf.mxu1 }
 0x37e   :  { %v1219_v20 = vadd.f32 %v1218_v41, %v1211_v43  ;;  %v1199_v6 = vadd.f32 %v8021_v11, %v1173_v4  ;;  %v1174_v8 = vadd.f32 %v1156_v5, %v940_v61  ;;  %v1212_v0 = vmax.f32 %v8154_v44, 0.0 }
 0x37f   :  { %v1158_v47 = vpop.f32.mrf.mxu1 }
 0x380   :  { %v1213_v46 = vmax.f32 %v1199_v6, 0.0  ;;  %v1200_v49 = vadd.f32 %v8031_v17, %v1174_v8  ;;  %v1233_v19 = vadd.f32 %v1232_v21, %v1212_v0 }
 0x381   :  { %v1159_v13 = vpop.f32.mrf.mxu1 }
 0x382   :  { %v1221_v11 = vsel %vm1220_vm4, %v1213_v46, 0.0  ;;  %v1214_v27 = vmax.f32 %v1200_v49, 0.0 }
 0x383   :  { %v1222_v48 = vadd.f32 %v1221_v11, %v1219_v20 }
 0x384   :  { %v1234_v56 = vsel %vm1220_vm4, %v1214_v27, 0.0 }
 0x385   :  { %v1223_v22 = vrot.slane %v1222_v48, 4  ;;  %v1235_v23 = vadd.f32 %v1234_v56, %v1233_v19 }
 0x387   :  { %v1224_v33 = vadd.f32 %v1223_v22, %v1222_v48  ;;  %v1236_v34 = vrot.slane %v1235_v23, 4 }
 0x389   :  { %v1225_v17 = vrot.slane %v1224_v33, 2  ;;  %v1237_v29 = vadd.f32 %v1236_v34, %v1235_v23 }
 0x38b   :  { %v1226_v51 = vadd.f32 %v1225_v17, %v1224_v33  ;;  %v1238_v28 = vrot.slane %v1237_v29, 2 }
 0x38d   :  { %v1227_v31 = vrot.slane %v1226_v51, 1  ;;  %v1239_v36 = vadd.f32 %v1238_v28, %v1237_v29 }
 0x38f   :  { %v1228_v37 = vadd.f32 %v1227_v31, %v1226_v51  ;;  %v1240_v35 = vrot.slane %v1239_v36, 1 }
 0x391   :  { %v1243_v60 = vmul.f32 0.02, %v1228_v37  ;;  %v1241_v41 = vadd.f32 %v1240_v35, %v1239_v36 }
 0x393   :  { %v8172_v52 = vsub.f32 %v1201_v42, %v1243_v60  ;;  %v8176_v54 = vsub.f32 %v1203_v45, %v1243_v60  ;;  %v8180_v53 = vsub.f32 %v1205_v40, %v1243_v60  ;;  %v8184_v61 = vsub.f32 %v1207_v18, %v1243_v60 }
 0x394   :  { %v8188_v58 = vsub.f32 %v1209_v50, %v1243_v60  ;;  %v8190_v63 = vsub.f32 %v1211_v43, %v1243_v60  ;;  %v8192_v30 = vsub.f32 %v1213_v46, %v1243_v60  ;;  %v1244_v42 = vmul.f32 0.02, %v1241_v41 }
 0x395   :  { %v1259_v26 = vmul.f32 %v8172_v52, %v8172_v52  ;;  %v1261_v45 = vmul.f32 %v8176_v54, %v8176_v54  ;;  %v1263_v40 = vmul.f32 %v8180_v53, %v8180_v53  ;;  %v1265_v50 = vmul.f32 %v8184_v61, %v8184_v61 }
 0x396   :  { %v8200_v62 = vsub.f32 %v1202_v1, %v1244_v42  ;;  %v8206_v18 = vsub.f32 %v1204_v59, %v1244_v42  ;;  %v8210_v15 = vsub.f32 %v1206_v9, %v1244_v42  ;;  %v8216_v32 = vsub.f32 %v1210_v39, %v1244_v42 }
 0x397   :  { %v1273_v10 = vadd.f32 %v1261_v45, %v1259_v26  ;;  %v8218_v1 = vsub.f32 %v1214_v27, %v1244_v42  ;;  %v8222_v43 = vsub.f32 %v1208_v24, %v1244_v42  ;;  %v1267_v2 = vmul.f32 %v8188_v58, %v8188_v58 }
 0x398   :  { %v1260_v38 = vmul.f32 %v8200_v62, %v8200_v62  ;;  %v1262_v59 = vmul.f32 %v8206_v18, %v8206_v18  ;;  %v1264_v9 = vmul.f32 %v8210_v15, %v8210_v15  ;;  %v1303_v44 = vmul.f32 %v8200_v62, %v8172_v52 }
 0x399   :  { %v1274_v21 = vadd.f32 %v1273_v10, %v1263_v40  ;;  %v1304_v14 = vmul.f32 %v8206_v18, %v8176_v54  ;;  %v1269_v24 = vmul.f32 %v8190_v63, %v8190_v63  ;;  %v1271_v4 = vmul.f32 %v8192_v30, %v8192_v30 }
 0x39a   :  { %v1286_v39 = vadd.f32 %v1262_v59, %v1260_v38  ;;  %v8240_v20 = vsub.f32 %v1212_v0, %v1244_v42  ;;  %v1266_v6 = vmul.f32 %v8222_v43, %v8222_v43  ;;  %v1305_v55 = vmul.f32 %v8210_v15, %v8180_v53 }
 0x39b   :  { %v1275_v57 = vadd.f32 %v1274_v21, %v1265_v50  ;;  %v1310_v47 = vadd.f32 %v1304_v14, %v1303_v44  ;;  %v1268_v46 = vmul.f32 %v8216_v32, %v8216_v32  ;;  %v1278_v13 = vsel %vm1220_vm4, %v1271_v4, 0.0 }
 0x39c   :  { %v1287_v8 = vadd.f32 %v1286_v39, %v1264_v9  ;;  %v1272_v11 = vmul.f32 %v8218_v1, %v8218_v1  ;;  %v1306_v0 = vmul.f32 %v8222_v43, %v8184_v61  ;;  %v1270_v19 = vmul.f32 %v8240_v20, %v8240_v20 }
 0x39d   :  { %v1276_v5 = vadd.f32 %v1275_v57, %v1267_v2  ;;  %v1311_v27 = vadd.f32 %v1310_v47, %v1305_v55  ;;  %v1307_v56 = vmul.f32 %v8216_v32, %v8188_v58  ;;  %v1309_v34 = vmul.f32 %v8218_v1, %v8192_v30 }
 0x39e   :  { %v1288_v49 = vadd.f32 %v1287_v8, %v1266_v6  ;;  %v1291_v17 = vsel %vm1220_vm4, %v1272_v11, 0.0  ;;  %v1308_v29 = vmul.f32 %v8240_v20, %v8190_v63 }
 0x39f   :  { %v1277_v12 = vadd.f32 %v1276_v5, %v1269_v24  ;;  %v1312_v22 = vadd.f32 %v1311_v27, %v1306_v0  ;;  %v1315_v60 = vsel %vm1220_vm4, %v1309_v34, 0.0 }
 0x3a0   :  { %v1289_v48 = vadd.f32 %v1288_v49, %v1268_v46 }
 0x3a1   :  { %v1279_v16 = vadd.f32 %v1278_v13, %v1277_v12  ;;  %v1313_v51 = vadd.f32 %v1312_v22, %v1307_v56 }
 0x3a2   :  { %v1290_v33 = vadd.f32 %v1289_v48, %v1270_v19 }
 0x3a3   :  { %v1280_v23 = vrot.slane %v1279_v16, 4  ;;  %v1314_v36 = vadd.f32 %v1313_v51, %v1308_v29  ;;  %v1406_v51 = vld [vmem:[#allocation7] sm:$0x3] }
 0x3a4   :  { %v1292_v31 = vadd.f32 %v1291_v17, %v1290_v33 }
 0x3a5   :  { %v1281_v28 = vadd.f32 %v1280_v23, %v1279_v16  ;;  %v1316_v41 = vadd.f32 %v1315_v60, %v1314_v36  ;;  %v1472_v60 = vld [vmem:[#allocation10] sm:$0x3] }
 0x3a6   :  { %v1293_v35 = vrot.slane %v1292_v31, 4 }
 0x3a7   :  { %v1282_v37 = vrot.slane %v1281_v28, 2  ;;  %v1317_v45 = vrot.slane %v1316_v41, 4 }
 0x3a8   :  { %v1294_v26 = vadd.f32 %v1293_v35, %v1292_v31  ;;  %v1432_v31 = vld [vmem:[#allocation8] sm:$0x3] }
 0x3a9   :  { %v1283_v42 = vadd.f32 %v1282_v37, %v1281_v28  ;;  %v1318_v50 = vadd.f32 %v1317_v45, %v1316_v41  ;;  %v8264_v41 = vrot.slane %v1406_v51, %v8015_v7 }
 0x3aa   :  { %v1295_v10 = vrot.slane %v1294_v26, 2 }
 0x3ab   :  { %v1284_v40 = vrot.slane %v1283_v42, 1  ;;  %v1319_v59 = vrot.slane %v1318_v50, 2 }
 0x3ac   :  { %v1296_v38 = vadd.f32 %v1295_v10, %v1294_v26  ;;  %v8279_v10 = vrot.slane %v1472_v60, %v8015_v7 }
 0x3ad   :  { %v1285_v21 = vadd.f32 %v1284_v40, %v1283_v42  ;;  %v1320_v9 = vadd.f32 %v1319_v59, %v1318_v50  ;;  %v8276_v40 = vrot.slane %v1432_v31, %v8015_v7  ;;  %v8282_v50 = vrot.slane %v1406_v51, %v8008_v3 }
 0x3ae   :  { %v1297_v2 = vrot.slane %v1296_v38, 1 }
 0x3af   :  { %v1299_v57 = vmul.f32 0.02, %v1285_v21  ;;  %v1321_v44 = vrot.slane %v1320_v9, 1  ;;  %v8285_v21 = vrot.slane %v1432_v31, %v8008_v3 }
 0x3b0   :  { %v1298_v39 = vadd.f32 %v1297_v2, %v1296_v38  ;;  %v8288_v38 = vrot.slane %v1472_v60, %v8008_v3 }
 0x3b1   :  { %v1322_v24 = vadd.f32 %v1321_v44, %v1320_v9  ;;  %v1301_v4 = vadd.f32 1e-05, %v1299_v57 }
 0x3b2   :  { %v1300_v14 = vmul.f32 0.02, %v1298_v39 }
 0x3b3   :  { %v1323_v6 = vmul.f32 0.02, %v1322_v24 }
 0x3b4   :  { %v1302_v5 = vadd.f32 1e-05, %v1300_v14 }
 0x3b5   :  { %v1325_v55 = vmul.f32 %v1323_v6, %v1323_v6  ;;  %v1350_v29 = vsub.f32 0.0, %v1323_v6 }
 0x3b6   :  { %v1324_v8 = vmul.f32 %v1302_v5, %v1301_v4  ;;  %v1334_v0 = vadd.f32 %v1302_v5, %v1301_v4 }
 0x3b8   :  { %v1326_v47 = vsub.f32 %v1324_v8, %v1325_v55 }
 0x3ba   :  { %7261 = vrsqrt.f32 %v1326_v47  ;;  %vm1329_vm5 = vcmp.eq.f32.partialorder %v1326_v47, inf  ;;  %v1332_v49 = vand.u32 2147483648, %v1326_v47  ;;  %vm1331_vm6 = vcmp.eq.f32.partialorder %v1326_v47, 0.0 }
 0x3c7   :  { %v7262_v12 = vpop.eup %7261 }
 0x3c8   :  { %v1328_v46 = vmul.f32 %v7262_v12, %v1326_v47 }
 0x3ca   :  { %v1330_v13 = vsel %vm1329_vm5, %v1326_v47, %v1328_v46  ;;  %vm5678_vm5 = vcmask 74752  }
 0x3cb   :  { %v1333_v11 = vsel %vm1331_vm6, %v1332_v49, %v1330_v13 }
 0x3cc   :  { %v1335_v27 = vmul.f32 2.0, %v1333_v11  ;;  %v1346_v34 = vadd.f32 %v1333_v11, %v1302_v5  ;;  %v1347_v17 = vadd.f32 %v1333_v11, %v1301_v4 }
 0x3ce   :  { %v1336_v16 = vadd.f32 %v1335_v27, %v1334_v0 }
 0x3d0   :  { %7263 = vrsqrt.f32 %v1336_v16  ;;  %vm1339_vm7 = vcmp.eq.f32.partialorder %v1336_v16, inf  ;;  %v1342_v56 = vand.u32 2147483648, %v1336_v16  ;;  %vm1341_vm8 = vcmp.eq.f32.partialorder %v1336_v16, 0.0 }
 0x3dd   :  { %v7264_v19 = vpop.eup %7263 }
 0x3de   :  { %v1338_v48 = vmul.f32 %v7264_v19, %v1336_v16 }
 0x3e0   :  { %v1340_v22 = vsel %vm1339_vm7, %v1336_v16, %v1338_v48 }
 0x3e1   :  { %v1343_v23 = vsel %vm1341_vm8, %v1342_v56, %v1340_v22 }
 0x3e2   :  { %v1344_v33 = vmul.f32 %v1343_v23, %v1333_v11 }
 0x3e4   :  { %7265 = vrcp.f32 %v1344_v33 }
 0x3f1   :  { %v7266_v28 = vpop.eup %7265 }
 0x3f2   :  { %v1348_v36 = vmul.f32 %v7266_v28, %v1346_v34  ;;  %v1349_v37 = vmul.f32 %v7266_v28, %v1347_v17  ;;  %v1351_v35 = vmul.f32 %v7266_v28, %v1350_v29 }
 0x3f4   :  { %v8267_v42 = vrot.slane %v1348_v36, %v8008_v3  ;;  %v8270_v26 = vrot.slane %v1349_v37, %v8008_v3  ;;  %v8273_v45 = vrot.slane %v1351_v35, %v8008_v3 }
 0x3f6   :  { %v1373_v59 = vmul.f32 %v8270_v26, %v8218_v1  ;;  %v1390_v2 = vmul.f32 %v8273_v45, %v8218_v1  ;;  %v1372_v9 = vmul.f32 %v8267_v42, %v8192_v30  ;;  %v1391_v57 = vmul.f32 %v8273_v45, %v8192_v30 }
 0x3f7   :  { %v1368_v39 = vmul.f32 %v8267_v42, %v8188_v58  ;;  %v1369_v44 = vmul.f32 %v8270_v26, %v8216_v32  ;;  %v1370_v14 = vmul.f32 %v8267_v42, %v8190_v63  ;;  %v1371_v24 = vmul.f32 %v8270_v26, %v8240_v20 }
 0x3f8   :  { %v1404_v4 = vadd.f32 %v1390_v2, %v1372_v9  ;;  %v1405_v1 = vadd.f32 %v1391_v57, %v1373_v59  ;;  %v1386_v5 = vmul.f32 %v8273_v45, %v8216_v32  ;;  %v1387_v30 = vmul.f32 %v8273_v45, %v8188_v58 }
 0x3f9   :  { %v1388_v6 = vmul.f32 %v8273_v45, %v8240_v20  ;;  %v1389_v8 = vmul.f32 %v8273_v45, %v8190_v63  ;;  %v1364_v55 = vmul.f32 %v8267_v42, %v8180_v53  ;;  %v1365_v47 = vmul.f32 %v8270_v26, %v8210_v15 }
 0x3fa   :  { %v1431_v12 = vmul.f32 %v8264_v41, %v1405_v1  ;;  %v1457_v46 = vmul.f32 %v8276_v40, %v1404_v4  ;;  %v1430_v32 = vmul.f32 %v8282_v50, %v1404_v4  ;;  %v1456_v58 = vmul.f32 %v8285_v21, %v1405_v1 }
 0x3fb   :  { %v1400_v49 = vadd.f32 %v1386_v5, %v1368_v39  ;;  %v1401_v13 = vadd.f32 %v1387_v30, %v1369_v44  ;;  %v1402_v20 = vadd.f32 %v1388_v6, %v1370_v14  ;;  %v1403_v11 = vadd.f32 %v1389_v8, %v1371_v24 }
 0x3fc   :  { %v1471_v0 = vadd.f32 %v1457_v46, %v1431_v12  ;;  %v1470_v63 = vadd.f32 %v1456_v58, %v1430_v32  ;;  %v1366_v27 = vmul.f32 %v8267_v42, %v8184_v61  ;;  %v1367_v16 = vmul.f32 %v8270_v26, %v8222_v43 }
 0x3fd   :  { %v1427_v19 = vmul.f32 %v8264_v41, %v1401_v13  ;;  %v1429_v48 = vmul.f32 %v8264_v41, %v1403_v11  ;;  %v1453_v56 = vmul.f32 %v8276_v40, %v1400_v49  ;;  %v1455_v22 = vmul.f32 %v8276_v40, %v1402_v20 }
 0x3fe   :  { %v1497_v23 = vadd.f32 %v8279_v10, %v1471_v0  ;;  %v1496_v33 = vadd.f32 %v8288_v38, %v1470_v63  ;;  %v1426_v34 = vmul.f32 %v8282_v50, %v1400_v49  ;;  %v1428_v17 = vmul.f32 %v8282_v50, %v1402_v20 }
 0x3ff   :  { %v1467_v29 = vadd.f32 %v1453_v56, %v1427_v19  ;;  %v1469_v51 = vadd.f32 %v1455_v22, %v1429_v48  ;;  %v1452_v28 = vmul.f32 %v8285_v21, %v1401_v13  ;;  %v1454_v31 = vmul.f32 %v8285_v21, %v1403_v11 }
 0x400   :  { %v8336_v36 = vpack.c.bf16 %v1497_v23, %v1497_v23  ;;  %v1504_v37 = vpack.c.bf16 %v1496_v33, %v1496_v33  ;;  %v1382_v35 = vmul.f32 %v8273_v45, %v8210_v15  ;;  %v1383_v60 = vmul.f32 %v8273_v45, %v8180_v53 }
 0x401   :  { %v1493_v59 = vadd.f32 %v8279_v10, %v1467_v29  ;;  %v1495_v2 = vadd.f32 %v8279_v10, %v1469_v51  ;;  %v1466_v9 = vadd.f32 %v1452_v28, %v1426_v34  ;;  %v1468_v57 = vadd.f32 %v1454_v31, %v1428_v17 }
 0x402   :  { %5785 = vmatprep.subr.msk.bf16.mxu0 %vm517_vm2, %v8336_v36  ;;  %5891 = vmatprep.subr.msk.bf16.mxu1 %vm517_vm2, %v8336_v36  ;;  %v8349_v39 = vsel %vm517_vm2, %v1504_v37, 0  ;;  %v1384_v15 = vmul.f32 %v8273_v45, %v8222_v43  ;;  %v1385_v53 = vmul.f32 %v8273_v45, %v8184_v61  ;;  %v1396_v44 = vadd.f32 %v1382_v35, %v1364_v55 }
 0x403   :  { %1542 = vmatpush1.bf16.msra.mxu0 %v8349_v39  ;;  %v8356_v14 = vpack.c.bf16 %v1495_v2, %v1493_v59  ;;  %v1492_v24 = vadd.f32 %v8288_v38, %v1466_v9  ;;  %v1494_v4 = vadd.f32 %v8288_v38, %v1468_v57  ;;  %v1397_v1 = vadd.f32 %v1383_v60, %v1365_v47 }
 0x404   :  { %v1398_v5 = vadd.f32 %v1384_v15, %v1366_v27  ;;  %v1399_v30 = vadd.f32 %v1385_v53, %v1367_v16  ;;  %v1449_v6 = vmul.f32 %v8276_v40, %v1396_v44  ;;  %v1422_v8 = vmul.f32 %v8282_v50, %v1396_v44  ;;  %v6923_v44 = vld [vmem:[#allocation11 + $0x10] sm:$0xff]  }
 0x405   :  { %1543 = vmatprep.subr.bf16.mxu0 %v8356_v14  ;;  %v8363_v43 = vpack.c.bf16 %v1494_v4, %v1492_v24  ;;  %v1423_v61 = vmul.f32 %v8264_v41, %v1397_v1  ;;  %v1448_v55 = vmul.f32 %v8285_v21, %v1397_v1  ;;  %v1360_v12 = vmul.f32 %v8267_v42, %v8172_v52  ;;  %v6924_v24 = vld [vmem:[%s9476_s8 + $0x70] ss:$8 sps:$4 sm:$0xff]   ;;  %v6929_v4 = vld [vmem:[%s9476_s8 + $0x64] ss:$8 sps:$4 sm:$0xff]   ;;  %v6927_v1 = vld [vmem:[%s9476_s8 + $0x60] ss:$8 sps:$4 sm:$0xff]  }
 0x406   :  { %v1425_v46 = vmul.f32 %v8264_v41, %v1399_v30  ;;  %v1451_v47 = vmul.f32 %v8276_v40, %v1398_v5  ;;  %v1424_v32 = vmul.f32 %v8282_v50, %v1398_v5  ;;  %v1450_v58 = vmul.f32 %v8285_v21, %v1399_v30  ;;  %v6933_v5 = vld [vmem:[%s9476_s8 + $0x54] ss:$8 sps:$4 sm:$0xff]   ;;  %v6930_v30 = vld [vmem:[#allocation11 + $0x18] sm:$0xff]  }
 0x407   :  { %1544 = vmatpush1.bf16.msra.mxu0 %v8363_v43  ;;  %v1463_v49 = vadd.f32 %v1449_v6, %v1423_v61  ;;  %v1462_v13 = vadd.f32 %v1448_v55, %v1422_v8  ;;  %v1361_v20 = vmul.f32 %v8270_v26, %v8200_v62  ;;  %v1362_v11 = vmul.f32 %v8267_v42, %v8176_v54  ;;  %v6931_v6 = vld [vmem:[%s9476_s8 + $0x50] ss:$8 sps:$4 sm:$0xff]   ;;  %v6936_v8 = vld [vmem:[%s9476_s8 + $0x44] ss:$8 sps:$4 sm:$0xff]   ;;  %v6934_v61 = vld [vmem:[%s9476_s8 + $0x40] ss:$8 sps:$4 sm:$0xff]  }
 0x408   :  { %v1465_v0 = vadd.f32 %v1451_v47, %v1425_v46  ;;  %v1464_v63 = vadd.f32 %v1450_v58, %v1424_v32  ;;  %v1363_v27 = vmul.f32 %v8270_v26, %v8206_v18  ;;  %v1378_v16 = vmul.f32 %v8273_v45, %v8200_v62  ;;  %v6939_v55 = vld [vmem:[%s9476_s8 + $0x34] ss:$8 sps:$4 sm:$0xff]   ;;  %v6942_v46 = vld [vmem:[%s9476_s8 + $0x24] ss:$8 sps:$4 sm:$0xff]   ;;  %v6940_v47 = vld [vmem:[%s9476_s8 + $0x20] ss:$8 sps:$4 sm:$0xff]  }
 0x409   :  { %v1489_v19 = vadd.f32 %v8279_v10, %v1463_v49  ;;  %v1488_v48 = vadd.f32 %v8288_v38, %v1462_v13  ;;  %v1379_v56 = vmul.f32 %v8273_v45, %v8172_v52  ;;  %v1380_v22 = vmul.f32 %v8273_v45, %v8206_v18  ;;  %v6945_v32 = vld [vmem:[%s9476_s8 + $0x14] ss:$8 sps:$4 sm:$0xff]   ;;  %v6943_v58 = vld [vmem:[%s9476_s8 + $0x10] ss:$8 sps:$4 sm:$0xff]   ;;  %v6948_v49 = vld [vmem:[%s9476_s8 + $0x4] ss:$8 sps:$4 sm:$0xff]  }
 0x40a   :  { %v1491_v42 = vadd.f32 %v8279_v10, %v1465_v0  ;;  %v1490_v23 = vadd.f32 %v8288_v38, %v1464_v63  ;;  %v1381_v26 = vmul.f32 %v8273_v45, %v8176_v54  ;;  %v1392_v33 = vadd.f32 %v1378_v16, %v1360_v12  ;;  %v6937_v12 = vld [vmem:[%s9476_s8 + $0x30] ss:$8 sps:$4 sm:$0xff]   ;;  %v6946_v13 = vld [vmem:[%s9476_s8] ss:$8 sps:$4 sm:$0xff]   ;;  %v6954_v0 = vld [vmem:[%s9476_s8 + $0xe4] ss:$8 sps:$4 sm:$0xff]  }
 0x40b   :  { %v1393_v34 = vadd.f32 %v1379_v56, %v1361_v20  ;;  %v1394_v62 = vadd.f32 %v1380_v22, %v1362_v11  ;;  %v6951_v20 = vld [vmem:[%s9476_s8 + $0xf4] ss:$8 sps:$4 sm:$0xff]   ;;  %v6949_v11 = vld [vmem:[%s9476_s8 + $0xf0] ss:$8 sps:$4 sm:$0xff]   ;;  %v6952_v63 = vld [vmem:[%s9476_s8 + $0xe0] ss:$8 sps:$4 sm:$0xff]  }
 0x40c   :  { %v8392_v17 = vpack.c.bf16 %v1491_v42, %v1489_v19  ;;  %v8394_v29 = vpack.c.bf16 %v1490_v23, %v1488_v48  ;;  %v1395_v51 = vadd.f32 %v1381_v26, %v1363_v27  ;;  %v1445_v52 = vmul.f32 %v8276_v40, %v1392_v33  ;;  %v6957_v27 = vld [vmem:[%s9476_s8 + $0xd4] ss:$8 sps:$4 sm:$0xff]   ;;  %v6955_v16 = vld [vmem:[%s9476_s8 + $0xd0] ss:$8 sps:$4 sm:$0xff]   ;;  %v6960_v19 = vld [vmem:[%s9476_s8 + $0xc4] ss:$8 sps:$4 sm:$0xff]  }
 0x40d   :  { %v1419_v28 = vmul.f32 %v8264_v41, %v1393_v34  ;;  %v1447_v18 = vmul.f32 %v8276_v40, %v1394_v62  ;;  %v1418_v31 = vmul.f32 %v8282_v50, %v1392_v33  ;;  %v1420_v37 = vmul.f32 %v8282_v50, %v1394_v62  ;;  %v6958_v48 = vld [vmem:[%s9476_s8 + $0xc0] ss:$8 sps:$4 sm:$0xff]   ;;  %v6963_v56 = vld [vmem:[%s9476_s8 + $0xb4] ss:$8 sps:$4 sm:$0xff]   ;;  %v6961_v22 = vld [vmem:[%s9476_s8 + $0xb0] ss:$8 sps:$4 sm:$0xff]  }
 0x40e   :  { %1545 = vmatprep.subr.bf16.mxu0 %v8392_v17  ;;  %v1421_v54 = vmul.f32 %v8264_v41, %v1395_v51  ;;  %v1444_v45 = vmul.f32 %v8285_v21, %v1393_v34  ;;  %v1446_v35 = vmul.f32 %v8285_v21, %v1395_v51  ;;  %v6921_v21 = vld [vmem:[#allocation11] sm:$0xff]   ;;  %v6966_v42 = vld [vmem:[%s9476_s8 + $0xa4] ss:$8 sps:$4 sm:$0xff]   ;;  %v6964_v23 = vld [vmem:[%s9476_s8 + $0xa0] ss:$8 sps:$4 sm:$0xff]  }
 0x40f   :  { %1546 = vmatpush1.bf16.msra.mxu0 %v8394_v29  ;;  %v1459_v60 = vadd.f32 %v1445_v52, %v1419_v28  ;;  %v6969_v26 = vld [vmem:[%s9476_s8 + $0x94] ss:$8 sps:$4 sm:$0xff]   ;;  %v6967_v33 = vld [vmem:[%s9476_s8 + $0x90] ss:$8 sps:$4 sm:$0xff]   ;;  %v6972_v34 = vld [vmem:[%s9476_s8 + $0x84] ss:$8 sps:$4 sm:$0xff]  }
 0x410   :  { %v1461_v59 = vadd.f32 %v1447_v18, %v1421_v54  ;;  %v1458_v2 = vadd.f32 %v1444_v45, %v1418_v31  ;;  %v1460_v9 = vadd.f32 %v1446_v35, %v1420_v37  ;;  %v6970_v62 = vld [vmem:[%s9476_s8 + $0x80] ss:$8 sps:$4 sm:$0xff]  }
 0x411   :  { %v1485_v40 = vadd.f32 %v8279_v10, %v1459_v60 }
 0x412   :  { %v1487_v57 = vadd.f32 %v8279_v10, %v1461_v59  ;;  %v1484_v50 = vadd.f32 %v8288_v38, %v1458_v2  ;;  %v1486_v15 = vadd.f32 %v8288_v38, %v1460_v9  ;;  %v6922_v10 = vld [vmem:[#allocation11 + $0x8] sm:$0xff]  }
 0x413   :  { %v6926_v38 = vld [vmem:[%s9476_s8 + $0x74] ss:$8 sps:$4 sm:$0xff]  }
 0x414   :  { %v8410_v53 = vpack.c.bf16 %v1487_v57, %v1485_v40  ;;  %v8412_v41 = vpack.c.bf16 %v1486_v15, %v1484_v50  ;;  %v6979_v57 = vld [vmem:[%s9476_s8 + $0x374] ss:$8 sps:$4 sm:$0xff]   ;;  %v6973_v15 = vld [vmem:[#allocation11 + $0x30] sm:$0xff]  }
 0x416   :  { %1547 = vmatprep.subr.bf16.mxu0 %v8410_v53 }
 0x417   :  { %1548 = vmatpush1.bf16.msra.mxu0 %v8412_v41 }
 0x418   :  { %5790 = vmatprep.subr.msk.bf16.mxu0 %vm517_vm2, %v8336_v36 }
 0x41a   :  { %5786 = vmatmul.mubr.msk.bf16.vlgmr.msra.gmra.mxu0 %vm1520_vm9, %v6921_v21 }
 0x41b   :  { %1652 = vmatpush1.bf16.msra.mxu0 %v8349_v39  ;;  %1575 = vmatprep.mubr.bf16.mxu0 %v7594_v25 }
 0x41c   :  { %1653 = vmatprep.subr.bf16.mxu0 %v8356_v14 }
 0x41f   :  { %1654 = vmatpush1.bf16.msra.mxu0 %v8363_v43 }
 0x420   :  { %1655 = vmatprep.subr.bf16.mxu0 %v8392_v17 }
 0x422   :  { %5787 = vmatmul.mubr.msk.bf16.gmra.mxu0 %vm1520_vm9, %v6922_v10 }
 0x423   :  { %1656 = vmatpush1.bf16.msra.mxu0 %v8394_v29  ;;  %1675 = vmatprep.mubr.bf16.mxu0 %v7594_v25 }
 0x424   :  { %1657 = vmatprep.subr.bf16.mxu0 %v8410_v53 }
 0x427   :  { %1658 = vmatpush1.bf16.msra.mxu0 %v8412_v41 }
 0x428   :  { %2106 = vmatprep.subr.bf16.mxu0 %v6926_v38 }
 0x42a   :  { %5791 = vmatmul.mubr.msk.bf16.vlgmr.msra.gmra.mxu0 %vm1520_vm9, %v6923_v44  ;;  %v6977_v44 = vld [vmem:[%s9476_s8 + $0x370] ss:$8 sps:$4 sm:$0xff]  }
 0x42b   :  { %2107 = vmatpush1.bf16.msra.mxu0 %v6924_v24  ;;  %1685 = vmatprep.mubr.bf16.mxu0 %v7594_v25  ;;  %v6982_v24 = vld [vmem:[%s9476_s8 + $0x364] ss:$8 sps:$4 sm:$0xff]  }
 0x42c   :  { %2108 = vmatprep.subr.bf16.mxu0 %v6929_v4 }
 0x42f   :  { %2109 = vmatpush1.bf16.msra.mxu0 %v6927_v1 }
 0x430   :  { %2110 = vmatprep.subr.bf16.mxu0 %v6933_v5  ;;  %v6980_v5 = vld [vmem:[%s9476_s8 + $0x360] ss:$8 sps:$4 sm:$0xff]  }
 0x432   :  { %5792 = vmatmul.mubr.msk.bf16.gmra.mxu0 %vm1520_vm9, %v6930_v30  ;;  %v6985_v30 = vld [vmem:[%s9476_s8 + $0x354] ss:$8 sps:$4 sm:$0xff]  }
 0x433   :  { %2111 = vmatpush1.bf16.msra.mxu0 %v6931_v6 }
 0x434   :  { %2112 = vmatprep.subr.bf16.mxu0 %v6936_v8  ;;  %v6974_v8 = vld [vmem:[#allocation11 + $0x38] sm:$0xff]  }
 0x437   :  { %2113 = vmatpush1.bf16.msra.mxu0 %v6934_v61 }
 0x438   :  { %2114 = vmatprep.subr.bf16.mxu0 %v6939_v55  ;;  %v6991_v55 = vld [vmem:[%s9476_s8 + $0x344] ss:$8 sps:$4 sm:$0xff]  }
 0x43b   :  { %2115 = vmatpush1.bf16.msra.mxu0 %v6937_v12  ;;  %v6997_v12 = vld [vmem:[%s9476_s8 + $0x334] ss:$8 sps:$4 sm:$0xff]  }
 0x43c   :  { %2116 = vmatprep.subr.bf16.mxu0 %v6942_v46  ;;  %v6975_v46 = vld [vmem:[#allocation11 + $0x20] sm:$0xff]  }
 0x43f   :  { %2117 = vmatpush1.bf16.msra.mxu0 %v6940_v47  ;;  %v6995_v47 = vld [vmem:[%s9476_s8 + $0x330] ss:$8 sps:$4 sm:$0xff]  }
 0x440   :  { %2118 = vmatprep.subr.bf16.mxu0 %v6945_v32  ;;  %v7003_v32 = vld [vmem:[%s9476_s8 + $0x324] ss:$8 sps:$4 sm:$0xff]  }
 0x443   :  { %2119 = vmatpush1.bf16.msra.mxu0 %v6943_v58  ;;  %v7000_v58 = vld [vmem:[%s9476_s8 + $0x254] ss:$8 sps:$4 sm:$0xff]  }
 0x444   :  { %2120 = vmatprep.subr.bf16.mxu0 %v6948_v49  ;;  %v7001_v49 = vld [vmem:[%s9476_s8 + $0x320] ss:$8 sps:$4 sm:$0xff]  }
 0x447   :  { %2121 = vmatpush1.bf16.msra.mxu0 %v6946_v13  ;;  %v7009_v13 = vld [vmem:[%s9476_s8 + $0x314] ss:$8 sps:$4 sm:$0xff]  }
 0x448   :  { %2122 = vmatprep.subr.bf16.mxu0 %v6951_v20  ;;  %v6976_v20 = vld [vmem:[#allocation11 + $0x28] sm:$0xff]  }
 0x44b   :  { %2123 = vmatpush2.bf16.msra.mxu0 %v6949_v11  ;;  %v6998_v11 = vld [vmem:[%s9476_s8 + $0x250] ss:$8 sps:$4 sm:$0xff]  }
 0x44c   :  { %2124 = vmatprep.subr.bf16.mxu0 %v6954_v0  ;;  %v7006_v0 = vld [vmem:[%s9476_s8 + $0x244] ss:$8 sps:$4 sm:$0xff]  }
 0x44f   :  { %2125 = vmatpush2.bf16.msra.mxu0 %v6952_v63  ;;  %v7007_v63 = vld [vmem:[%s9476_s8 + $0x310] ss:$8 sps:$4 sm:$0xff]  }
 0x450   :  { %2126 = vmatprep.subr.bf16.mxu0 %v6957_v27  ;;  %v7015_v27 = vld [vmem:[%s9476_s8 + $0x304] ss:$8 sps:$4 sm:$0xff]  }
 0x453   :  { %2127 = vmatpush2.bf16.msra.mxu0 %v6955_v16  ;;  %v7004_v16 = vld [vmem:[%s9476_s8 + $0x240] ss:$8 sps:$4 sm:$0xff]  }
 0x454   :  { %2128 = vmatprep.subr.bf16.mxu0 %v6960_v19  ;;  %v7012_v19 = vld [vmem:[%s9476_s8 + $0x234] ss:$8 sps:$4 sm:$0xff]  }
 0x457   :  { %2129 = vmatpush2.bf16.msra.mxu0 %v6958_v48  ;;  %v7013_v48 = vld [vmem:[%s9476_s8 + $0x300] ss:$8 sps:$4 sm:$0xff]  }
 0x458   :  { %2130 = vmatprep.subr.bf16.mxu0 %v6963_v56  ;;  %v7021_v56 = vld [vmem:[%s9476_s8 + $0x3f4] ss:$8 sps:$4 sm:$0xff]  }
 0x45b   :  { %2131 = vmatpush2.bf16.msra.mxu0 %v6961_v22  ;;  %v7010_v22 = vld [vmem:[%s9476_s8 + $0x230] ss:$8 sps:$4 sm:$0xff]  }
 0x45c   :  { %2132 = vmatprep.subr.bf16.mxu0 %v6966_v42  ;;  %v7018_v42 = vld [vmem:[%s9476_s8 + $0x224] ss:$8 sps:$4 sm:$0xff]  }
 0x45f   :  { %2133 = vmatpush2.bf16.msra.mxu0 %v6964_v23  ;;  %v7019_v23 = vld [vmem:[%s9476_s8 + $0x3f0] ss:$8 sps:$4 sm:$0xff]  }
 0x460   :  { %2134 = vmatprep.subr.bf16.mxu0 %v6969_v26  ;;  %v7016_v26 = vld [vmem:[%s9476_s8 + $0x220] ss:$8 sps:$4 sm:$0xff]  }
 0x463   :  { %2135 = vmatpush2.bf16.msra.mxu0 %v6967_v33  ;;  %v7022_v33 = vld [vmem:[%s9476_s8 + $0x210] ss:$8 sps:$4 sm:$0xff]  }
 0x464   :  { %2136 = vmatprep.subr.bf16.mxu0 %v6972_v34  ;;  %v7024_v34 = vld [vmem:[%s9476_s8 + $0x214] ss:$8 sps:$4 sm:$0xff]  }
 0x467   :  { %2137 = vmatpush2.bf16.msra.mxu0 %v6970_v62  ;;  %v7025_v62 = vld [vmem:[%s9476_s8 + $0x3e0] ss:$8 sps:$4 sm:$0xff]  }
 0x468   :  { %5960 = vmatprep.subr.msk.bf16.mxu0 %vm517_vm2, %v8336_v36  ;;  %vm5132_vm2 = vcmask 48128  }
 0x4da   :  { %v1567_v51 = vpop.f32.mrf.mxu0 }
 0x4dc   :  { %v1569_v52 = vpop.f32.mrf.mxu0 }
 0x4de   :  { %v1571_v28 = vpop.f32.mrf.mxu0 }
 0x4df   :  { %v1586_v37 = vpack.c.bf16 %v1571_v28, %v1567_v51  ;;  %v7027_v51 = vld [vmem:[%s9476_s8 + $0x3e4] ss:$8 sps:$4 sm:$0xff]  }
 0x4e0   :  { %v1573_v18 = vpop.f32.mrf.mxu0  ;;  %v7030_v28 = vld [vmem:[%s9476_s8 + $0x204] ss:$8 sps:$4 sm:$0xff]  }
 0x4e1   :  { %v1587_v31 = vpack.c.bf16 %v1573_v18, %v1569_v52  ;;  %v7028_v52 = vld [vmem:[%s9476_s8 + $0x200] ss:$8 sps:$4 sm:$0xff]   ;;  %v7031_v18 = vld [vmem:[%s9476_s8 + $0x3d0] ss:$8 sps:$4 sm:$0xff]  }
 0x4e2   :  { %v1577_v54 = vpop.f32.mrf.mxu0 }
 0x4e3   :  { %2138 = vmatprep.mubr.bf16.mxu0 %v1587_v31  ;;  %v7033_v31 = vld [vmem:[%s9476_s8 + $0x3d4] ss:$8 sps:$4 sm:$0xff]  }
 0x4e4   :  { %v1579_v45 = vpop.f32.mrf.mxu0  ;;  %2139 = vmatmul.mubr.bf16.vlgmr.msra.gmra.mxu0 %v1586_v37  ;;  %v7034_v37 = vld [vmem:[%s9476_s8 + $0x2f0] ss:$8 sps:$4 sm:$0xff]  }
 0x4e5   :  { %2521 = vmatpush1.bf16.msra.mxu0 %v8349_v39 }
 0x4e6   :  { %2522 = vmatprep.subr.bf16.mxu0 %v8356_v14  ;;  %v1581_v35 = vpop.f32.mrf.mxu0 }
 0x4e7   :  { %v1588_v36 = vpack.c.bf16 %v1581_v35, %v1577_v54  ;;  %v7036_v54 = vld [vmem:[%s9476_s8 + $0x2f4] ss:$8 sps:$4 sm:$0xff]   ;;  %v7039_v35 = vld [vmem:[%s9476_s8 + $0x3c4] ss:$8 sps:$4 sm:$0xff]  }
 0x4e8   :  { %v1583_v60 = vpop.f32.mrf.mxu0 }
 0x4e9   :  { %v1589_v59 = vpack.c.bf16 %v1583_v60, %v1579_v45  ;;  %2523 = vmatpush1.bf16.msra.mxu0 %v8363_v43  ;;  %v7037_v45 = vld [vmem:[%s9476_s8 + $0x3c0] ss:$8 sps:$4 sm:$0xff]  }
 0x4ea   :  { %2524 = vmatprep.subr.bf16.mxu0 %v8392_v17  ;;  %v1677_v2 = vpop.f32.mrf.mxu0  ;;  %v7040_v60 = vld [vmem:[%s9476_s8 + $0x2e0] ss:$8 sps:$4 sm:$0xff]  }
 0x4eb   :  { %2148 = vmatprep.mubr.bf16.mxu0 %v1589_v59  ;;  %v7042_v59 = vld [vmem:[%s9476_s8 + $0x2e4] ss:$8 sps:$4 sm:$0xff]  }
 0x4ec   :  { %v1679_v9 = vpop.f32.mrf.mxu0  ;;  %2149 = vmatmul.mubr.bf16.gmra.mxu0 %v1588_v36  ;;  %v7043_v36 = vld [vmem:[%s9476_s8 + $0x3b0] ss:$8 sps:$4 sm:$0xff]  }
 0x4ed   :  { %2525 = vmatpush1.bf16.msra.mxu0 %v8394_v29  ;;  %2544 = vmatprep.mubr.bf16.mxu0 %v7594_v25 }
 0x4ee   :  { %2526 = vmatprep.subr.bf16.mxu0 %v8410_v53  ;;  %v1681_v40 = vpop.f32.mrf.mxu0 }
 0x4ef   :  { %v1696_v10 = vpack.c.bf16 %v1681_v40, %v1677_v2  ;;  %v7045_v2 = vld [vmem:[%s9476_s8 + $0x3b4] ss:$8 sps:$4 sm:$0xff]  }
 0x4f0   :  { %v1683_v50 = vpop.f32.mrf.mxu0  ;;  %v7048_v40 = vld [vmem:[%s9476_s8 + $0x2d4] ss:$8 sps:$4 sm:$0xff]  }
 0x4f1   :  { %v1697_v21 = vpack.c.bf16 %v1683_v50, %v1679_v9  ;;  %2527 = vmatpush1.bf16.msra.mxu0 %v8412_v41  ;;  %v7046_v9 = vld [vmem:[%s9476_s8 + $0x2d0] ss:$8 sps:$4 sm:$0xff]   ;;  %v7051_v50 = vld [vmem:[%s9476_s8 + $0x3a4] ss:$8 sps:$4 sm:$0xff]  }
 0x4f2   :  { %v1687_v38 = vpop.f32.mrf.mxu0  ;;  %2762 = vmatprep.subr.bf16.mxu0 %v6979_v57  ;;  %v7049_v57 = vld [vmem:[%s9476_s8 + $0x3a0] ss:$8 sps:$4 sm:$0xff]  }
 0x4f3   :  { %1925 = vmatprep.mubr.bf16.mxu1 %v1697_v21  ;;  %v7054_v21 = vld [vmem:[%s9476_s8 + $0x2c4] ss:$8 sps:$4 sm:$0xff]  }
 0x4f4   :  { %v1689_v4 = vpop.f32.mrf.mxu0  ;;  %1926 = vmatmul.mubr.bf16.vlgmr.msra.gmra.mxu1 %v1696_v10  ;;  %5961 = vmatmul.mubr.msk.bf16.vlgmr.msra.gmra.mxu0 %vm1520_vm9, %v6973_v15  ;;  %v7052_v15 = vld [vmem:[%s9476_s8 + $0x2c0] ss:$8 sps:$4 sm:$0xff]   ;;  %v7055_v10 = vld [vmem:[%s9476_s8 + $0x390] ss:$8 sps:$4 sm:$0xff]  }
 0x4f5   :  { %2189 = vmatpush1.bf16.msra.mxu1 %v8349_v39  ;;  %2554 = vmatprep.mubr.bf16.mxu0 %v7594_v25 }
 0x4f6   :  { %2190 = vmatprep.subr.bf16.mxu1 %v8356_v14  ;;  %v1691_v1 = vpop.f32.mrf.mxu0  ;;  %2763 = vmatpush1.bf16.msra.mxu0 %v6977_v44  ;;  %v6983_v14 = vld [vmem:[%s9476_s8 + $0x350] ss:$8 sps:$4 sm:$0xff]  }
 0x4f7   :  { %2764 = vmatprep.subr.bf16.mxu0 %v6982_v24  ;;  %v1698_v39 = vpack.c.bf16 %v1691_v1, %v1687_v38  ;;  %v7057_v38 = vld [vmem:[%s9476_s8 + $0x394] ss:$8 sps:$4 sm:$0xff]   ;;  %v7058_v44 = vld [vmem:[%s9476_s8 + $0x2b0] ss:$8 sps:$4 sm:$0xff]   ;;  %v7063_v1 = vld [vmem:[%s9476_s8 + $0x384] ss:$8 sps:$4 sm:$0xff]  }
 0x4f8   :  { %v1693_v6 = vpop.f32.mrf.mxu0  ;;  %v7060_v24 = vld [vmem:[%s9476_s8 + $0x2b4] ss:$8 sps:$4 sm:$0xff]  }
 0x4f9   :  { %v1699_v61 = vpack.c.bf16 %v1693_v6, %v1689_v4  ;;  %2191 = vmatpush1.bf16.msra.mxu1 %v8363_v43  ;;  %v6988_v43 = vld [vmem:[%s9476_s8 + $0x274] ss:$8 sps:$4 sm:$0xff]   ;;  %v7061_v4 = vld [vmem:[%s9476_s8 + $0x380] ss:$8 sps:$4 sm:$0xff]   ;;  %v7067_v6 = vld [vmem:[%s9476_s8 + $0x290] ss:$8 sps:$4 sm:$0xff]  }
 0x4fa   :  { %2192 = vmatprep.subr.bf16.mxu1 %v8392_v17  ;;  %2765 = vmatpush1.bf16.msra.mxu0 %v6980_v5  ;;  %v6989_v17 = vld [vmem:[%s9476_s8 + $0x340] ss:$8 sps:$4 sm:$0xff]  }
 0x4fb   :  { %1935 = vmatprep.mubr.bf16.mxu1 %v1699_v61  ;;  %2766 = vmatprep.subr.bf16.mxu0 %v6985_v30  ;;  %v7064_v5 = vld [vmem:[%s9476_s8 + $0x2a0] ss:$8 sps:$4 sm:$0xff]   ;;  %v7066_v30 = vld [vmem:[%s9476_s8 + $0x2a4] ss:$8 sps:$4 sm:$0xff]  }
 0x4fc   :  { %1936 = vmatmul.mubr.bf16.gmra.mxu1 %v1698_v39  ;;  %5962 = vmatmul.mubr.msk.bf16.gmra.mxu0 %vm1520_vm9, %v6974_v8  ;;  %v7069_v8 = vld [vmem:[%s9476_s8 + $0x294] ss:$8 sps:$4 sm:$0xff]   ;;  %v7070_v61 = vld [vmem:[%s9476_s8 + $0x280] ss:$8 sps:$4 sm:$0xff]   ;;  %v7072_v39 = vld [vmem:[%s9476_s8 + $0x284] ss:$8 sps:$4 sm:$0xff]  }
 0x4fd   :  { %2193 = vmatpush1.bf16.msra.mxu1 %v8394_v29  ;;  %2212 = vmatprep.mubr.bf16.mxu1 %v7594_v25  ;;  %v6986_v29 = vld [vmem:[%s9476_s8 + $0x270] ss:$8 sps:$4 sm:$0xff]  }
 0x4fe   :  { %2194 = vmatprep.subr.bf16.mxu1 %v8410_v53  ;;  %2767 = vmatpush1.bf16.msra.mxu0 %v6983_v14  ;;  %v6994_v53 = vld [vmem:[%s9476_s8 + $0x264] ss:$8 sps:$4 sm:$0xff]  }
 0x4ff   :  { %2768 = vmatprep.subr.bf16.mxu0 %v6991_v55 }
 0x501   :  { %2195 = vmatpush1.bf16.msra.mxu1 %v8412_v41  ;;  %v6992_v41 = vld [vmem:[%s9476_s8 + $0x260] ss:$8 sps:$4 sm:$0xff]  }
 0x502   :  { %2430 = vmatprep.subr.bf16.mxu1 %v6988_v43  ;;  %2769 = vmatpush1.bf16.msra.mxu0 %v6989_v17 }
 0x503   :  { %2770 = vmatprep.subr.bf16.mxu0 %v6997_v12 }
 0x504   :  { %5892 = vmatmul.mubr.msk.bf16.vlgmr.msra.gmra.mxu1 %vm1520_vm9, %v6975_v46 }
 0x505   :  { %2222 = vmatprep.mubr.bf16.mxu1 %v7594_v25  ;;  %2431 = vmatpush1.bf16.msra.mxu1 %v6986_v29 }
 0x506   :  { %2432 = vmatprep.subr.bf16.mxu1 %v6994_v53  ;;  %2771 = vmatpush1.bf16.msra.mxu0 %v6995_v47 }
 0x507   :  { %2772 = vmatprep.subr.bf16.mxu0 %v7003_v32 }
 0x509   :  { %2433 = vmatpush1.bf16.msra.mxu1 %v6992_v41 }
 0x50a   :  { %2434 = vmatprep.subr.bf16.mxu1 %v7000_v58  ;;  %2773 = vmatpush1.bf16.msra.mxu0 %v7001_v49 }
 0x50b   :  { %2774 = vmatprep.subr.bf16.mxu0 %v7009_v13 }
 0x50c   :  { %5893 = vmatmul.mubr.msk.bf16.gmra.mxu1 %vm1520_vm9, %v6976_v20 }
 0x50d   :  { %2435 = vmatpush1.bf16.msra.mxu1 %v6998_v11 }
 0x50e   :  { %2436 = vmatprep.subr.bf16.mxu1 %v7006_v0  ;;  %2775 = vmatpush1.bf16.msra.mxu0 %v7007_v63 }
 0x50f   :  { %2776 = vmatprep.subr.bf16.mxu0 %v7015_v27 }
 0x511   :  { %2437 = vmatpush1.bf16.msra.mxu1 %v7004_v16 }
 0x512   :  { %2438 = vmatprep.subr.bf16.mxu1 %v7012_v19  ;;  %2777 = vmatpush1.bf16.msra.mxu0 %v7013_v48 }
 0x513   :  { %2778 = vmatprep.subr.bf16.mxu0 %v7021_v56 }
 0x515   :  { %2439 = vmatpush1.bf16.msra.mxu1 %v7010_v22 }
 0x516   :  { %2440 = vmatprep.subr.bf16.mxu1 %v7018_v42  ;;  %2779 = vmatpush2.bf16.msra.mxu0 %v7019_v23 }
 0x517   :  { %2780 = vmatprep.subr.bf16.mxu0 %v7027_v51 }
 0x519   :  { %2441 = vmatpush1.bf16.msra.mxu1 %v7016_v26 }
 0x51a   :  { %2442 = vmatprep.subr.bf16.mxu1 %v7024_v34  ;;  %2781 = vmatpush2.bf16.msra.mxu0 %v7025_v62 }
 0x51b   :  { %2782 = vmatprep.subr.bf16.mxu0 %v7033_v31 }
 0x51d   :  { %2443 = vmatpush1.bf16.msra.mxu1 %v7022_v33 }
 0x51e   :  { %2444 = vmatprep.subr.bf16.mxu1 %v7030_v28  ;;  %2783 = vmatpush2.bf16.msra.mxu0 %v7031_v18 }
 0x51f   :  { %2784 = vmatprep.subr.bf16.mxu0 %v7039_v35 }
 0x521   :  { %2445 = vmatpush1.bf16.msra.mxu1 %v7028_v52 }
 0x522   :  { %2446 = vmatprep.subr.bf16.mxu1 %v7036_v54  ;;  %2785 = vmatpush2.bf16.msra.mxu0 %v7037_v45 }
 0x523   :  { %2786 = vmatprep.subr.bf16.mxu0 %v7045_v2 }
 0x525   :  { %2447 = vmatpush2.bf16.msra.mxu1 %v7034_v37 }
 0x526   :  { %2448 = vmatprep.subr.bf16.mxu1 %v7042_v59  ;;  %2787 = vmatpush2.bf16.msra.mxu0 %v7043_v36 }
 0x527   :  { %2788 = vmatprep.subr.bf16.mxu0 %v7051_v50 }
 0x529   :  { %2449 = vmatpush2.bf16.msra.mxu1 %v7040_v60 }
 0x52a   :  { %2450 = vmatprep.subr.bf16.mxu1 %v7048_v40  ;;  %2789 = vmatpush2.bf16.msra.mxu0 %v7049_v57 }
 0x52b   :  { %2790 = vmatprep.subr.bf16.mxu0 %v7057_v38  ;;  %v7073_v38 = vld [vmem:[%s9482_s14 + $0xf8] sm:$0xff]  }
 0x52d   :  { %2451 = vmatpush2.bf16.msra.mxu1 %v7046_v9 }
 0x52e   :  { %2452 = vmatprep.subr.bf16.mxu1 %v7054_v21  ;;  %2791 = vmatpush2.bf16.msra.mxu0 %v7055_v10 }
 0x52f   :  { %2792 = vmatprep.subr.bf16.mxu0 %v7063_v1  ;;  %v7076_v1 = vld [vmem:[%s9482_s14 + $0xb0] sm:$0xff]  }
 0x531   :  { %2453 = vmatpush2.bf16.msra.mxu1 %v7052_v15 }
 0x532   :  { %2454 = vmatprep.subr.bf16.mxu1 %v7060_v24  ;;  %2793 = vmatpush2.bf16.msra.mxu0 %v7061_v4  ;;  %v7075_v4 = vld [vmem:[%s9482_s14 + $0xf0] sm:$0xff]  }
 0x533   :  { %6524 = vmatprep.subr.bf16.mxu0 %v7073_v38 }
 0x535   :  { %2455 = vmatpush2.bf16.msra.mxu1 %v7058_v44  ;;  %v7074_v44 = vld [vmem:[%s9482_s14 + $0xb8] sm:$0xff]  }
 0x536   :  { %2456 = vmatprep.subr.bf16.mxu1 %v7066_v30 }
 0x539   :  { %2457 = vmatpush2.bf16.msra.mxu1 %v7064_v5  ;;  %v2823_v5 = vld [vmem:[#allocation13] sm:$0x3] }
 0x53a   :  { %2458 = vmatprep.subr.bf16.mxu1 %v7069_v8 }
 0x53d   :  { %2459 = vmatpush2.bf16.msra.mxu1 %v7067_v6 }
 0x53e   :  { %2460 = vmatprep.subr.bf16.mxu1 %v7072_v39  ;;  %v2828_v39 = vrot.slane %v2823_v5, %v8008_v3 }
 0x541   :  { %2461 = vmatpush2.bf16.msra.mxu1 %v7070_v61  ;;  %v7077_v61 = vld [vmem:[%s9482_s14 + $0xe8] sm:$0xff]  }
 0x5a4   :  { %v2140_v14 = vpop.f32.mrf.mxu0 }
 0x5a6   :  { %v2142_v55 = vpop.f32.mrf.mxu0 }
 0x5a8   :  { %v2144_v43 = vpop.f32.mrf.mxu0 }
 0x5aa   :  { %v2146_v17 = vpop.f32.mrf.mxu0 }
 0x5ac   :  { %v2150_v12 = vpop.f32.mrf.mxu0 }
 0x5ae   :  { %v2152_v46 = vpop.f32.mrf.mxu0 }
 0x5b0   :  { %v2154_v29 = vpop.f32.mrf.mxu0 }
 0x5b2   :  { %v2156_v53 = vpop.f32.mrf.mxu0 }
 0x5b4   :  { %v1927_v47 = vpop.f32.mrf.mxu1  ;;  %v2546_v32 = vpop.f32.mrf.mxu0 }
 0x5b5   :  { %v2141_v41 = vadd.f32 %v2140_v14, %v1927_v47 }
 0x5b6   :  { %v1929_v58 = vpop.f32.mrf.mxu1  ;;  %v2548_v49 = vpop.f32.mrf.mxu0 }
 0x5b7   :  { %v8744_v13 = vadd.f32 %v2142_v55, %v1929_v58  ;;  %v7078_v55 = vld [vmem:[%s9482_s14 + $0xa8] sm:$0xff]  }
 0x5b8   :  { %v1931_v20 = vpop.f32.mrf.mxu1  ;;  %v2550_v11 = vpop.f32.mrf.mxu0 }
 0x5b9   :  { %v8746_v0 = vadd.f32 %v2144_v43, %v1931_v20  ;;  %v2565_v27 = vpack.c.bf16 %v2550_v11, %v2546_v32  ;;  %v7079_v32 = vld [vmem:[%s9482_s14 + $0xe0] sm:$0xff]  }
 0x5ba   :  { %v1933_v63 = vpop.f32.mrf.mxu1  ;;  %v2552_v16 = vpop.f32.mrf.mxu0 }
 0x5bb   :  { %v8748_v19 = vadd.f32 %v2146_v17, %v1933_v63  ;;  %v2566_v48 = vpack.c.bf16 %v2552_v16, %v2548_v49  ;;  %v7080_v49 = vld [vmem:[%s9482_s14 + $0xa0] sm:$0xff]  }
 0x5bc   :  { %v1937_v56 = vpop.f32.mrf.mxu1  ;;  %v2556_v22 = vpop.f32.mrf.mxu0 }
 0x5bd   :  { %v8750_v42 = vadd.f32 %v2150_v12, %v1937_v56  ;;  %2794 = vmatprep.mubr.bf16.mxu0 %v2566_v48  ;;  %v7081_v56 = vld [vmem:[%s9482_s14 + $0xd8] sm:$0xff]  }
 0x5be   :  { %v1939_v23 = vpop.f32.mrf.mxu1  ;;  %v2558_v26 = vpop.f32.mrf.mxu0  ;;  %2795 = vmatmul.mubr.bf16.vlgmr.msra.gmra.mxu0 %v2565_v27 }
 0x5bf   :  { %v8752_v33 = vadd.f32 %v2152_v46, %v1939_v23  ;;  %6525 = vmatpush3.bf16.msra.mxu0 %v7074_v44  ;;  %v2832_v46 = vrot.slane %v2823_v5, %v8015_v7 }
 0x5c0   :  { %v1941_v34 = vpop.f32.mrf.mxu1  ;;  %v2560_v62 = vpop.f32.mrf.mxu0  ;;  %6526 = vmatprep.subr.bf16.mxu0 %v7075_v4 }
 0x5c1   :  { %v8754_v51 = vadd.f32 %v2154_v29, %v1941_v34  ;;  %v2567_v28 = vpack.c.bf16 %v2560_v62, %v2556_v22 }
 0x5c2   :  { %v1943_v52 = vpop.f32.mrf.mxu1  ;;  %v2562_v18 = vpop.f32.mrf.mxu0 }
 0x5c3   :  { %v8756_v31 = vadd.f32 %v2156_v53, %v1943_v52  ;;  %v2568_v37 = vpack.c.bf16 %v2562_v18, %v2558_v26  ;;  %6527 = vmatpush3.bf16.msra.mxu0 %v7076_v1 }
 0x5c4   :  { %v2214_v54 = vpop.f32.mrf.mxu1  ;;  %6528 = vmatprep.subr.bf16.mxu0 %v7077_v61 }
 0x5c5   :  { %2804 = vmatprep.mubr.bf16.mxu0 %v2568_v37 }
 0x5c6   :  { %v2216_v45 = vpop.f32.mrf.mxu1  ;;  %2805 = vmatmul.mubr.bf16.gmra.mxu0 %v2567_v28 }
 0x5c7   :  { %6529 = vmatpush3.bf16.msra.mxu0 %v7078_v55 }
 0x5c8   :  { %v2218_v35 = vpop.f32.mrf.mxu1  ;;  %6530 = vmatprep.subr.bf16.mxu0 %v7079_v32 }
 0x5c9   :  { %v2233_v36 = vpack.c.bf16 %v2218_v35, %v2214_v54 }
 0x5ca   :  { %v2220_v60 = vpop.f32.mrf.mxu1 }
 0x5cb   :  { %v2234_v59 = vpack.c.bf16 %v2220_v60, %v2216_v45  ;;  %6531 = vmatpush3.bf16.msra.mxu0 %v7080_v49  ;;  %v7083_v60 = vld [vmem:[%s9482_s14 + $0xd0] sm:$0xff]  }
 0x5cc   :  { %v2224_v2 = vpop.f32.mrf.mxu1  ;;  %6532 = vmatprep.subr.bf16.mxu0 %v7081_v56 }
 0x5cd   :  { %2462 = vmatprep.mubr.bf16.mxu1 %v2234_v59 }
 0x5ce   :  { %v2226_v9 = vpop.f32.mrf.mxu1  ;;  %2463 = vmatmul.mubr.bf16.vlgmr.msra.gmra.mxu1 %v2233_v36 }
 0x5d0   :  { %v2228_v40 = vpop.f32.mrf.mxu1 }
 0x5d1   :  { %v2235_v15 = vpack.c.bf16 %v2228_v40, %v2224_v2 }
 0x5d2   :  { %v2230_v57 = vpop.f32.mrf.mxu1 }
 0x5d3   :  { %v2236_v50 = vpack.c.bf16 %v2230_v57, %v2226_v9 }
 0x5d5   :  { %2472 = vmatprep.mubr.bf16.mxu1 %v2236_v50 }
 0x5d6   :  { %2473 = vmatmul.mubr.bf16.gmra.mxu1 %v2235_v15 }
 0x5d7   :  { %3097 = vmatprep.mubr.bf16.mxu1 %v7594_v25 }
 0x67e   :  { %v2796_v21 = vpop.f32.mrf.mxu0 }
 0x680   :  { %v2798_v10 = vpop.f32.mrf.mxu0 }
 0x682   :  { %v2800_v24 = vpop.f32.mrf.mxu0 }
 0x684   :  { %v2802_v30 = vpop.f32.mrf.mxu0 }
 0x686   :  { %v2806_v12 = vpop.f32.mrf.mxu0 }
 0x688   :  { %v2808_v11 = vpop.f32.mrf.mxu0 }
 0x68a   :  { %v2810_v28 = vpop.f32.mrf.mxu0 }
 0x68c   :  { %v2812_v50 = vpop.f32.mrf.mxu0 }
 0x68e   :  { %v2464_v6 = vpop.f32.mrf.mxu1 }
 0x68f   :  { %v2483_v8 = vadd.f32 %v2464_v6, %v2141_v41 }
 0x690   :  { %v2466_v14 = vpop.f32.mrf.mxu1 }
 0x691   :  { %v2815_v43 = vadd.f32 %v2796_v21, %v2483_v8  ;;  %v2484_v17 = vadd.f32 %v2466_v14, %v8744_v13  ;;  %v7085_v21 = vld [vmem:[%s9482_s14 + $0xc8] sm:$0xff]  }
 0x692   :  { %v2468_v29 = vpop.f32.mrf.mxu1 }
 0x693   :  { %v2816_v53 = vadd.f32 %v2798_v10, %v2484_v17  ;;  %v2485_v47 = vadd.f32 %v2468_v29, %v8746_v0  ;;  %v8784_v41 = vadd.f32 %v2828_v39, %v2815_v43 }
 0x694   :  { %v2470_v58 = vpop.f32.mrf.mxu1 }
 0x695   :  { %v2817_v13 = vadd.f32 %v2800_v24, %v2485_v47  ;;  %v2486_v20 = vadd.f32 %v2470_v58, %v8748_v19  ;;  %v8790_v63 = vadd.f32 %v2832_v46, %v2816_v53  ;;  %v2843_v22 = vmax.f32 %v8784_v41, 0.0  ;;  %v7082_v19 = vld [vmem:[%s9482_s14 + $0x98] sm:$0xff]   ;;  %v7087_v24 = vld [vmem:[%s9482_s14 + $0xc0] sm:$0xff]  }
 0x696   :  { %v2474_v27 = vpop.f32.mrf.mxu1  ;;  %6533 = vmatpush3.bf16.msra.mxu0 %v7082_v19 }
 0x697   :  { %v8792_v0 = vadd.f32 %v2828_v39, %v2817_v13  ;;  %v2818_v16 = vadd.f32 %v2802_v30, %v2486_v20  ;;  %v2487_v48 = vadd.f32 %v2474_v27, %v8750_v42  ;;  %v2844_v42 = vmax.f32 %v8790_v63, 0.0  ;;  %6534 = vmatprep.subr.bf16.mxu0 %v7083_v60  ;;  %v7088_v30 = vld [vmem:[%s9482_s14 + $0x80] sm:$0xff]  }
 0x698   :  { %v2476_v23 = vpop.f32.mrf.mxu1 }
 0x699   :  { %v2845_v26 = vmax.f32 %v8792_v0, 0.0  ;;  %v2838_v34 = vadd.f32 %v2832_v46, %v2818_v16  ;;  %v2819_v62 = vadd.f32 %v2806_v12, %v2487_v48  ;;  %v2488_v52 = vadd.f32 %v2476_v23, %v8752_v33  ;;  %v7084_v33 = vld [vmem:[%s9482_s14 + $0x90] sm:$0xff]  }
 0x69a   :  { %v2478_v18 = vpop.f32.mrf.mxu1  ;;  %6535 = vmatpush3.bf16.msra.mxu0 %v7084_v33 }
 0x69b   :  { %v2851_v37 = vadd.f32 %v2845_v26, %v2843_v22  ;;  %v2846_v54 = vmax.f32 %v2838_v34, 0.0  ;;  %v2839_v45 = vadd.f32 %v2828_v39, %v2819_v62  ;;  %v2820_v35 = vadd.f32 %v2808_v11, %v2488_v52  ;;  %6536 = vmatprep.subr.bf16.mxu0 %v7085_v21 }
 0x69c   :  { %v2489_v59 = vadd.f32 %v2478_v18, %v8754_v51  ;;  %v2480_v36 = vpop.f32.mrf.mxu1  ;;  %v7086_v51 = vld [vmem:[%s9482_s14 + $0x88] sm:$0xff]  }
 0x69d   :  { %v2860_v2 = vadd.f32 %v2846_v54, %v2844_v42  ;;  %v2847_v9 = vmax.f32 %v2839_v45, 0.0  ;;  %v2840_v40 = vadd.f32 %v2832_v46, %v2820_v35  ;;  %v2490_v57 = vadd.f32 %v2480_v36, %v8756_v31 }
 0x69e   :  { %v2821_v15 = vadd.f32 %v2810_v28, %v2489_v59  ;;  %6537 = vmatpush3.bf16.msra.mxu0 %v7086_v51 }
 0x69f   :  { %v2852_v10 = vadd.f32 %v2851_v37, %v2847_v9  ;;  %v2848_v38 = vmax.f32 %v2840_v40, 0.0  ;;  %v2822_v44 = vadd.f32 %v2812_v50, %v2490_v57  ;;  %6538 = vmatprep.subr.bf16.mxu0 %v7087_v24 }
 0x6a0   :  { %v2841_v31 = vadd.f32 %v2828_v39, %v2821_v15 }
 0x6a1   :  { %v2861_v4 = vadd.f32 %v2860_v2, %v2848_v38  ;;  %v2842_v1 = vadd.f32 %v2832_v46, %v2822_v44 }
 0x6a2   :  { %v2849_v5 = vmax.f32 %v2841_v31, 0.0  ;;  %6539 = vmatpush3.bf16.msra.mxu0 %v7088_v30 }
 0x6a3   :  { %v2850_v6 = vmax.f32 %v2842_v1, 0.0 }
 0x6a4   :  { %v2853_v8 = vadd.f32 %v2852_v10, %v2849_v5 }
 0x6a5   :  { %v2862_v61 = vadd.f32 %v2861_v4, %v2850_v6 }
 0x6a6   :  { %v2854_v14 = vrot.slane %v2853_v8, 4 }
 0x6a7   :  { %v2863_v55 = vrot.slane %v2862_v61, 4 }
 0x6a8   :  { %v2855_v43 = vadd.f32 %v2854_v14, %v2853_v8 }
 0x6a9   :  { %v2864_v17 = vadd.f32 %v2863_v55, %v2862_v61 }
 0x6aa   :  { %v2856_v12 = vrot.slane %v2855_v43, 2 }
 0x6ab   :  { %v2865_v39 = vrot.slane %v2864_v17, 2 }
 0x6ac   :  { %v2857_v29 = vadd.f32 %v2856_v12, %v2855_v43 }
 0x6ad   :  { %v2866_v53 = vadd.f32 %v2865_v39, %v2864_v17 }
 0x6ae   :  { %v2858_v46 = vrot.slane %v2857_v29, 1 }
 0x6af   :  { %v2867_v47 = vrot.slane %v2866_v53, 1 }
 0x6b0   :  { %v2859_v32 = vadd.f32 %v2858_v46, %v2857_v29 }
 0x6b1   :  { %v2868_v41 = vadd.f32 %v2867_v47, %v2866_v53 }
 0x6b2   :  { %v2870_v58 = vmul.f32 0.03125, %v2859_v32 }
 0x6b3   :  { %v2871_v49 = vmul.f32 0.03125, %v2868_v41 }
 0x6b4   :  { %v8825_v13 = vsub.f32 %v2843_v22, %v2870_v58  ;;  %v8827_v20 = vsub.f32 %v2845_v26, %v2870_v58  ;;  %v8829_v11 = vsub.f32 %v2847_v9, %v2870_v58  ;;  %v8831_v63 = vsub.f32 %v2849_v5, %v2870_v58 }
 0x6b5   :  { %v8833_v27 = vsub.f32 %v2844_v42, %v2871_v49  ;;  %v8835_v0 = vsub.f32 %v2846_v54, %v2871_v49  ;;  %v8837_v16 = vsub.f32 %v2848_v38, %v2871_v49  ;;  %v8839_v48 = vsub.f32 %v2850_v6, %v2871_v49 }
 0x6b6   :  { %v2880_v56 = vmul.f32 %v8825_v13, %v8825_v13  ;;  %v2882_v22 = vmul.f32 %v8827_v20, %v8827_v20  ;;  %v2884_v26 = vmul.f32 %v8829_v11, %v8829_v11  ;;  %v2886_v18 = vmul.f32 %v8831_v63, %v8831_v63 }
 0x6b7   :  { %v2881_v23 = vmul.f32 %v8833_v27, %v8833_v27  ;;  %v2883_v19 = vmul.f32 %v8835_v0, %v8835_v0  ;;  %v2910_v62 = vmul.f32 %v8833_v27, %v8825_v13  ;;  %v2911_v52 = vmul.f32 %v8835_v0, %v8827_v20 }
 0x6b8   :  { %v2888_v34 = vadd.f32 %v2882_v22, %v2880_v56  ;;  %v2885_v28 = vmul.f32 %v8837_v16, %v8837_v16  ;;  %v2912_v54 = vmul.f32 %v8837_v16, %v8829_v11  ;;  %v2887_v35 = vmul.f32 %v8839_v48, %v8839_v48 }
 0x6b9   :  { %v2897_v42 = vadd.f32 %v2883_v19, %v2881_v23  ;;  %v2914_v45 = vadd.f32 %v2911_v52, %v2910_v62  ;;  %v2913_v36 = vmul.f32 %v8839_v48, %v8831_v63 }
 0x6ba   :  { %v2889_v37 = vadd.f32 %v2888_v34, %v2884_v26 }
 0x6bb   :  { %v2898_v60 = vadd.f32 %v2897_v42, %v2885_v28  ;;  %v2915_v33 = vadd.f32 %v2914_v45, %v2912_v54 }
 0x6bc   :  { %v2890_v59 = vadd.f32 %v2889_v37, %v2886_v18  ;;  %v2988_v37 = vld [vmem:[#allocation14] sm:$0x3] }
 0x6bd   :  { %v2899_v2 = vadd.f32 %v2898_v60, %v2887_v35  ;;  %v2916_v40 = vadd.f32 %v2915_v33, %v2913_v36  ;;  %v3036_v36 = vld [vmem:[#allocation17] sm:$0x3]  ;;  %v2993_v33 = vrot.slane %v2988_v37, %v8008_v3 }
 0x6be   :  { %v2891_v9 = vrot.slane %v2890_v59, 4 }
 0x6bf   :  { %v2900_v57 = vrot.slane %v2899_v2, 4  ;;  %v2917_v15 = vrot.slane %v2916_v40, 4 }
 0x6c0   :  { %v2892_v50 = vadd.f32 %v2891_v9, %v2890_v59  ;;  %v3008_v59 = vld [vmem:[#allocation16] sm:$0x3] }
 0x6c1   :  { %v2901_v21 = vadd.f32 %v2900_v57, %v2899_v2  ;;  %v2918_v10 = vadd.f32 %v2917_v15, %v2916_v40  ;;  %v2997_v57 = vrot.slane %v2988_v37, %v8015_v7  ;;  %v3017_v15 = vrot.slane %v3008_v59, %v8015_v7 }
 0x6c2   :  { %v2893_v51 = vrot.slane %v2892_v50, 2 }
 0x6c3   :  { %v2902_v38 = vrot.slane %v2901_v21, 2  ;;  %v2919_v24 = vrot.slane %v2918_v10, 2 }
 0x6c4   :  { %v2894_v44 = vadd.f32 %v2893_v51, %v2892_v50  ;;  %v3013_v50 = vrot.slane %v3008_v59, %v8008_v3  ;;  %v3045_v51 = vrot.slane %v3036_v36, %v8015_v7 }
 0x6c5   :  { %v2903_v31 = vadd.f32 %v2902_v38, %v2901_v21  ;;  %v2920_v1 = vadd.f32 %v2919_v24, %v2918_v10  ;;  %v3041_v21 = vrot.slane %v3036_v36, %v8008_v3 }
 0x6c6   :  { %v2895_v4 = vrot.slane %v2894_v44, 1 }
 0x6c7   :  { %v2904_v5 = vrot.slane %v2903_v31, 1  ;;  %v2921_v6 = vrot.slane %v2920_v1, 1 }
 0x6c8   :  { %v2896_v30 = vadd.f32 %v2895_v4, %v2894_v44 }
 0x6c9   :  { %v2905_v8 = vadd.f32 %v2904_v5, %v2903_v31  ;;  %v2922_v14 = vadd.f32 %v2921_v6, %v2920_v1 }
 0x6ca   :  { %v2906_v61 = vmul.f32 0.03125, %v2896_v30 }
 0x6cb   :  { %v2907_v55 = vmul.f32 0.03125, %v2905_v8  ;;  %v2923_v43 = vmul.f32 0.03125, %v2922_v14 }
 0x6cc   :  { %v2908_v17 = vadd.f32 1e-05, %v2906_v61 }
 0x6cd   :  { %v2909_v12 = vadd.f32 1e-05, %v2907_v55  ;;  %v2925_v29 = vmul.f32 %v2923_v43, %v2923_v43  ;;  %v2950_v18 = vsub.f32 0.0, %v2923_v43 }
 0x6cf   :  { %v2924_v39 = vmul.f32 %v2909_v12, %v2908_v17  ;;  %v2934_v49 = vadd.f32 %v2909_v12, %v2908_v17 }
 0x6d1   :  { %v2926_v53 = vsub.f32 %v2924_v39, %v2925_v29 }
 0x6d3   :  { %7267 = vrsqrt.f32 %v2926_v53  ;;  %vm2929_vm10 = vcmp.eq.f32.partialorder %v2926_v53, inf  ;;  %v2932_v32 = vand.u32 2147483648, %v2926_v53  ;;  %vm2931_vm11 = vcmp.eq.f32.partialorder %v2926_v53, 0.0 }
 0x6e0   :  { %v7268_v46 = vpop.eup %7267 }
 0x6e1   :  { %v2928_v47 = vmul.f32 %v7268_v46, %v2926_v53 }
 0x6e3   :  { %v2930_v41 = vsel %vm2929_vm10, %v2926_v53, %v2928_v47 }
 0x6e4   :  { %v2933_v58 = vsel %vm2931_vm11, %v2932_v32, %v2930_v41 }
 0x6e5   :  { %v2935_v56 = vmul.f32 2.0, %v2933_v58  ;;  %v2946_v28 = vadd.f32 %v2933_v58, %v2909_v12  ;;  %v2947_v42 = vadd.f32 %v2933_v58, %v2908_v17 }
 0x6e7   :  { %v2936_v22 = vadd.f32 %v2935_v56, %v2934_v49 }
 0x6e9   :  { %7269 = vrsqrt.f32 %v2936_v22  ;;  %vm2939_vm12 = vcmp.eq.f32.partialorder %v2936_v22, inf  ;;  %v2942_v26 = vand.u32 2147483648, %v2936_v22  ;;  %vm2941_vm13 = vcmp.eq.f32.partialorder %v2936_v22, 0.0 }
 0x6f6   :  { %v7270_v23 = vpop.eup %7269 }
 0x6f7   :  { %v2938_v19 = vmul.f32 %v7270_v23, %v2936_v22 }
 0x6f9   :  { %v2940_v34 = vsel %vm2939_vm12, %v2936_v22, %v2938_v19 }
 0x6fa   :  { %v2943_v62 = vsel %vm2941_vm13, %v2942_v26, %v2940_v34 }
 0x6fb   :  { %v2944_v52 = vmul.f32 %v2943_v62, %v2933_v58 }
 0x6fd   :  { %7271 = vrcp.f32 %v2944_v52 }
 0x70a   :  { %v7272_v54 = vpop.eup %7271 }
 0x70b   :  { %v2948_v45 = vmul.f32 %v7272_v54, %v2946_v28  ;;  %v2949_v35 = vmul.f32 %v7272_v54, %v2947_v42  ;;  %v2951_v60 = vmul.f32 %v7272_v54, %v2950_v18 }
 0x70d   :  { %v2955_v2 = vrot.slane %v2948_v45, %v8008_v3  ;;  %v2959_v9 = vrot.slane %v2949_v35, %v8008_v3  ;;  %v2971_v40 = vrot.slane %v2951_v60, %v8008_v3 }
 0x70f   :  { %v2960_v10 = vmul.f32 %v2955_v2, %v8825_v13  ;;  %v2961_v38 = vmul.f32 %v2959_v9, %v8833_v27  ;;  %v2962_v44 = vmul.f32 %v2955_v2, %v8827_v20  ;;  %v2963_v24 = vmul.f32 %v2959_v9, %v8835_v0 }
 0x710   :  { %v2964_v31 = vmul.f32 %v2955_v2, %v8829_v11  ;;  %v2965_v4 = vmul.f32 %v2959_v9, %v8837_v16  ;;  %v2966_v1 = vmul.f32 %v2955_v2, %v8831_v63  ;;  %v2967_v5 = vmul.f32 %v2959_v9, %v8839_v48 }
 0x711   :  { %v2972_v30 = vmul.f32 %v2971_v40, %v8833_v27  ;;  %v2973_v6 = vmul.f32 %v2971_v40, %v8825_v13  ;;  %v2974_v8 = vmul.f32 %v2971_v40, %v8835_v0  ;;  %v2975_v61 = vmul.f32 %v2971_v40, %v8827_v20 }
 0x712   :  { %v2976_v14 = vmul.f32 %v2971_v40, %v8837_v16  ;;  %v2977_v55 = vmul.f32 %v2971_v40, %v8829_v11  ;;  %v2978_v43 = vmul.f32 %v2971_v40, %v8839_v48  ;;  %v2979_v17 = vmul.f32 %v2971_v40, %v8831_v63 }
 0x713   :  { %v2980_v12 = vadd.f32 %v2972_v30, %v2960_v10  ;;  %v2981_v39 = vadd.f32 %v2973_v6, %v2961_v38  ;;  %v2982_v29 = vadd.f32 %v2974_v8, %v2962_v44  ;;  %v2983_v53 = vadd.f32 %v2975_v61, %v2963_v24  ;;  %v3141_v38 = vld [vmem:[#allocation19 + $0x4] sm:$0xf]  ;;  %v7091_v24 = vld [vmem:[%s9482_s14 + $0x70] sm:$0xff]   ;;  %v7096_v30 = vld [vmem:[%s9482_s14 + $0x20] sm:$0xff]  }
 0x714   :  { %v2984_v46 = vadd.f32 %v2976_v14, %v2964_v31  ;;  %v2985_v27 = vadd.f32 %v2977_v55, %v2965_v4  ;;  %v2986_v47 = vadd.f32 %v2978_v43, %v2966_v1  ;;  %v2987_v13 = vadd.f32 %v2979_v17, %v2967_v5  ;;  %v7090_v44 = vld [vmem:[%s9482_s14 + $0x38] sm:$0xff]   ;;  %v7092_v31 = vld [vmem:[%s9482_s14 + $0x30] sm:$0xff]   ;;  %v7093_v4 = vld [vmem:[%s9482_s14 + $0x68] sm:$0xff]  }
 0x715   :  { %v3000_v32 = vmul.f32 %v2993_v33, %v2980_v12  ;;  %v3001_v0 = vmul.f32 %v2997_v57, %v2981_v39  ;;  %v3002_v41 = vmul.f32 %v2993_v33, %v2982_v29  ;;  %v3003_v20 = vmul.f32 %v2997_v57, %v2983_v53  ;;  %v7094_v1 = vld [vmem:[%s9482_s14 + $0x28] sm:$0xff]   ;;  %v7095_v5 = vld [vmem:[%s9482_s14 + $0x60] sm:$0xff]   ;;  %v7097_v6 = vld [vmem:[%s9482_s14 + $0x58] sm:$0xff]  }
 0x716   :  { %v3004_v58 = vmul.f32 %v2993_v33, %v2984_v46  ;;  %v3005_v16 = vmul.f32 %v2997_v57, %v2985_v27  ;;  %v3006_v49 = vmul.f32 %v2993_v33, %v2986_v47  ;;  %v3007_v11 = vmul.f32 %v2997_v57, %v2987_v13  ;;  %v7098_v8 = vld [vmem:[%s9482_s14 + $0x18] sm:$0xff]   ;;  %v7099_v61 = vld [vmem:[%s9482_s14 + $0x50] sm:$0xff]   ;;  %v7101_v55 = vld [vmem:[%s9482_s14 + $0x48] sm:$0xff]  }
 0x717   :  { %v3020_v56 = vmul.f32 %v3013_v50, %v2981_v39  ;;  %v3021_v48 = vmul.f32 %v3017_v15, %v2980_v12  ;;  %v3022_v22 = vmul.f32 %v3013_v50, %v2983_v53  ;;  %v3023_v63 = vmul.f32 %v3017_v15, %v2982_v29  ;;  %v7100_v14 = vld [vmem:[%s9482_s14 + $0x10] sm:$0xff]   ;;  %v7102_v43 = vld [vmem:[%s9482_s14 + $0x8] sm:$0xff]   ;;  %v7103_v17 = vld [vmem:[%s9482_s14 + $0x40] sm:$0xff]  }
 0x718   :  { %v3024_v23 = vmul.f32 %v3013_v50, %v2985_v27  ;;  %v3025_v19 = vmul.f32 %v3017_v15, %v2984_v46  ;;  %v3026_v26 = vmul.f32 %v3013_v50, %v2987_v13  ;;  %v3027_v34 = vmul.f32 %v3017_v15, %v2986_v47  ;;  %v7104_v12 = vld [vmem:[%s9482_s14] sm:$0xff]   ;;  %v7105_v39 = vld [vmem:[%s9482_s14 + $0x178] sm:$0xff]  }
 0x719   :  { %v3029_v62 = vadd.f32 %v3021_v48, %v3001_v0  ;;  %v3031_v52 = vadd.f32 %v3023_v63, %v3003_v20  ;;  %v3028_v54 = vadd.f32 %v3020_v56, %v3000_v32  ;;  %v3030_v45 = vadd.f32 %v3022_v22, %v3002_v41  ;;  %v7106_v27 = vld [vmem:[%s9482_s14 + $0x138] sm:$0xff]   ;;  %v7107_v32 = vld [vmem:[%s9482_s14 + $0x170] sm:$0xff]   ;;  %v7111_v22 = vld [vmem:[%s9482_s14 + $0x160] sm:$0xff]  }
 0x71a   :  { %v3032_v28 = vadd.f32 %v3024_v23, %v3004_v58  ;;  %v3033_v42 = vadd.f32 %v3025_v19, %v3005_v16  ;;  %v3034_v18 = vadd.f32 %v3026_v26, %v3006_v49  ;;  %v3035_v37 = vadd.f32 %v3027_v34, %v3007_v11  ;;  %v7108_v41 = vld [vmem:[%s9482_s14 + $0x130] sm:$0xff]   ;;  %v7109_v58 = vld [vmem:[%s9482_s14 + $0x168] sm:$0xff]   ;;  %v7112_v23 = vld [vmem:[%s9482_s14 + $0x120] sm:$0xff]  }
 0x71b   :  { %v3049_v35 = vadd.f32 %v3045_v51, %v3029_v62  ;;  %v3051_v60 = vadd.f32 %v3045_v51, %v3031_v52  ;;  %v3048_v57 = vadd.f32 %v3041_v21, %v3028_v54  ;;  %v3050_v50 = vadd.f32 %v3041_v21, %v3030_v45  ;;  %v7110_v11 = vld [vmem:[%s9482_s14 + $0x128] sm:$0xff]   ;;  %v7113_v19 = vld [vmem:[%s9482_s14 + $0x158] sm:$0xff]   ;;  %v3494_v26 = vld [vmem:[#allocation19 + $0x8] sm:$0xf] }
 0x71c   :  { %v3052_v59 = vadd.f32 %v3041_v21, %v3032_v28  ;;  %v3053_v36 = vadd.f32 %v3045_v51, %v3033_v42  ;;  %v3054_v33 = vadd.f32 %v3041_v21, %v3034_v18  ;;  %v3055_v2 = vadd.f32 %v3045_v51, %v3035_v37  ;;  %v3060_v51 = vld [vmem:[#allocation19] sm:$0xf]  ;;  %v7115_v62 = vld [vmem:[%s9482_s14 + $0x150] sm:$0xff]   ;;  %v7117_v28 = vld [vmem:[%s9482_s14 + $0x148] sm:$0xff]  }
 0x71d   :  { %v8894_v15 = vpack.c.bf16 %v3051_v60, %v3049_v35  ;;  %v8900_v10 = vpack.c.bf16 %v3050_v50, %v3048_v57  ;;  %v7089_v21 = vld [vmem:[%s9482_s14 + $0x78] sm:$0xff]   ;;  %v7116_v52 = vld [vmem:[%s9482_s14 + $0x110] sm:$0xff]   ;;  %v7119_v18 = vld [vmem:[%s9482_s14 + $0x108] sm:$0xff]  }
 0x71e   :  { %v8890_v9 = vpack.c.bf16 %v3054_v33, %v3052_v59  ;;  %v8892_v40 = vpack.c.bf16 %v3055_v2, %v3053_v36  ;;  %v7114_v34 = vld [vmem:[%s9482_s14 + $0x118] sm:$0xff]   ;;  %v3712_v37 = vld [vmem:[#allocation19 + $0xc] sm:$0xf]  ;;  %v7122_v35 = vld [vmem:[%s9482_s14 + $0x1f0] sm:$0xff]  }
 0x71f   :  { %v7118_v42 = vld [vmem:[%s9482_s14 + $0x1f8] sm:$0xff]   ;;  %v7121_v45 = vld [vmem:[%s9482_s14 + $0x140] sm:$0xff]   ;;  %v7124_v59 = vld [vmem:[%s9482_s14 + $0x1b0] sm:$0xff]  }
 0x720   :  { %3077 = vmatprep.subr.bf16.mxu1 %v8892_v40  ;;  %3510 = vmatprep.subr.bf16.mxu0 %v8892_v40  ;;  %v7120_v54 = vld [vmem:[%s9482_s14 + $0x1b8] sm:$0xff]   ;;  %v7123_v60 = vld [vmem:[%s9482_s14 + $0x100] sm:$0xff]   ;;  %v7125_v36 = vld [vmem:[%s9482_s14 + $0x1e8] sm:$0xff]  }
 0x721   :  { %3078 = vmatpush1.bf16.msra.mxu1 %v8890_v9  ;;  %v7126_v33 = vld [vmem:[%s9482_s14 + $0x1a8] sm:$0xff]   ;;  %v7127_v2 = vld [vmem:[%s9482_s14 + $0x1e0] sm:$0xff]   ;;  %v7129_v50 = vld [vmem:[%s9482_s14 + $0x1d8] sm:$0xff]  }
 0x722   :  { %3079 = vmatprep.subr.bf16.mxu1 %v8894_v15  ;;  %v7128_v57 = vld [vmem:[%s9482_s14 + $0x1a0] sm:$0xff]  }
 0x725   :  { %3080 = vmatpush1.bf16.msra.mxu1 %v8900_v10 }
 0x726   :  { %3157 = vmatprep.subr.bf16.mxu1 %v8892_v40 }
 0x728   :  { %6027 = vmatmul.mubr.msk.bf16.vlgmr.msra.gmra.mxu1 %vm3061_vm14, %v3060_v51  ;;  %v7130_v51 = vld [vmem:[%s9482_s14 + $0x198] sm:$0xff]  }
 0x729   :  { %3158 = vmatpush1.bf16.msra.mxu1 %v8890_v9  ;;  %3177 = vmatprep.mubr.bf16.mxu1 %v7594_v25 }
 0x72a   :  { %3159 = vmatprep.subr.bf16.mxu1 %v8894_v15 }
 0x72d   :  { %3160 = vmatpush1.bf16.msra.mxu1 %v8900_v10 }
 0x72e   :  { %6546 = vmatprep.subr.bf16.mxu1 %v7089_v21  ;;  %v7131_v21 = vld [vmem:[%s9482_s14 + $0x1d0] sm:$0xff]  }
 0x730   :  { %6028 = vmatmul.mubr.msk.bf16.vlgmr.msra.gmra.mxu1 %vm3061_vm14, %v3141_v38  ;;  %v7132_v38 = vld [vmem:[%s9482_s14 + $0x190] sm:$0xff]  }
 0x731   :  { %6547 = vmatpush3.bf16.msra.mxu1 %v7090_v44  ;;  %v7133_v44 = vld [vmem:[%s9482_s14 + $0x1c8] sm:$0xff]  }
 0x732   :  { %6548 = vmatprep.subr.bf16.mxu1 %v7091_v24  ;;  %v7134_v24 = vld [vmem:[%s9482_s14 + $0x188] sm:$0xff]  }
 0x735   :  { %6549 = vmatpush3.bf16.msra.mxu1 %v7092_v31  ;;  %v7135_v31 = vld [vmem:[%s9482_s14 + $0x1c0] sm:$0xff]  }
 0x736   :  { %6550 = vmatprep.subr.bf16.mxu1 %v7093_v4  ;;  %v7136_v4 = vld [vmem:[%s9482_s14 + $0x180] sm:$0xff]  }
 0x739   :  { %6551 = vmatpush3.bf16.msra.mxu1 %v7094_v1 }
 0x73a   :  { %6552 = vmatprep.subr.bf16.mxu1 %v7095_v5 }
 0x73d   :  { %6553 = vmatpush3.bf16.msra.mxu1 %v7096_v30 }
 0x73e   :  { %6554 = vmatprep.subr.bf16.mxu1 %v7097_v6 }
 0x741   :  { %6555 = vmatpush3.bf16.msra.mxu1 %v7098_v8 }
 0x742   :  { %6556 = vmatprep.subr.bf16.mxu1 %v7099_v61 }
 0x745   :  { %6557 = vmatpush3.bf16.msra.mxu1 %v7100_v14 }
 0x746   :  { %6558 = vmatprep.subr.bf16.mxu1 %v7101_v55 }
 0x749   :  { %6559 = vmatpush3.bf16.msra.mxu1 %v7102_v43 }
 0x74a   :  { %6560 = vmatprep.subr.bf16.mxu1 %v7103_v17 }
 0x74d   :  { %6561 = vmatpush3.bf16.msra.mxu1 %v7104_v12 }
 0x74e   :  { %6568 = vmatprep.subr.bf16.mxu1 %v7105_v39 }
 0x7e8   :  { %v3099_v29 = vpop.f32.mrf.mxu1 }
 0x7e9   :  { %v3106_v47 = vpack.c.bf16 %v3099_v29, %v3099_v29 }
 0x7ea   :  { %v3101_v53 = vpop.f32.mrf.mxu1 }
 0x7eb   :  { %v3107_v46 = vpack.c.bf16 %v3101_v53, %v3101_v53 }
 0x7ec   :  { %v3103_v13 = vpop.f32.mrf.mxu1 }
 0x7ed   :  { %3485 = vmatprep.mubr.bf16.mxu1 %v3107_v46 }
 0x7ee   :  { %v3104_v0 = vpop.f32.mrf.mxu1  ;;  %3486 = vmatmul.mubr.bf16.vlgmr.msra.gmra.mxu1 %v3106_v47 }
 0x7ef   :  { %6569 = vmatpush3.bf16.msra.mxu1 %v7106_v27 }
 0x7f0   :  { %v3179_v20 = vpop.f32.mrf.mxu1  ;;  %6570 = vmatprep.subr.bf16.mxu1 %v7107_v32  ;;  %v7137_v32 = vld [vmem:[%s9482_s14 + $0x278] sm:$0xff]  }
 0x7f1   :  { %v3186_v56 = vpack.c.bf16 %v3179_v20, %v3179_v20 }
 0x7f2   :  { %v3181_v16 = vpop.f32.mrf.mxu1 }
 0x7f3   :  { %v3187_v49 = vpack.c.bf16 %v3181_v16, %v3181_v16  ;;  %6571 = vmatpush3.bf16.msra.mxu1 %v7108_v41  ;;  %v7138_v16 = vld [vmem:[%s9482_s14 + $0x238] sm:$0xff]  }
 0x7f4   :  { %v3183_v48 = vpop.f32.mrf.mxu1  ;;  %6572 = vmatprep.subr.bf16.mxu1 %v7109_v58  ;;  %v3930_v58 = vld [vmem:[#allocation19 + $0x10] sm:$0xf] }
 0x7f5   :  { %3349 = vmatprep.mubr.bf16.mxu0 %v3187_v49  ;;  %v7139_v49 = vld [vmem:[%s9482_s14 + $0x270] sm:$0xff]  }
 0x7f6   :  { %v3184_v63 = vpop.f32.mrf.mxu1  ;;  %3350 = vmatmul.mubr.bf16.vlgmr.msra.gmra.mxu0 %v3186_v56  ;;  %v7140_v48 = vld [vmem:[%s9482_s14 + $0x230] sm:$0xff]  }
 0x7f7   :  { %3511 = vmatpush1.bf16.msra.mxu0 %v8890_v9  ;;  %6573 = vmatpush3.bf16.msra.mxu1 %v7110_v11  ;;  %v7142_v63 = vld [vmem:[%s9482_s14 + $0x2f8] sm:$0xff]  }
 0x7f8   :  { %3512 = vmatprep.subr.bf16.mxu0 %v8894_v15  ;;  %6574 = vmatprep.subr.bf16.mxu1 %v7111_v22  ;;  %v7141_v22 = vld [vmem:[%s9482_s14 + $0x268] sm:$0xff]  }
 0x7f9   :  { %3530 = vmatprep.mubr.bf16.mxu0 %v7594_v25 }
 0x7fb   :  { %3513 = vmatpush1.bf16.msra.mxu0 %v8900_v10  ;;  %6575 = vmatpush3.bf16.msra.mxu1 %v7112_v23  ;;  %v7143_v23 = vld [vmem:[%s9482_s14 + $0x228] sm:$0xff]  }
 0x7fc   :  { %3728 = vmatprep.subr.bf16.mxu0 %v8892_v40  ;;  %6576 = vmatprep.subr.bf16.mxu1 %v7113_v19  ;;  %v4148_v19 = vld [vmem:[#allocation19 + $0x14] sm:$0xf] }
 0x7fe   :  { %6093 = vmatmul.mubr.msk.bf16.vlgmr.msra.gmra.mxu0 %vm3061_vm14, %v3494_v26  ;;  %v7144_v26 = vld [vmem:[%s9482_s14 + $0x2b8] sm:$0xff]  }
 0x7ff   :  { %6577 = vmatpush3.bf16.msra.mxu1 %v7114_v34  ;;  %3729 = vmatpush1.bf16.msra.mxu0 %v8890_v9  ;;  %v7145_v34 = vld [vmem:[%s9482_s14 + $0x260] sm:$0xff]  }
 0x800   :  { %3730 = vmatprep.subr.bf16.mxu0 %v8894_v15  ;;  %6578 = vmatprep.subr.bf16.mxu1 %v7115_v62  ;;  %v7146_v62 = vld [vmem:[%s9482_s14 + $0x2f0] sm:$0xff]  }
 0x801   :  { %3748 = vmatprep.mubr.bf16.mxu0 %v7594_v25 }
 0x803   :  { %6579 = vmatpush3.bf16.msra.mxu1 %v7116_v52  ;;  %3731 = vmatpush1.bf16.msra.mxu0 %v8900_v10  ;;  %v7147_v52 = vld [vmem:[%s9482_s14 + $0x220] sm:$0xff]  }
 0x804   :  { %6580 = vmatprep.subr.bf16.mxu1 %v7117_v28  ;;  %6590 = vmatprep.subr.bf16.mxu0 %v7118_v42  ;;  %v7148_v28 = vld [vmem:[%s9482_s14 + $0x2b0] sm:$0xff]   ;;  %v7149_v42 = vld [vmem:[%s9482_s14 + $0x258] sm:$0xff]  }
 0x806   :  { %6142 = vmatmul.mubr.msk.bf16.vlgmr.msra.gmra.mxu0 %vm3061_vm14, %v3712_v37  ;;  %v7151_v37 = vld [vmem:[%s9482_s14 + $0x218] sm:$0xff]  }
 0x807   :  { %6581 = vmatpush3.bf16.msra.mxu1 %v7119_v18  ;;  %6591 = vmatpush3.bf16.msra.mxu0 %v7120_v54  ;;  %v7150_v18 = vld [vmem:[%s9482_s14 + $0x2e8] sm:$0xff]  }
 0x808   :  { %6582 = vmatprep.subr.bf16.mxu1 %v7121_v45  ;;  %6592 = vmatprep.subr.bf16.mxu0 %v7122_v35  ;;  %v7152_v54 = vld [vmem:[%s9482_s14 + $0x2a8] sm:$0xff]   ;;  %v7153_v45 = vld [vmem:[%s9482_s14 + $0x250] sm:$0xff]   ;;  %v7154_v35 = vld [vmem:[%s9482_s14 + $0x2e0] sm:$0xff]  }
 0x80b   :  { %6583 = vmatpush3.bf16.msra.mxu1 %v7123_v60  ;;  %6593 = vmatpush3.bf16.msra.mxu0 %v7124_v59  ;;  %v7155_v60 = vld [vmem:[%s9482_s14 + $0x210] sm:$0xff]   ;;  %v7156_v59 = vld [vmem:[%s9482_s14 + $0x2a0] sm:$0xff]  }
 0x80c   :  { %3946 = vmatprep.subr.bf16.mxu1 %v8892_v40  ;;  %6594 = vmatprep.subr.bf16.mxu0 %v7125_v36  ;;  %v7157_v36 = vld [vmem:[%s9482_s14 + $0x248] sm:$0xff]  }
 0x80f   :  { %6595 = vmatpush3.bf16.msra.mxu0 %v7126_v33  ;;  %v7158_v33 = vld [vmem:[%s9482_s14 + $0x2d8] sm:$0xff]  }
 0x810   :  { %6596 = vmatprep.subr.bf16.mxu0 %v7127_v2  ;;  %v7159_v2 = vld [vmem:[%s9482_s14 + $0x208] sm:$0xff]  }
 0x813   :  { %6597 = vmatpush3.bf16.msra.mxu0 %v7128_v57  ;;  %v7160_v57 = vld [vmem:[%s9482_s14 + $0x298] sm:$0xff]  }
 0x814   :  { %6598 = vmatprep.subr.bf16.mxu0 %v7129_v50  ;;  %v7161_v50 = vld [vmem:[%s9482_s14 + $0x240] sm:$0xff]  }
 0x817   :  { %6599 = vmatpush3.bf16.msra.mxu0 %v7130_v51  ;;  %v7162_v51 = vld [vmem:[%s9482_s14 + $0x2d0] sm:$0xff]  }
 0x818   :  { %6600 = vmatprep.subr.bf16.mxu0 %v7131_v21  ;;  %v7163_v21 = vld [vmem:[%s9482_s14 + $0x200] sm:$0xff]  }
 0x81b   :  { %6601 = vmatpush3.bf16.msra.mxu0 %v7132_v38  ;;  %v7164_v38 = vld [vmem:[%s9482_s14 + $0x290] sm:$0xff]  }
 0x81c   :  { %6602 = vmatprep.subr.bf16.mxu0 %v7133_v44  ;;  %v7165_v44 = vld [vmem:[%s9482_s14 + $0x2c8] sm:$0xff]  }
 0x81f   :  { %6603 = vmatpush3.bf16.msra.mxu0 %v7134_v24  ;;  %v7166_v24 = vld [vmem:[%s9482_s14 + $0x288] sm:$0xff]  }
 0x820   :  { %6604 = vmatprep.subr.bf16.mxu0 %v7135_v31  ;;  %v7167_v31 = vld [vmem:[%s9482_s14 + $0x2c0] sm:$0xff]  }
 0x823   :  { %6605 = vmatpush3.bf16.msra.mxu0 %v7136_v4  ;;  %v7168_v4 = vld [vmem:[%s9482_s14 + $0x280] sm:$0xff]  }
 0x824   :  { %4164 = vmatprep.subr.bf16.mxu0 %v8892_v40 }
 0x8ae   :  { %v6562_v1 = vpop.f32.mrf.mxu1 }
 0x8b0   :  { %v6563_v5 = vpop.f32.mrf.mxu1 }
 0x8b1   :  { %v6564_v30 = vadd.f32 %v6563_v5, %v6562_v1 }
 0x8b2   :  { %v6565_v6 = vpop.f32.mrf.mxu1 }
 0x8b4   :  { %v6566_v8 = vpop.f32.mrf.mxu1 }
 0x8b6   :  { %v6540_v61 = vpop.f32.mrf.mxu0 }
 0x8b8   :  { %v6541_v14 = vpop.f32.mrf.mxu0 }
 0x8b9   :  { %v6542_v55 = vadd.f32 %v6541_v14, %v6540_v61 }
 0x8ba   :  { %v6543_v43 = vpop.f32.mrf.mxu0 }
 0x8bb   :  { %v9067_v17 = vadd.f32 %v6564_v30, %v6542_v55 }
 0x8bc   :  { %v6544_v12 = vpop.f32.mrf.mxu0 }
 0x8be   :  { %v3532_v39 = vpop.f32.mrf.mxu0 }
 0x8bf   :  { %v3539_v46 = vpack.c.bf16 %v3532_v39, %v3532_v39 }
 0x8c0   :  { %v3534_v29 = vpop.f32.mrf.mxu0 }
 0x8c1   :  { %v3540_v53 = vpack.c.bf16 %v3534_v29, %v3534_v29 }
 0x8c2   :  { %v3536_v27 = vpop.f32.mrf.mxu0 }
 0x8c3   :  { %3702 = vmatprep.mubr.bf16.mxu1 %v3540_v53 }
 0x8c4   :  { %v3537_v47 = vpop.f32.mrf.mxu0  ;;  %3703 = vmatmul.mubr.bf16.vlgmr.msra.gmra.mxu1 %v3539_v46 }
 0x8c5   :  { %3947 = vmatpush1.bf16.msra.mxu1 %v8890_v9  ;;  %3966 = vmatprep.mubr.bf16.mxu1 %v7594_v25 }
 0x8c6   :  { %3948 = vmatprep.subr.bf16.mxu1 %v8894_v15  ;;  %v3750_v13 = vpop.f32.mrf.mxu0 }
 0x8c7   :  { %v3757_v0 = vpack.c.bf16 %v3750_v13, %v3750_v13 }
 0x8c8   :  { %v3752_v41 = vpop.f32.mrf.mxu0 }
 0x8c9   :  { %v3758_v20 = vpack.c.bf16 %v3752_v41, %v3752_v41  ;;  %3949 = vmatpush1.bf16.msra.mxu1 %v8900_v10 }
 0x8ca   :  { %6612 = vmatprep.subr.bf16.mxu1 %v7137_v32  ;;  %v3754_v11 = vpop.f32.mrf.mxu0 }
 0x8cb   :  { %3920 = vmatprep.mubr.bf16.mxu0 %v3758_v20  ;;  %v7171_v11 = vld [vmem:[%s9482_s14 + $0x370] sm:$0xff]  }
 0x8cc   :  { %3921 = vmatmul.mubr.bf16.vlgmr.msra.gmra.mxu0 %v3757_v0  ;;  %6191 = vmatmul.mubr.msk.bf16.vlgmr.msra.gmra.mxu1 %vm3061_vm14, %v3930_v58  ;;  %v3755_v56 = vpop.f32.mrf.mxu0  ;;  %v7169_v0 = vld [vmem:[%s9482_s14 + $0x378] sm:$0xff]  }
 0x8cd   :  { %6613 = vmatpush3.bf16.msra.mxu1 %v7138_v16  ;;  %4165 = vmatpush1.bf16.msra.mxu0 %v8890_v9  ;;  %v4366_v16 = vld [vmem:[#allocation19 + $0x18] sm:$0xf] }
 0x8ce   :  { %4166 = vmatprep.subr.bf16.mxu0 %v8894_v15  ;;  %6614 = vmatprep.subr.bf16.mxu1 %v7139_v49  ;;  %v7170_v49 = vld [vmem:[%s9482_s14 + $0x338] sm:$0xff]  }
 0x8cf   :  { %4184 = vmatprep.mubr.bf16.mxu0 %v7594_v25 }
 0x8d1   :  { %6615 = vmatpush3.bf16.msra.mxu1 %v7140_v48  ;;  %4167 = vmatpush1.bf16.msra.mxu0 %v8900_v10 }
 0x8d2   :  { %6616 = vmatprep.subr.bf16.mxu1 %v7141_v22  ;;  %6634 = vmatprep.subr.bf16.mxu0 %v7142_v63  ;;  %v7172_v22 = vld [vmem:[%s9482_s14 + $0x330] sm:$0xff]   ;;  %v7173_v63 = vld [vmem:[%s9482_s14 + $0x368] sm:$0xff]  }
 0x8d4   :  { %6240 = vmatmul.mubr.msk.bf16.vlgmr.msra.gmra.mxu0 %vm3061_vm14, %v4148_v19  ;;  %v7174_v19 = vld [vmem:[%s9482_s14 + $0x328] sm:$0xff]  }
 0x8d5   :  { %6617 = vmatpush3.bf16.msra.mxu1 %v7143_v23  ;;  %6635 = vmatpush3.bf16.msra.mxu0 %v7144_v26  ;;  %v7185_v23 = vld [vmem:[%s9482_s14 + $0x3f8] sm:$0xff]   ;;  %v4584_v26 = vld [vmem:[#allocation19 + $0x1c] sm:$0xf] }
 0x8d6   :  { %6618 = vmatprep.subr.bf16.mxu1 %v7145_v34  ;;  %6636 = vmatprep.subr.bf16.mxu0 %v7146_v62  ;;  %v7186_v34 = vld [vmem:[%s9482_s14 + $0x3b8] sm:$0xff]   ;;  %v7175_v62 = vld [vmem:[%s9482_s14 + $0x360] sm:$0xff]  }
 0x8d9   :  { %6619 = vmatpush3.bf16.msra.mxu1 %v7147_v52  ;;  %6637 = vmatpush3.bf16.msra.mxu0 %v7148_v28  ;;  %v7187_v52 = vld [vmem:[%s9482_s14 + $0x3f0] sm:$0xff]   ;;  %v7176_v28 = vld [vmem:[%s9482_s14 + $0x320] sm:$0xff]  }
 0x8da   :  { %6620 = vmatprep.subr.bf16.mxu1 %v7149_v42  ;;  %6638 = vmatprep.subr.bf16.mxu0 %v7150_v18  ;;  %v7188_v42 = vld [vmem:[%s9482_s14 + $0x3b0] sm:$0xff]   ;;  %v7177_v18 = vld [vmem:[%s9482_s14 + $0x358] sm:$0xff]  }
 0x8dd   :  { %6621 = vmatpush3.bf16.msra.mxu1 %v7151_v37  ;;  %6639 = vmatpush3.bf16.msra.mxu0 %v7152_v54  ;;  %v7189_v37 = vld [vmem:[%s9482_s14 + $0x3e8] sm:$0xff]   ;;  %v7178_v54 = vld [vmem:[%s9482_s14 + $0x318] sm:$0xff]  }
 0x8de   :  { %6622 = vmatprep.subr.bf16.mxu1 %v7153_v45  ;;  %6640 = vmatprep.subr.bf16.mxu0 %v7154_v35  ;;  %v7190_v45 = vld [vmem:[%s9482_s14 + $0x3a8] sm:$0xff]   ;;  %v7179_v35 = vld [vmem:[%s9482_s14 + $0x350] sm:$0xff]  }
 0x8e1   :  { %6623 = vmatpush3.bf16.msra.mxu1 %v7155_v60  ;;  %6641 = vmatpush3.bf16.msra.mxu0 %v7156_v59  ;;  %v7180_v60 = vld [vmem:[%s9482_s14 + $0x310] sm:$0xff]   ;;  %v7181_v59 = vld [vmem:[%s9482_s14 + $0x348] sm:$0xff]  }
 0x8e2   :  { %6624 = vmatprep.subr.bf16.mxu1 %v7157_v36  ;;  %6642 = vmatprep.subr.bf16.mxu0 %v7158_v33  ;;  %v7182_v36 = vld [vmem:[%s9482_s14 + $0x308] sm:$0xff]   ;;  %v7183_v33 = vld [vmem:[%s9482_s14 + $0x340] sm:$0xff]  }
 0x8e5   :  { %6625 = vmatpush3.bf16.msra.mxu1 %v7159_v2  ;;  %6643 = vmatpush3.bf16.msra.mxu0 %v7160_v57  ;;  %v7184_v2 = vld [vmem:[%s9482_s14 + $0x300] sm:$0xff]  }
 0x8e6   :  { %6626 = vmatprep.subr.bf16.mxu1 %v7161_v50  ;;  %6644 = vmatprep.subr.bf16.mxu0 %v7162_v51  ;;  %v7191_v57 = vld [vmem:[%s9482_s14 + $0x3e0] sm:$0xff]   ;;  %v7193_v51 = vld [vmem:[%s9482_s14 + $0x3d8] sm:$0xff]  }
 0x8e7   :  { %v7192_v50 = vld [vmem:[%s9482_s14 + $0x3a0] sm:$0xff]  }
 0x8e9   :  { %6627 = vmatpush3.bf16.msra.mxu1 %v7163_v21  ;;  %6645 = vmatpush3.bf16.msra.mxu0 %v7164_v38  ;;  %v7194_v21 = vld [vmem:[%s9482_s14 + $0x398] sm:$0xff]   ;;  %v7196_v38 = vld [vmem:[%s9482_s14 + $0x390] sm:$0xff]  }
 0x8ea   :  { %4382 = vmatprep.subr.bf16.mxu1 %v8892_v40  ;;  %6646 = vmatprep.subr.bf16.mxu0 %v7165_v44  ;;  %v7197_v44 = vld [vmem:[%s9482_s14 + $0x3c8] sm:$0xff]  }
 0x8ed   :  { %6647 = vmatpush3.bf16.msra.mxu0 %v7166_v24  ;;  %v7198_v24 = vld [vmem:[%s9482_s14 + $0x388] sm:$0xff]  }
 0x8ee   :  { %6648 = vmatprep.subr.bf16.mxu0 %v7167_v31  ;;  %v7199_v31 = vld [vmem:[%s9482_s14 + $0x3c0] sm:$0xff]  }
 0x8f1   :  { %6649 = vmatpush3.bf16.msra.mxu0 %v7168_v4  ;;  %v7200_v4 = vld [vmem:[%s9482_s14 + $0x380] sm:$0xff]  }
 0x8f2   :  { %4600 = vmatprep.subr.bf16.mxu0 %v8892_v40 }
 0x984   :  { %v6584_v1 = vpop.f32.mrf.mxu1 }
 0x986   :  { %v6585_v5 = vpop.f32.mrf.mxu1 }
 0x987   :  { %v6586_v30 = vadd.f32 %v6585_v5, %v6584_v1 }
 0x988   :  { %v6587_v6 = vpop.f32.mrf.mxu1 }
 0x989   :  { %v3710_v8 = vadd.f32 %v6586_v30, %v9067_v17 }
 0x98a   :  { %v6588_v61 = vpop.f32.mrf.mxu1 }
 0x98c   :  { %v6606_v14 = vpop.f32.mrf.mxu0  ;;  %v3968_v55 = vpop.f32.mrf.mxu1 }
 0x98d   :  { %v3975_v53 = vpack.c.bf16 %v3968_v55, %v3968_v55 }
 0x98e   :  { %v6607_v43 = vpop.f32.mrf.mxu0  ;;  %v3970_v12 = vpop.f32.mrf.mxu1 }
 0x98f   :  { %v6608_v39 = vadd.f32 %v6607_v43, %v6606_v14  ;;  %v3976_v29 = vpack.c.bf16 %v3970_v12, %v3970_v12 }
 0x990   :  { %v6609_v46 = vpop.f32.mrf.mxu0  ;;  %v3972_v27 = vpop.f32.mrf.mxu1 }
 0x991   :  { %v9178_v47 = vadd.f32 %v6608_v39, %v3710_v8  ;;  %4138 = vmatprep.mubr.bf16.mxu1 %v3976_v29 }
 0x992   :  { %v6610_v13 = vpop.f32.mrf.mxu0  ;;  %v3973_v32 = vpop.f32.mrf.mxu1  ;;  %4139 = vmatmul.mubr.bf16.vlgmr.msra.gmra.mxu1 %v3975_v53 }
 0x993   :  { %4383 = vmatpush1.bf16.msra.mxu1 %v8890_v9  ;;  %4402 = vmatprep.mubr.bf16.mxu1 %v7594_v25 }
 0x994   :  { %4384 = vmatprep.subr.bf16.mxu1 %v8894_v15  ;;  %v4186_v17 = vpop.f32.mrf.mxu0 }
 0x995   :  { %v4193_v41 = vpack.c.bf16 %v4186_v17, %v4186_v17 }
 0x996   :  { %v4188_v20 = vpop.f32.mrf.mxu0 }
 0x997   :  { %v4194_v58 = vpack.c.bf16 %v4188_v20, %v4188_v20  ;;  %4385 = vmatpush1.bf16.msra.mxu1 %v8900_v10 }
 0x998   :  { %6656 = vmatprep.subr.bf16.mxu1 %v7169_v0  ;;  %v4190_v56 = vpop.f32.mrf.mxu0  ;;  %v7201_v0 = vld [vmem:[%s9482_s14 + $0x478] sm:$0xff]  }
 0x999   :  { %4356 = vmatprep.mubr.bf16.mxu0 %v4194_v58  ;;  %v7205_v56 = vld [vmem:[%s9482_s14 + $0x468] sm:$0xff]  }
 0x99a   :  { %4357 = vmatmul.mubr.bf16.vlgmr.msra.gmra.mxu0 %v4193_v41  ;;  %6289 = vmatmul.mubr.msk.bf16.vlgmr.msra.gmra.mxu1 %vm3061_vm14, %v4366_v16  ;;  %v4191_v48 = vpop.f32.mrf.mxu0  ;;  %v4802_v16 = vld [vmem:[#allocation19 + $0x20] sm:$0xf] }
 0x99b   :  { %6657 = vmatpush3.bf16.msra.mxu1 %v7170_v49  ;;  %4601 = vmatpush1.bf16.msra.mxu0 %v8890_v9  ;;  %v7202_v49 = vld [vmem:[%s9482_s14 + $0x438] sm:$0xff]   ;;  %v7206_v48 = vld [vmem:[%s9482_s14 + $0x428] sm:$0xff]  }
 0x99c   :  { %4602 = vmatprep.subr.bf16.mxu0 %v8894_v15  ;;  %6658 = vmatprep.subr.bf16.mxu1 %v7171_v11 }
 0x99d   :  { %4620 = vmatprep.mubr.bf16.mxu0 %v7594_v25 }
 0x99f   :  { %6659 = vmatpush3.bf16.msra.mxu1 %v7172_v22  ;;  %4603 = vmatpush1.bf16.msra.mxu0 %v8900_v10  ;;  %v7207_v22 = vld [vmem:[%s9482_s14 + $0x460] sm:$0xff]  }
 0x9a0   :  { %6660 = vmatprep.subr.bf16.mxu1 %v7173_v63  ;;  %6678 = vmatprep.subr.bf16.mxu0 %v7185_v23  ;;  %v7208_v63 = vld [vmem:[%s9482_s14 + $0x420] sm:$0xff]   ;;  %v7209_v23 = vld [vmem:[%s9482_s14 + $0x458] sm:$0xff]  }
 0x9a2   :  { %6338 = vmatmul.mubr.msk.bf16.vlgmr.msra.gmra.mxu0 %vm3061_vm14, %v4584_v26  ;;  %v7211_v26 = vld [vmem:[%s9482_s14 + $0x450] sm:$0xff]  }
 0x9a3   :  { %6661 = vmatpush3.bf16.msra.mxu1 %v7174_v19  ;;  %6679 = vmatpush3.bf16.msra.mxu0 %v7186_v34  ;;  %v7210_v19 = vld [vmem:[%s9482_s14 + $0x418] sm:$0xff]   ;;  %v7212_v34 = vld [vmem:[%s9482_s14 + $0x410] sm:$0xff]  }
 0x9a4   :  { %6662 = vmatprep.subr.bf16.mxu1 %v7175_v62  ;;  %6680 = vmatprep.subr.bf16.mxu0 %v7187_v52  ;;  %v7213_v62 = vld [vmem:[%s9482_s14 + $0x448] sm:$0xff]  }
 0x9a5   :  { %v7214_v52 = vld [vmem:[%s9482_s14 + $0x408] sm:$0xff]  }
 0x9a7   :  { %6663 = vmatpush3.bf16.msra.mxu1 %v7176_v28  ;;  %6681 = vmatpush3.bf16.msra.mxu0 %v7188_v42  ;;  %v7215_v28 = vld [vmem:[%s9482_s14 + $0x440] sm:$0xff]  }
 0x9a8   :  { %6664 = vmatprep.subr.bf16.mxu1 %v7177_v18  ;;  %6682 = vmatprep.subr.bf16.mxu0 %v7189_v37  ;;  %v7216_v42 = vld [vmem:[%s9482_s14 + $0x400] sm:$0xff]  }
 0x9ab   :  { %6665 = vmatpush3.bf16.msra.mxu1 %v7178_v54  ;;  %6683 = vmatpush3.bf16.msra.mxu0 %v7190_v45 }
 0x9ac   :  { %6666 = vmatprep.subr.bf16.mxu1 %v7179_v35  ;;  %6684 = vmatprep.subr.bf16.mxu0 %v7191_v57 }
 0x9af   :  { %6667 = vmatpush3.bf16.msra.mxu1 %v7180_v60  ;;  %6685 = vmatpush3.bf16.msra.mxu0 %v7192_v50 }
 0x9b0   :  { %6668 = vmatprep.subr.bf16.mxu1 %v7181_v59  ;;  %6686 = vmatprep.subr.bf16.mxu0 %v7193_v51 }
 0x9b3   :  { %6669 = vmatpush3.bf16.msra.mxu1 %v7182_v36  ;;  %6687 = vmatpush3.bf16.msra.mxu0 %v7194_v21 }
 0x9b4   :  { %6670 = vmatprep.subr.bf16.mxu1 %v7183_v33 }
 0x9b7   :  { %6671 = vmatpush3.bf16.msra.mxu1 %v7184_v2 }
 0x9b8   :  { %4818 = vmatprep.subr.bf16.mxu1 %v8892_v40  ;;  %v7195_v40 = vld [vmem:[%s9482_s14 + $0x3d0] sm:$0xff]  }
 0x9b9   :  { %6688 = vmatprep.subr.bf16.mxu0 %v7195_v40 }
 0x9ba   :  { %6689 = vmatpush3.bf16.msra.mxu0 %v7196_v38 }
 0x9bb   :  { %6690 = vmatprep.subr.bf16.mxu0 %v7197_v44 }
 0x9be   :  { %6691 = vmatpush3.bf16.msra.mxu0 %v7198_v24 }
 0x9bf   :  { %6692 = vmatprep.subr.bf16.mxu0 %v7199_v31  ;;  %v7595_v31 = vmov 0.0  }
 0x9c2   :  { %6693 = vmatpush3.bf16.msra.mxu0 %v7200_v4 }
 0x9c3   :  { %6802 = vmatprep.subr.bf16.mxu0 %v7595_v31 }
 0xa52   :  { %v6628_v1 = vpop.f32.mrf.mxu1 }
 0xa54   :  { %v6629_v5 = vpop.f32.mrf.mxu1 }
 0xa55   :  { %v6630_v30 = vadd.f32 %v6629_v5, %v6628_v1 }
 0xa56   :  { %v6631_v6 = vpop.f32.mrf.mxu1 }
 0xa57   :  { %v4146_v8 = vadd.f32 %v6630_v30, %v9178_v47  ;;  %v6436_v30 = vld [vmem:[%s9483_s15] ss:$0 sm:$0xff] }
 0xa58   :  { %v6632_v61 = vpop.f32.mrf.mxu1 }
 0xa5a   :  { %v6650_v14 = vpop.f32.mrf.mxu0  ;;  %v4404_v55 = vpop.f32.mrf.mxu1 }
 0xa5b   :  { %v4411_v53 = vpack.c.bf16 %v4404_v55, %v4404_v55 }
 0xa5c   :  { %v6651_v43 = vpop.f32.mrf.mxu0  ;;  %v4406_v12 = vpop.f32.mrf.mxu1 }
 0xa5d   :  { %v6652_v39 = vadd.f32 %v6651_v43, %v6650_v14  ;;  %v4412_v29 = vpack.c.bf16 %v4406_v12, %v4406_v12 }
 0xa5e   :  { %v6653_v46 = vpop.f32.mrf.mxu0  ;;  %v4408_v27 = vpop.f32.mrf.mxu1 }
 0xa5f   :  { %v4364_v13 = vadd.f32 %v6652_v39, %v4146_v8  ;;  %4574 = vmatprep.mubr.bf16.mxu1 %v4412_v29  ;;  %v5029_v39 = vld [vmem:[%s9484_s16] sm:$0x1]  ;;  %v6449_v29 = vld [vmem:[%s9484_s16 + $0x2] sm:$0x1]  ;;  %v6456_v46 = vld [vmem:[%s9484_s16 + $0x3] sm:$0x1] }
 0xa60   :  { %v6654_v32 = vpop.f32.mrf.mxu0  ;;  %v4409_v17 = vpop.f32.mrf.mxu1  ;;  %4575 = vmatmul.mubr.bf16.vlgmr.msra.gmra.mxu1 %v4411_v53  ;;  %v6438_v53 = vld [vmem:[%s9484_s16 + $0x1] sm:$0x1]  ;;  %v6440_v27 = vld [vmem:[%s9485_s17 + $0x8] sm:$0x77] }
 0xa61   :  { %4819 = vmatpush1.bf16.msra.mxu1 %v8890_v9  ;;  %4838 = vmatprep.mubr.bf16.mxu1 %v7594_v25  ;;  %v7203_v9 = vld [vmem:[%s9482_s14 + $0x470] sm:$0xff]   ;;  %v6441_v32 = vcombine.low %v6440_v27, %v6440_v27 }
 0xa62   :  { %4820 = vmatprep.subr.bf16.mxu1 %v8894_v15  ;;  %v4622_v47 = vpop.f32.mrf.mxu0 }
 0xa63   :  { %v4629_v41 = vpack.c.bf16 %v4622_v47, %v4622_v47  ;;  %v5078_v47 = vld [vmem:[%s9485_s17] sm:$0x77] }
 0xa64   :  { %v4624_v20 = vpop.f32.mrf.mxu0 }
 0xa65   :  { %v4630_v58 = vpack.c.bf16 %v4624_v20, %v4624_v20  ;;  %4821 = vmatpush1.bf16.msra.mxu1 %v8900_v10  ;;  %v7204_v10 = vld [vmem:[%s9482_s14 + $0x430] sm:$0xff]  }
 0xa66   :  { %6700 = vmatprep.subr.bf16.mxu1 %v7201_v0  ;;  %v4626_v15 = vpop.f32.mrf.mxu0  ;;  %v6446_v0 = vcombine.high %v5078_v47, %v5078_v47  ;;  %v7227_v20 = vld [vmem:[%s9487_s19 + $0x74] ss:$8 sps:$4 sm:$0xff]  }
 0xa67   :  { %4792 = vmatprep.mubr.bf16.mxu0 %v4630_v58  ;;  %v7230_v58 = vld [vmem:[%s9487_s19 + $0x64] ss:$8 sps:$4 sm:$0xff]  }
 0xa68   :  { %4793 = vmatmul.mubr.bf16.vlgmr.msra.gmra.mxu0 %v4629_v41  ;;  %6387 = vmatmul.mubr.msk.bf16.vlgmr.msra.gmra.mxu1 %vm3061_vm14, %v4802_v16  ;;  %v4627_v11 = vpop.f32.mrf.mxu0  ;;  %v7225_v41 = vld [vmem:[%s9487_s19 + $0x70] ss:$8 sps:$4 sm:$0xff]   ;;  %v7228_v16 = vld [vmem:[%s9487_s19 + $0x60] ss:$8 sps:$4 sm:$0xff]  }
 0xa69   :  { %6701 = vmatpush3.bf16.msra.mxu1 %v7202_v49  ;;  %6804 = vmatprep.mubr.msk.bf16.mxu0 %vm7596_vm15, %v7595_v31  ;;  %v7233_v49 = vld [vmem:[%s9487_s19 + $0x54] ss:$8 sps:$4 sm:$0xff]  }
 0xa6a   :  { %6702 = vmatprep.subr.bf16.mxu1 %v7203_v9  ;;  %v7231_v9 = vld [vmem:[%s9487_s19 + $0x50] ss:$8 sps:$4 sm:$0xff]  }
 0xa6d   :  { %6703 = vmatpush3.bf16.msra.mxu1 %v7204_v10 }
 0xa6e   :  { %6704 = vmatprep.subr.bf16.mxu1 %v7205_v56 }
 0xa71   :  { %6705 = vmatpush3.bf16.msra.mxu1 %v7206_v48 }
 0xa72   :  { %6706 = vmatprep.subr.bf16.mxu1 %v7207_v22 }
 0xa75   :  { %6707 = vmatpush3.bf16.msra.mxu1 %v7208_v63  ;;  %v6445_v63 = vcombine.low %v5078_v47, %v5078_v47 }
 0xa76   :  { %6708 = vmatprep.subr.bf16.mxu1 %v7209_v23 }
 0xa79   :  { %6709 = vmatpush3.bf16.msra.mxu1 %v7210_v19  ;;  %v6451_v19 = vld [vmem:[%s9485_s17 + $0x10] sm:$0x77] }
 0xa7a   :  { %6710 = vmatprep.subr.bf16.mxu1 %v7211_v26 }
 0xa7d   :  { %6711 = vmatpush3.bf16.msra.mxu1 %v7212_v34 }
 0xa7e   :  { %6712 = vmatprep.subr.bf16.mxu1 %v7213_v62 }
 0xa81   :  { %6713 = vmatpush3.bf16.msra.mxu1 %v7214_v52 }
 0xa82   :  { %6714 = vmatprep.subr.bf16.mxu1 %v7215_v28 }
 0xa85   :  { %6715 = vmatpush3.bf16.msra.mxu1 %v7216_v42  ;;  %v6453_v42 = vcombine.high %v6451_v19, %v6451_v19 }
 0xa86   :  { %6814 = vmatprep.subr.bf16.mxu1 %v7595_v31 }
 0xb20   :  { %v6672_v18 = vpop.f32.mrf.mxu1 }
 0xb22   :  { %v6673_v37 = vpop.f32.mrf.mxu1 }
 0xb23   :  { %v6674_v54 = vadd.f32 %v6673_v37, %v6672_v18 }
 0xb24   :  { %v6675_v45 = vpop.f32.mrf.mxu1 }
 0xb25   :  { %v4582_v35 = vadd.f32 %v6674_v54, %v4364_v13  ;;  %v6442_v13 = vcombine.high %v6440_v27, %v6440_v27 }
 0xb26   :  { %v6676_v60 = vpop.f32.mrf.mxu1 }
 0xb28   :  { %v6694_v59 = vpop.f32.mrf.mxu0  ;;  %v4840_v36 = vpop.f32.mrf.mxu1 }
 0xb29   :  { %v4847_v51 = vpack.c.bf16 %v4840_v36, %v4840_v36 }
 0xb2a   :  { %v6695_v33 = vpop.f32.mrf.mxu0  ;;  %v4842_v2 = vpop.f32.mrf.mxu1 }
 0xb2b   :  { %v6696_v57 = vadd.f32 %v6695_v33, %v6694_v59  ;;  %v4848_v50 = vpack.c.bf16 %v4842_v2, %v4842_v2  ;;  %v6458_v59 = vld [vmem:[%s9485_s17 + $0x18] sm:$0x77] }
 0xb2c   :  { %v4844_v21 = vpop.f32.mrf.mxu1  ;;  %v6697_v40 = vpop.f32.mrf.mxu0 }
 0xb2d   :  { %v4800_v38 = vadd.f32 %v6696_v57, %v4582_v35  ;;  %5010 = vmatprep.mubr.bf16.mxu1 %v4848_v50  ;;  %v6452_v35 = vcombine.low %v6451_v19, %v6451_v19  ;;  %v6460_v57 = vcombine.high %v6458_v59, %v6458_v59  ;;  %v6459_v50 = vcombine.low %v6458_v59, %v6458_v59 }
 0xb2e   :  { %v4845_v44 = vpop.f32.mrf.mxu1  ;;  %5011 = vmatmul.mubr.bf16.vlgmr.msra.gmra.mxu1 %v4847_v51  ;;  %v6698_v24 = vpop.f32.mrf.mxu0 }
 0xb2f   :  { %6816 = vmatprep.mubr.msk.bf16.mxu1 %vm7596_vm15, %v7595_v31  ;;  %v7236_v44 = vld [vmem:[%s9487_s19 + $0x44] ss:$8 sps:$4 sm:$0xff]   ;;  %v7237_v24 = vld [vmem:[%s9487_s19 + $0x30] ss:$8 sps:$4 sm:$0xff]  }
 0xbee   :  { %v6716_v4 = vpop.f32.mrf.mxu1 }
 0xbf0   :  { %v6717_v1 = vpop.f32.mrf.mxu1 }
 0xbf1   :  { %v6718_v5 = vadd.f32 %v6717_v1, %v6716_v4  ;;  %v7242_v4 = vld [vmem:[%s9487_s19 + $0x24] ss:$8 sps:$4 sm:$0xff]   ;;  %v7243_v1 = vld [vmem:[%s9487_s19 + $0x10] ss:$8 sps:$4 sm:$0xff]  }
 0xbf2   :  { %v6719_v6 = vpop.f32.mrf.mxu1 }
 0xbf3   :  { %v5018_v8 = vadd.f32 %v6718_v5, %v4800_v38  ;;  %v7234_v38 = vld [vmem:[%s9487_s19 + $0x40] ss:$8 sps:$4 sm:$0xff]   ;;  %v7245_v5 = vld [vmem:[%s9487_s19 + $0x14] ss:$8 sps:$4 sm:$0xff]   ;;  %v7248_v6 = vld [vmem:[%s9487_s19 + $0x4] ss:$8 sps:$4 sm:$0xff]  }
 0xbf4   :  { %v6720_v61 = vpop.f32.mrf.mxu1 }
 0xbf5   :  { %v5026_v14 = vadd.f32 %v6436_v30, %v5018_v8  ;;  %v7246_v30 = vld [vmem:[%s9487_s19] ss:$8 sps:$4 sm:$0xff]   ;;  %v7249_v8 = vld [vmem:[%s9487_s19 + $0xb0] ss:$8 sps:$4 sm:$0xff]   ;;  %v7251_v61 = vld [vmem:[%s9487_s19 + $0xb4] ss:$8 sps:$4 sm:$0xff]  }
 0xbf7   :  { %v5027_v55 = vmax.f32 %v5026_v14, 0.0  ;;  %v7254_v14 = vld [vmem:[%s9487_s19 + $0xa4] ss:$8 sps:$4 sm:$0xff]  }
 0xbf9   :  { %v5028_v43 = vpack.c.bf16 %v5027_v55, %v5027_v55  ;;  %v7252_v55 = vld [vmem:[%s9487_s19 + $0xa0] ss:$8 sps:$4 sm:$0xff]  }
 0xbfb   :  { %v5035_v12 = vsel %vm300_vm0, %v5028_v43, 0  ;;  %vm5136_vm0 = vcmask 1042432   ;;  %v7255_v43 = vld [vmem:[%s9487_s19 + $0x90] ss:$8 sps:$4 sm:$0xff]  }
 0xbfc   :  { %6803 = vmatpush3.bf16.msra.mxu0 %v5035_v12  ;;  %6815 = vmatpush3.bf16.msra.mxu1 %v5035_v12  ;;  %v5138_v17 = vsel %vm5136_vm0, %v6441_v32, 0  ;;  %v5193_v28 = vsel %vm5136_vm0, %v6445_v63, 0  ;;  %v5296_v2 = vsel %vm5136_vm0, %v6452_v35, 0  ;;  %v5401_v21 = vsel %vm5136_vm0, %v6459_v50, 0 }
 0xbfd   :  { %6808 = vmatprep.subr.bf16.mxu0 %v7595_v31  ;;  %6820 = vmatprep.subr.bf16.mxu1 %v7595_v31 }
 0xbff   :  { %6805 = vmatmul.mubr.msk.bf16.vlgmr.msra.gmra.mxu0 %vm5030_vm1, %v5029_v39  ;;  %6817 = vmatmul.mubr.msk.bf16.vlgmr.msra.gmra.mxu1 %vm5030_vm1, %v6449_v29  ;;  %v7260_v39 = vld [vmem:[%s9487_s19 + $0x84] ss:$8 sps:$4 sm:$0xff]   ;;  %v7258_v29 = vld [vmem:[%s9487_s19 + $0x80] ss:$8 sps:$4 sm:$0xff]  }
 0xc00   :  { %6809 = vmatpush3.bf16.msra.mxu0 %v5035_v12  ;;  %6821 = vmatpush3.bf16.msra.mxu1 %v5035_v12  ;;  %v7257_v12 = vld [vmem:[%s9487_s19 + $0x94] ss:$8 sps:$4 sm:$0xff]  }
 0xc01   :  { %6810 = vmatprep.mubr.msk.bf16.mxu0 %vm7596_vm15, %v7595_v31  ;;  %6822 = vmatprep.mubr.msk.bf16.mxu1 %vm7596_vm15, %v7595_v31  ;;  %v7240_v31 = vld [vmem:[%s9487_s19 + $0x20] ss:$8 sps:$4 sm:$0xff]  }
 0xc02   :  { %6443 = vmatprep.subr.msk.bf16.mxu0 %vm5136_vm0, %v6442_v13  ;;  %5627 = vmatprep.subr.bf16.mxu1 %v7227_v20 }
 0xc07   :  { %6811 = vmatmul.mubr.msk.bf16.vlgmr.msra.gmra.mxu0 %vm5030_vm1, %v6438_v53  ;;  %6823 = vmatmul.mubr.msk.bf16.vlgmr.msra.gmra.mxu1 %vm5030_vm1, %v6456_v46 }
 0xc08   :  { %5175 = vmatprep.mubr.bf16.mxu0 %v7594_v25  ;;  %5158 = vmatpush1.bf16.msra.mxu0 %v5138_v17 }
 0xc09   :  { %6447 = vmatprep.subr.msk.bf16.mxu0 %vm5136_vm0, %v6446_v0  ;;  %5628 = vmatpush1.bf16.msra.mxu1 %v7225_v41 }
 0xc0a   :  { %5629 = vmatprep.subr.bf16.mxu1 %v7230_v58 }
 0xc0d   :  { %5630 = vmatpush1.bf16.msra.mxu1 %v7228_v16  ;;  %v5449_v16 = vld [vmem:[#allocation20] sm:$0x3] }
 0xc0e   :  { %5631 = vmatprep.subr.bf16.mxu1 %v7233_v49  ;;  %v5458_v63 = vrot.slane %v5449_v16, %v8015_v7 }
 0xc11   :  { %5632 = vmatpush1.bf16.msra.mxu1 %v7231_v9 }
 0xc12   :  { %5633 = vmatprep.subr.bf16.mxu1 %v7236_v44 }
 0xc15   :  { %5634 = vmatpush1.bf16.msra.mxu1 %v7234_v38 }
 0xcbf   :  { %v5071_v15 = vpop.f32.mrf.mxu0  ;;  %v5278_v11 = vpop.f32.mrf.mxu1 }
 0xcc0   :  { %v5077_v33 = vpack.c.bf16 %v5071_v15, %v5071_v15  ;;  %v5284_v51 = vpack.c.bf16 %v5278_v11, %v5278_v11 }
 0xcc1   :  { %v6806_v10 = vpop.f32.mrf.mxu0  ;;  %v6818_v56 = vpop.f32.mrf.mxu1 }
 0xcc2   :  { %v5454_v10 = vrot.slane %v5449_v16, %v8008_v3 }
 0xcc3   :  { %v5074_v48 = vpop.f32.mrf.mxu0  ;;  %v5281_v22 = vpop.f32.mrf.mxu1 }
 0xcc5   :  { %v6807_v23 = vpop.f32.mrf.mxu0  ;;  %v6819_v26 = vpop.f32.mrf.mxu1 }
 0xcc7   :  { %v5118_v34 = vpop.f32.mrf.mxu0  ;;  %v5383_v62 = vpop.f32.mrf.mxu1 }
 0xcc8   :  { %v5124_v52 = vpack.c.bf16 %v5118_v34, %v5118_v34  ;;  %v5389_v40 = vpack.c.bf16 %v5383_v62, %v5383_v62 }
 0xcc9   :  { %v6812_v18 = vpop.f32.mrf.mxu0  ;;  %v6824_v37 = vpop.f32.mrf.mxu1 }
 0xcca   :  { %6444 = vmatmul.mubr.msk.bf16.vlgmr.msra.gmra.mxu0 %vm5132_vm2, %v5124_v52 }
 0xccb   :  { %v5121_v54 = vpop.f32.mrf.mxu0  ;;  %5213 = vmatpush1.bf16.msra.mxu0 %v5193_v28  ;;  %5230 = vmatprep.mubr.bf16.mxu0 %v7594_v25  ;;  %v5386_v45 = vpop.f32.mrf.mxu1 }
 0xccc   :  { %6454 = vmatprep.subr.msk.bf16.mxu0 %vm5136_vm0, %v6453_v42  ;;  %v5491_v54 = vld [vmem:[#allocation22] sm:$0x3] }
 0xccd   :  { %v6813_v60 = vpop.f32.mrf.mxu0  ;;  %v6825_v36 = vpop.f32.mrf.mxu1  ;;  %v5496_v45 = vrot.slane %v5491_v54, %v8008_v3  ;;  %v5500_v35 = vrot.slane %v5491_v54, %v8015_v7 }
 0xcd2   :  { %6448 = vmatmul.mubr.msk.bf16.vlgmr.msra.gmra.mxu0 %vm5132_vm2, %v5077_v33 }
 0xcd3   :  { %5316 = vmatpush1.bf16.msra.mxu0 %v5296_v2  ;;  %5333 = vmatprep.mubr.bf16.mxu0 %v7594_v25 }
 0xcd4   :  { %6461 = vmatprep.subr.msk.bf16.mxu0 %vm5136_vm0, %v6460_v57 }
 0xcda   :  { %6455 = vmatmul.mubr.msk.bf16.vlgmr.msra.gmra.mxu0 %vm5132_vm2, %v5284_v51 }
 0xcdb   :  { %5421 = vmatpush1.bf16.msra.mxu0 %v5401_v21  ;;  %5438 = vmatprep.mubr.bf16.mxu0 %v7594_v25  ;;  %v7239_v25 = vld [vmem:[%s9487_s19 + $0x34] ss:$8 sps:$4 sm:$0xff]   ;;  %s7597_s19 = smov [#allocation23]  }
 0xcdc   :  { %5635 = vmatprep.subr.bf16.mxu1 %v7239_v25  ;;  %s5686_s27 = sshll.u32 %s7597_s19, 4  ;;  %s5687_s27 = int_to_ptr.vmem [resolvable:$true] %s5686_s27 }
 0xcdd   :  { %5636 = vmatpush1.bf16.msra.mxu1 %v7237_v24  ;;  %s7540_s9 = scalar_lea.vmem %s5687_s27, 32  ;;  %p7545_p10 = scmp.lt.s32.totalorder %s5687_s27, %s5687_s27 }
 0xcde   :  { %5637 = vmatprep.subr.bf16.mxu1 %v7242_v4  ;;  %p7541_p9 = scmp.ne.s32.totalorder %s5687_s27, %s7540_s9  ;;  %p7546_p11 = scmp.lt.s32.totalorder %s7540_s9, %s7540_s9 }
 0xce0   :  { %p7547_p12 = por %p7546_p11, %p7545_p10 }
 0xce1   :  { %5638 = vmatpush1.bf16.msra.mxu1 %v7240_v31 }
 0xce2   :  { %6462 = vmatmul.mubr.msk.bf16.vlgmr.msra.gmra.mxu0 %vm5132_vm2, %v5389_v40  ;;  %5639 = vmatprep.subr.bf16.mxu1 %v7245_v5  ;;  %p7548_p13 = pnand %p7547_p12, %p7541_p9 }
 0xce5   :  { %5640 = vmatpush1.bf16.msra.mxu1 %v7243_v1 }
 0xce6   :  { %5641 = vmatprep.subr.bf16.mxu1 %v7248_v6 }
 0xce9   :  { %5642 = vmatpush1.bf16.msra.mxu1 %v7246_v30 }
 0xcea   :  { %5651 = vmatprep.subr.bf16.mxu1 %v7251_v61 }
 0xced   :  { %5652 = vmatpush2.bf16.msra.mxu1 %v7249_v8 }
 0xcee   :  { %5653 = vmatprep.subr.bf16.mxu1 %v7254_v14 }
 0xcf1   :  { %5654 = vmatpush2.bf16.msra.mxu1 %v7252_v55 }
 0xcf2   :  { %5655 = vmatprep.subr.bf16.mxu1 %v7257_v12 }
 0xcf5   :  { %5656 = vmatpush2.bf16.msra.mxu1 %v7255_v43 }
 0xcf6   :  { %5657 = vmatprep.subr.bf16.mxu1 %v7260_v39 }
 0xcf9   :  { %5658 = vmatpush2.bf16.msra.mxu1 %v7258_v29 }
 0xd8a   :  { %v5177_v53 = vpop.f32.mrf.mxu0 }
 0xd8c   :  { %v5179_v46 = vpop.f32.mrf.mxu0 }
 0xd8e   :  { %v5181_v27 = vpop.f32.mrf.mxu0 }
 0xd90   :  { %v5182_v13 = vpop.f32.mrf.mxu0 }
 0xd92   :  { %v5232_v32 = vpop.f32.mrf.mxu0 }
 0xd93   :  { %v5233_v49 = vadd.f32 %v5232_v32, %v5177_v53 }
 0xd94   :  { %v5234_v17 = vpop.f32.mrf.mxu0 }
 0xd95   :  { %v5235_v15 = vadd.f32 %v5234_v17, %v5179_v46 }
 0xd96   :  { %v5236_v47 = vpop.f32.mrf.mxu0 }
 0xd98   :  { %v5237_v0 = vpop.f32.mrf.mxu0 }
 0xd9a   :  { %v5335_v41 = vpop.f32.mrf.mxu0 }
 0xd9b   :  { %v5342_v11 = vadd.f32 %v5335_v41, %v5233_v49 }
 0xd9c   :  { %v5337_v20 = vpop.f32.mrf.mxu0 }
 0xd9d   :  { %v5343_v48 = vadd.f32 %v5337_v20, %v5235_v15 }
 0xd9e   :  { %v5339_v58 = vpop.f32.mrf.mxu0 }
 0xda0   :  { %v5340_v9 = vpop.f32.mrf.mxu0 }
 0xda2   :  { %v5440_v56 = vpop.f32.mrf.mxu0 }
 0xda3   :  { %v5447_v22 = vadd.f32 %v5440_v56, %v5342_v11 }
 0xda4   :  { %v5442_v23 = vpop.f32.mrf.mxu0 }
 0xda5   :  { %v5461_v19 = vadd.f32 %v5454_v10, %v5447_v22  ;;  %v5448_v26 = vadd.f32 %v5442_v23, %v5343_v48 }
 0xda6   :  { %v5444_v34 = vpop.f32.mrf.mxu0 }
 0xda7   :  { %v5462_v62 = vadd.f32 %v5458_v63, %v5448_v26  ;;  %v5463_v52 = vmax.f32 %v5461_v19, 0.0 }
 0xda8   :  { %v5445_v28 = vpop.f32.mrf.mxu0 }
 0xda9   :  { %v5464_v42 = vmax.f32 %v5462_v62, 0.0  ;;  %v5465_v37 = vpack.c.bf16 %v5463_v52, %v5463_v52 }
 0xdab   :  { %v5466_v18 = vpack.c.bf16 %v5464_v42, %v5464_v42 }
 0xdad   :  { %6487 = vmatprep.mubr.msk.bf16.mxu1 %vm5623_vm3, %v5466_v18 }
 0xdae   :  { %5660 = vmatmul.mubr.bf16.vlgmr.msra.gmra.mxu1 %v5465_v37 }
 0xe6e   :  { %v5661_v60 = vpop.f32.mrf.mxu1 }
 0xe6f   :  { %v5662_v59 = vadd.f32 %v5661_v60, %v5496_v45 }
 0xe70   :  { %v5663_v36 = vpop.f32.mrf.mxu1 }
 0xe71   :  { %v5664_v33 = vadd.f32 %v5663_v36, %v5500_v35  ;;  %v5668_v57 = vmul.f32 %v5662_v59, %v5662_v59 }
 0xe72   :  { %v5665_v2 = vpop.f32.mrf.mxu1 }
 0xe73   :  { %v5669_v50 = vmul.f32 %v5664_v33, %v5664_v33 }
 0xe74   :  { %v5666_v51 = vpop.f32.mrf.mxu1 }
 0xe75   :  { %v5670_v21 = vadd.f32 %v5669_v50, %v5668_v57 }
 0xe77   :  { %7273 = vrsqrt.f32 %v5670_v21  ;;  %vm5673_vm4 = vcmp.eq.f32.partialorder %v5670_v21, inf  ;;  %v5676_v44 = vand.u32 2147483648, %v5670_v21  ;;  %vm5675_vm6 = vcmp.eq.f32.partialorder %v5670_v21, 0.0 }
 0xe84   :  { %v7274_v40 = vpop.eup %7273 }
 0xe85   :  { %v5672_v38 = vmul.f32 %v7274_v40, %v5670_v21 }
 0xe87   :  { %v5674_v3 = vsel %vm5673_vm4, %v5670_v21, %v5672_v38 }
 0xe88   :  { %v5677_v7 = vsel %vm5675_vm6, %v5676_v44, %v5674_v3 }
 0xe89   :  { %5679 = vst.msk [vmem:[#allocation23] sm:$0x3] %vm5678_vm5, %v5677_v7 }
 0xe8a   :  { %7551 = shalt.err (!%p7548_p13)
}
 0xe8b   :  { %5689 = dma.vmem_to_hbm [thread:$0]  %s5687_s27, 32, %s9489_s21, [#allocation4]  }
 0xe8c   :  { %7574 = dma.done.wait [#allocation4], 32  }
 0xe8d   :  { %7575 = vsyncadd [#allocation4], 4294967264 }
 0xe8e   :  { %5693 = vsyncpa [#allocation3], 1 }
 0xe8f   :  { %5694 = vsyncpa [#allocation6], 1 }
 0xe90   :  { %5695 = vsyncpa [#allocation9], 1 }
 0xe91   :  { %5696 = vsyncpa [#allocation12], 1 }
 0xe92   :  { %5697 = vsyncpa [#allocation15], 1 }
 0xe93   :  { %5698 = vsyncpa [#allocation18], 1 }
 0xe94   :  { %5699 = vsyncpa [#allocation21], 1 }
 0xe95   :  { %5700 = vsyncpa [#allocation4], 1 }

</bundles_post_ra>
